<compile_context>
chip_gen: v7x
topology: tpu7x:2x2x1
jax: 0.10.0
libtpu: 0.0.40
codegen_flags: <defaults>
</compile_context>

<pallas_src>
import functools

import jax
import jax.numpy as jnp
import numpy as np
from jax.experimental import pallas as pl
from jax.experimental.pallas import tpu as pltpu

KSIZE = 7
PAD = KSIZE // 2


def _spatial_attention_kernel(x_ref, w_ref, o_ref, sum_ref, max_ref, pad_ref,
                              *, H, W, pad_off):
    # x_ref:   (tb, tc, H*W)      VMEM  one batch/channel tile (lane-dense)
    # w_ref:   (2*KSIZE*KSIZE,)   SMEM  conv weights pre-scaled by
    #                                   [channel_w[0]/C, channel_w[1]], order [ci, kh, kw]
    # o_ref:   (tb, 1, H*W)       VMEM  sigmoid(conv(...))
    # sum_ref: (tb, H*W) f32      VMEM scratch: running channel sum
    # max_ref: (tb, H*W) f32      VMEM scratch: running channel max
    # pad_ref: (2, tb, L) f32     VMEM scratch: zero-padded flat maps for the conv
    HW = H * W
    c = pl.program_id(1)
    nc = pl.num_programs(1)

    # ---- streamed channel reduction (hot path) ------------------------------
    # Two independent reads: each reduction fuses with its own load so the full
    # block is never held (let alone upcast) in vregs.  Sum accumulates in f32;
    # max is exact in the native dtype and only the result is upcast.
    psum = jnp.sum(x_ref[...], axis=1, dtype=jnp.float32)       # (tb, HW)
    pmax = jnp.max(x_ref[...], axis=1).astype(jnp.float32)      # (tb, HW)

    @pl.when(c == 0)
    def _init():
        sum_ref[...] = psum
        max_ref[...] = pmax

    @pl.when(c != 0)
    def _accumulate():
        sum_ref[...] = sum_ref[...] + psum
        max_ref[...] = jnp.maximum(max_ref[...], pmax)

    # ---- finalize: 7x7 conv (2 -> 1 channels) + sigmoid, once per batch tile --
    @pl.when(c == nc - 1)
    def _finalize():
        tb = sum_ref.shape[0]

        # Zero-padded *flattened* maps: map lives at [pad_off, pad_off + HW);
        # pad_off >= PAD*W + PAD so every tap slice below stays in bounds and
        # vertical out-of-image taps read zeros.
        pad_ref[...] = jnp.zeros_like(pad_ref)
        pad_ref[0, :, pad_off:pad_off + HW] = sum_ref[...]
        pad_ref[1, :, pad_off:pad_off + HW] = max_ref[...]

        # Column index of every flattened pixel; masks kill the taps that would
        # wrap across a row boundary in the flat layout.
        col = jax.lax.broadcasted_iota(jnp.int32, (1, HW), 1) % W
        col_masks = []
        for kw in range(KSIZE):
            d = kw - PAD
            m = jnp.logical_and(col + d >= 0, col + d < W)
            col_masks.append(m.astype(jnp.float32))

        # Cross-correlation: out[h, w] += w[ci, kh, kw] * in_ci[h+kh-P, w+kw-P].
        # In flat coords that is a static Ref slice at offset
        # pad_off + (kh-P)*W + (kw-P), masked on the w-wrap.
        acc = jnp.zeros((tb, HW), jnp.float32)
        for ci in range(2):
            for kh in range(KSIZE):
                row_shift = pad_off + (kh - PAD) * W - PAD
                for kw in range(KSIZE):
                    tap = pad_ref[ci, :, row_shift + kw:row_shift + kw + HW]
                    wgt = w_ref[ci * KSIZE * KSIZE + kh * KSIZE + kw]
                    acc = acc + (wgt * col_masks[kw]) * tap

        o_ref[:, 0, :] = jax.nn.sigmoid(acc).astype(o_ref.dtype)


@functools.lru_cache(maxsize=1)
def _budgets():
    """(per-input-block byte budget, vmem_limit_bytes) — generation aware."""
    try:
        vmem = int(pltpu.get_tpu_info().vmem_capacity_bytes)
    except Exception:  # query unavailable: stay conservative
        vmem = 0
    if vmem >= 100 * 1024 * 1024:          # v4 / v5e / v6e: 128 MiB physical VMEM
        return 6 * 1024 * 1024, 96 * 1024 * 1024
    if vmem >= 48 * 1024 * 1024:           # v7x: 64 MiB physical VMEM
        return 3 * 1024 * 1024, 40 * 1024 * 1024
    return 2 * 1024 * 1024, None           # unknown / old: default scoped limit


def _choose_tile_c(C, cap_elems):
    # The channel tile is the block's second-minor dim: it must be a multiple
    # of 8 or equal the full C.  Prefer the largest valid divisor that fits.
    cands = [d for d in range(1, C + 1) if C % d == 0 and (d == C or d % 8 == 0)]
    fitting = [d for d in cands if d <= cap_elems]
    return max(fitting) if fitting else min(cands)   # correctness over budget


def _choose_tile_b(N, cap):
    cap = int(max(1, min(N, cap)))
    for d in range(cap, 0, -1):
        if N % d == 0:
            return d
    return 1


def _choose_tiles(N, C, HW, itemsize, budget_bytes):
    per_channel = max(1, HW * itemsize)
    tc = _choose_tile_c(C, max(1, budget_bytes // per_channel))
    tb = _choose_tile_b(N, max(1, budget_bytes // (per_channel * tc)))
    if N >= 2 and N // tb < 2:           # keep >= 2 parallel programs (v7x: 2 TCs)
        tb = _choose_tile_b(N, N // 2)
    return tb, tc


def spatial_attention(x, conv_w, channel_w, *, tile_b=None, tile_c=None):
    """x: (N, C, H, W); conv_w: (1, 2, 7, 7); channel_w: (2,) -> (N, 1, H, W)."""
    N, C, H, W = x.shape
    HW = H * W
    itemsize = jnp.dtype(x.dtype).itemsize

    block_budget, vmem_limit = _budgets()
    auto_tb, auto_tc = _choose_tiles(N, C, HW, itemsize, block_budget)
    tb = auto_tb if tile_b is None else int(tile_b)
    tc = auto_tc if tile_c is None else int(tile_c)
    if N % tb != 0 or C % tc != 0:
        raise ValueError(f"tiles ({tb}, {tc}) must divide (N={N}, C={C})")
    if tc != C and tc % 8 != 0:
        raise ValueError(f"tile_c={tc} must equal C or be a multiple of 8")

    # Lane-dense view of the input; a no-copy reshape of contiguous NCHW.
    x_flat = x.reshape(N, C, HW)

    # Fold channel_weight and the 1/C mean scale into the conv weights (conv is
    # linear): conv channel 0 consumes the raw channel *sum*, channel 1 the max.
    scale = channel_w.reshape(-1).astype(jnp.float32) * jnp.array(
        [1.0 / C, 1.0], dtype=jnp.float32)
    conv_flat = (conv_w.reshape(2, KSIZE * KSIZE).astype(jnp.float32)
                 * scale[:, None]).reshape(-1)                    # order [ci, kh, kw]

    # Padded flat-map scratch: center at a lane-aligned offset, borders zero.
    pad_off = ((PAD * W + PAD + 127) // 128) * 128
    L = pad_off + HW + PAD * W + PAD

    kernel = functools.partial(_spatial_attention_kernel, H=H, W=W, pad_off=pad_off)

    out_flat = pl.pallas_call(
        kernel,
        out_shape=jax.ShapeDtypeStruct((N, 1, HW), x.dtype),
        grid=(N // tb, C // tc),
        in_specs=[
            pl.BlockSpec((tb, tc, HW), lambda b, c: (b, c, 0)),
            pl.BlockSpec(memory_space=pltpu.MemorySpace.SMEM),
        ],
        out_specs=pl.BlockSpec((tb, 1, HW), lambda b, c: (b, 0, 0)),
        scratch_shapes=[
            pltpu.VMEM((tb, HW), jnp.float32),      # running channel sum
            pltpu.VMEM((tb, HW), jnp.float32),      # running channel max
            pltpu.VMEM((2, tb, L), jnp.float32),    # zero-padded maps for the conv
        ],
        compiler_params=pltpu.CompilerParams(
            dimension_semantics=("parallel", "arbitrary"),
            vmem_limit_bytes=vmem_limit,
        ),
    )(x_flat, conv_flat)

    return out_flat.reshape(N, 1, H, W)


def _reference(x, conv_w, channel_w):
    """Pure-JAX replica of the PyTorch forward, for validation."""
    avg_out = jnp.mean(x, axis=1, keepdims=True)
    max_out = jnp.max(x, axis=1, keepdims=True)
    cat = jnp.concatenate(
        [avg_out * channel_w[0], max_out * channel_w[1]], axis=1)
    out = jax.lax.conv_general_dilated(
        cat, conv_w, window_strides=(1, 1),
        padding=[(PAD, PAD), (PAD, PAD)],
        dimension_numbers=("NCHW", "OIHW", "NCHW"))
    return jax.nn.sigmoid(out)


if __name__ == "__main__":
    key = jax.random.PRNGKey(0)
    k_x, k_w, k_x2, k_x3 = jax.random.split(key, 4)

    # Shapes from SpatialAttention: conv1.weight (1,2,7,7) no bias; channel_weight (2,)
    N, C, H, W = 2, 4, 16, 16
    x = jax.random.normal(k_x, (N, C, H, W), dtype=jnp.float32)
    conv_w = (jax.random.normal(k_w, (1, 2, KSIZE, KSIZE), dtype=jnp.float32)
              * (1.0 / np.sqrt(2.0 * KSIZE * KSIZE)))
    channel_w = jnp.array([0.5, 1.5], dtype=jnp.float32)   # non-trivial learned values

    out = jax.block_until_ready(spatial_attention(x, conv_w, channel_w))
    ref = jax.block_until_ready(_reference(x, conv_w, channel_w))
    assert out.shape == (N, 1, H, W), out.shape
    np.testing.assert_allclose(np.asarray(out), np.asarray(ref), atol=2e-5, rtol=2e-5)

    # Multi-step channel streaming: grid = (2, 2), accumulate across 2 channel tiles.
    x2 = jax.random.normal(k_x2, (2, 16, 16, 16), dtype=jnp.float32)
    out2 = jax.block_until_ready(
        spatial_attention(x2, conv_w, channel_w, tile_b=1, tile_c=8))
    ref2 = jax.block_until_ready(_reference(x2, conv_w, channel_w))
    np.testing.assert_allclose(np.asarray(out2), np.asarray(ref2), atol=2e-5, rtol=2e-5)

    # bf16 inputs: HBM traffic stays bf16; kernel sums in f32, max exact in bf16.
    x3 = jax.random.normal(k_x3, (2, 16, 16, 16), dtype=jnp.bfloat16)
    out3 = jax.block_until_ready(
        spatial_attention(x3, conv_w, channel_w, tile_b=1, tile_c=8))
    ref3 = jax.block_until_ready(
        _reference(x3.astype(jnp.float32), conv_w, channel_w))
    np.testing.assert_allclose(np.asarray(out3.astype(jnp.float32)), np.asarray(ref3),
                               atol=1e-2, rtol=1e-2)

    print("KERNEL_OK")
</pallas_src>

<mosaic_0001>
module attributes {stable_mosaic.version = 11 : i64} {
  func.func @_spatial_attention_kernel(%arg0: i32, %arg1: i32, %arg2: memref<1x4x256xf32, #tpu.memory_space<vmem>>, %arg3: memref<98xf32, #tpu.memory_space<smem>>, %arg4: memref<1x1x256xf32, #tpu.memory_space<vmem>>, %arg5: memref<1x256xf32, #tpu.memory_space<vmem>>, %arg6: memref<1x256xf32, #tpu.memory_space<vmem>>, %arg7: memref<2x1x435xf32, #tpu.memory_space<vmem>>) attributes {dimension_semantics = [#tpu.dimension_semantics<parallel>, #tpu.dimension_semantics<arbitrary>], iteration_bounds = array<i64: 2, 1>, scalar_prefetch = 0 : i64, scratch_operands = 3 : i64, tpu.core_type = #tpu.core_type<tc>, window_params = [{transform_indices = @transform_0, window_bounds = array<i64: 1, 4, 256>}, {transform_indices = @transform_1, window_bounds = array<i64: 98>}, {transform_indices = @transform_2, window_bounds = array<i64: 1, 1, 256>}]} {
    %c0 = arith.constant 0 : index
    %c0_0 = arith.constant 0 : index
    %c0_1 = arith.constant 0 : index
    %0 = vector.load %arg2[%c0, %c0_0, %c0_1] : memref<1x4x256xf32, #tpu.memory_space<vmem>>, vector<1x4x256xf32>
    %cst = arith.constant dense<0.000000e+00> : vector<1x256xf32>
    %1 = vector.multi_reduction <add>, %0, %cst [1] : vector<1x4x256xf32> to vector<1x256xf32>
    %c0_2 = arith.constant 0 : index
    %c0_3 = arith.constant 0 : index
    %c0_4 = arith.constant 0 : index
    %2 = vector.load %arg2[%c0_2, %c0_3, %c0_4] : memref<1x4x256xf32, #tpu.memory_space<vmem>>, vector<1x4x256xf32>
    %cst_5 = arith.constant dense<0xFF800000> : vector<1x256xf32>
    %3 = vector.multi_reduction <maximumf>, %2, %cst_5 [1] : vector<1x4x256xf32> to vector<1x256xf32>
    %c0_i32 = arith.constant 0 : i32
    %4 = arith.cmpi eq, %arg1, %c0_i32 : i32
    %5 = arith.extui %4 : i1 to i32
    %c0_i32_6 = arith.constant 0 : i32
    %6 = arith.cmpi ne, %5, %c0_i32_6 : i32
    scf.if %6 {
      %c0_11 = arith.constant 0 : index
      %c0_12 = arith.constant 0 : index
      %13 = vector.load %arg5[%c0_11, %c0_12] : memref<1x256xf32, #tpu.memory_space<vmem>>, vector<1x256xf32>
      tpu.vector_store %arg5[%c0_11, %c0_12], %1 {strides = array<i32>} : memref<1x256xf32, #tpu.memory_space<vmem>>, vector<1x256xf32>,
      %c0_13 = arith.constant 0 : index
      %c0_14 = arith.constant 0 : index
      %14 = vector.load %arg6[%c0_13, %c0_14] : memref<1x256xf32, #tpu.memory_space<vmem>>, vector<1x256xf32>
      tpu.vector_store %arg6[%c0_13, %c0_14], %3 {strides = array<i32>} : memref<1x256xf32, #tpu.memory_space<vmem>>, vector<1x256xf32>,
    } else {
    }
    %c0_i32_7 = arith.constant 0 : i32
    %7 = arith.cmpi ne, %arg1, %c0_i32_7 : i32
    %8 = arith.extui %7 : i1 to i32
    %c0_i32_8 = arith.constant 0 : i32
    %9 = arith.cmpi ne, %8, %c0_i32_8 : i32
    scf.if %9 {
      %c0_11 = arith.constant 0 : index
      %c0_12 = arith.constant 0 : index
      %13 = vector.load %arg5[%c0_11, %c0_12] : memref<1x256xf32, #tpu.memory_space<vmem>>, vector<1x256xf32>
      %14 = arith.addf %13, %1 : vector<1x256xf32>
      %c0_13 = arith.constant 0 : index
      %c0_14 = arith.constant 0 : index
      %15 = vector.load %arg5[%c0_13, %c0_14] : memref<1x256xf32, #tpu.memory_space<vmem>>, vector<1x256xf32>
      tpu.vector_store %arg5[%c0_13, %c0_14], %14 {strides = array<i32>} : memref<1x256xf32, #tpu.memory_space<vmem>>, vector<1x256xf32>,
      %c0_15 = arith.constant 0 : index
      %c0_16 = arith.constant 0 : index
      %16 = vector.load %arg6[%c0_15, %c0_16] : memref<1x256xf32, #tpu.memory_space<vmem>>, vector<1x256xf32>
      %17 = arith.maximumf %16, %3 : vector<1x256xf32>
      %c0_17 = arith.constant 0 : index
      %c0_18 = arith.constant 0 : index
      %18 = vector.load %arg6[%c0_17, %c0_18] : memref<1x256xf32, #tpu.memory_space<vmem>>, vector<1x256xf32>
      tpu.vector_store %arg6[%c0_17, %c0_18], %17 {strides = array<i32>} : memref<1x256xf32, #tpu.memory_space<vmem>>, vector<1x256xf32>,
    } else {
    }
    %c0_i32_9 = arith.constant 0 : i32
    %10 = arith.cmpi eq, %arg1, %c0_i32_9 : i32
    %11 = arith.extui %10 : i1 to i32
    %c0_i32_10 = arith.constant 0 : i32
    %12 = arith.cmpi ne, %11, %c0_i32_10 : i32
    scf.if %12 {
      %cst_11 = arith.constant 0.000000e+00 : f32
      %13 = vector.broadcast %cst_11 : f32 to vector<2x1x435xf32>
      %c0_12 = arith.constant 0 : index
      %c0_13 = arith.constant 0 : index
      %c0_14 = arith.constant 0 : index
      %14 = vector.load %arg7[%c0_12, %c0_13, %c0_14] : memref<2x1x435xf32, #tpu.memory_space<vmem>>, vector<2x1x435xf32>
      tpu.vector_store %arg7[%c0_12, %c0_13, %c0_14], %13 {strides = array<i32>} : memref<2x1x435xf32, #tpu.memory_space<vmem>>, vector<2x1x435xf32>,
      %c0_15 = arith.constant 0 : index
      %c0_16 = arith.constant 0 : index
      %15 = vector.load %arg5[%c0_15, %c0_16] : memref<1x256xf32, #tpu.memory_space<vmem>>, vector<1x256xf32>
      %c0_17 = arith.constant 0 : index
      %c0_18 = arith.constant 0 : index
      %c128 = arith.constant 128 : index
      %16 = vector.load %arg7[%c0_17, %c0_18, %c128] : memref<2x1x435xf32, #tpu.memory_space<vmem>>, vector<1x1x256xf32>
      %17 = vector.shape_cast %16 : vector<1x1x256xf32> to vector<1x256xf32>
      %18 = vector.shape_cast %15 : vector<1x256xf32> to vector<1x1x256xf32>
      tpu.vector_store %arg7[%c0_17, %c0_18, %c128], %18 {strides = array<i32>} : memref<2x1x435xf32, #tpu.memory_space<vmem>>, vector<1x1x256xf32>,
      %c0_19 = arith.constant 0 : index
      %c0_20 = arith.constant 0 : index
      %19 = vector.load %arg6[%c0_19, %c0_20] : memref<1x256xf32, #tpu.memory_space<vmem>>, vector<1x256xf32>
      %c1 = arith.constant 1 : index
      %c0_21 = arith.constant 0 : index
      %c128_22 = arith.constant 128 : index
      %20 = vector.load %arg7[%c1, %c0_21, %c128_22] : memref<2x1x435xf32, #tpu.memory_space<vmem>>, vector<1x1x256xf32>
      %21 = vector.shape_cast %20 : vector<1x1x256xf32> to vector<1x256xf32>
      %22 = vector.shape_cast %19 : vector<1x256xf32> to vector<1x1x256xf32>
      tpu.vector_store %arg7[%c1, %c0_21, %c128_22], %22 {strides = array<i32>} : memref<2x1x435xf32, #tpu.memory_space<vmem>>, vector<1x1x256xf32>,
      %23 = tpu.iota {dimensions = array<i32: 1>} : vector<1x256xi32>
      %c16_i32 = arith.constant 16 : i32
      %c0_i32_23 = arith.constant 0 : i32
      %24 = arith.cmpi eq, %c16_i32, %c0_i32_23 : i32
      %c1_i32 = arith.constant 1 : i32
      %25 = arith.select %24, %c1_i32, %c16_i32 : i32
      %26 = vector.broadcast %25 : i32 to vector<1x256xi32>
      %27 = arith.remsi %23, %26 : vector<1x256xi32>
      %c0_i32_24 = arith.constant 0 : i32
      %28 = vector.broadcast %c0_i32_24 : i32 to vector<1x256xi32>
      %29 = arith.cmpi ne, %27, %28 : vector<1x256xi32>
      %c0_i32_25 = arith.constant 0 : i32
      %30 = vector.broadcast %c0_i32_25 : i32 to vector<1x256xi32>
      %31 = arith.cmpi slt, %27, %30 : vector<1x256xi32>
      %c0_i32_26 = arith.constant 0 : i32
      %32 = arith.cmpi slt, %25, %c0_i32_26 : i32
      %33 = vector.broadcast %32 : i1 to vector<1x256xi1>
      %34 = vector.broadcast %33 : vector<1x256xi1> to vector<1x256xi1>
      %35 = arith.xori %31, %34 : vector<1x256xi1>
      %36 = arith.andi %35, %29 : vector<1x256xi1>
      %37 = vector.broadcast %25 : i32 to vector<1x256xi32>
      %38 = arith.addi %27, %37 : vector<1x256xi32>
      %39 = arith.select %36, %38, %27 : vector<1x256xi1>, vector<1x256xi32>
      %c-3_i32 = arith.constant -3 : i32
      %40 = vector.broadcast %c-3_i32 : i32 to vector<1x256xi32>
      %41 = arith.addi %39, %40 : vector<1x256xi32>
      %c0_i32_27 = arith.constant 0 : i32
      %42 = vector.broadcast %c0_i32_27 : i32 to vector<1x256xi32>
      %43 = arith.cmpi sge, %41, %42 : vector<1x256xi32>
      %c-3_i32_28 = arith.constant -3 : i32
      %44 = vector.broadcast %c-3_i32_28 : i32 to vector<1x256xi32>
      %45 = arith.addi %39, %44 : vector<1x256xi32>
      %c16_i32_29 = arith.constant 16 : i32
      %46 = vector.broadcast %c16_i32_29 : i32 to vector<1x256xi32>
      %47 = arith.cmpi slt, %45, %46 : vector<1x256xi32>
      %48 = arith.andi %43, %47 : vector<1x256xi1>
      %49 = arith.extui %48 : vector<1x256xi1> to vector<1x256xi32>
      %50 = arith.sitofp %49 : vector<1x256xi32> to vector<1x256xf32>
      %c-2_i32 = arith.constant -2 : i32
      %51 = vector.broadcast %c-2_i32 : i32 to vector<1x256xi32>
      %52 = arith.addi %39, %51 : vector<1x256xi32>
      %c0_i32_30 = arith.constant 0 : i32
      %53 = vector.broadcast %c0_i32_30 : i32 to vector<1x256xi32>
      %54 = arith.cmpi sge, %52, %53 : vector<1x256xi32>
      %c-2_i32_31 = arith.constant -2 : i32
      %55 = vector.broadcast %c-2_i32_31 : i32 to vector<1x256xi32>
      %56 = arith.addi %39, %55 : vector<1x256xi32>
      %c16_i32_32 = arith.constant 16 : i32
      %57 = vector.broadcast %c16_i32_32 : i32 to vector<1x256xi32>
      %58 = arith.cmpi slt, %56, %57 : vector<1x256xi32>
      %59 = arith.andi %54, %58 : vector<1x256xi1>
      %60 = arith.extui %59 : vector<1x256xi1> to vector<1x256xi32>
      %61 = arith.sitofp %60 : vector<1x256xi32> to vector<1x256xf32>
      %c-1_i32 = arith.constant -1 : i32
      %62 = vector.broadcast %c-1_i32 : i32 to vector<1x256xi32>
      %63 = arith.addi %39, %62 : vector<1x256xi32>
      %c0_i32_33 = arith.constant 0 : i32
      %64 = vector.broadcast %c0_i32_33 : i32 to vector<1x256xi32>
      %65 = arith.cmpi sge, %63, %64 : vector<1x256xi32>
      %c-1_i32_34 = arith.constant -1 : i32
      %66 = vector.broadcast %c-1_i32_34 : i32 to vector<1x256xi32>
      %67 = arith.addi %39, %66 : vector<1x256xi32>
      %c16_i32_35 = arith.constant 16 : i32
      %68 = vector.broadcast %c16_i32_35 : i32 to vector<1x256xi32>
      %69 = arith.cmpi slt, %67, %68 : vector<1x256xi32>
      %70 = arith.andi %65, %69 : vector<1x256xi1>
      %71 = arith.extui %70 : vector<1x256xi1> to vector<1x256xi32>
      %72 = arith.sitofp %71 : vector<1x256xi32> to vector<1x256xf32>
      %c0_i32_36 = arith.constant 0 : i32
      %73 = vector.broadcast %c0_i32_36 : i32 to vector<1x256xi32>
      %74 = arith.addi %39, %73 : vector<1x256xi32>
      %c0_i32_37 = arith.constant 0 : i32
      %75 = vector.broadcast %c0_i32_37 : i32 to vector<1x256xi32>
      %76 = arith.cmpi sge, %74, %75 : vector<1x256xi32>
      %c0_i32_38 = arith.constant 0 : i32
      %77 = vector.broadcast %c0_i32_38 : i32 to vector<1x256xi32>
      %78 = arith.addi %39, %77 : vector<1x256xi32>
      %c16_i32_39 = arith.constant 16 : i32
      %79 = vector.broadcast %c16_i32_39 : i32 to vector<1x256xi32>
      %80 = arith.cmpi slt, %78, %79 : vector<1x256xi32>
      %81 = arith.andi %76, %80 : vector<1x256xi1>
      %82 = arith.extui %81 : vector<1x256xi1> to vector<1x256xi32>
      %83 = arith.sitofp %82 : vector<1x256xi32> to vector<1x256xf32>
      %c1_i32_40 = arith.constant 1 : i32
      %84 = vector.broadcast %c1_i32_40 : i32 to vector<1x256xi32>
      %85 = arith.addi %39, %84 : vector<1x256xi32>
      %c0_i32_41 = arith.constant 0 : i32
      %86 = vector.broadcast %c0_i32_41 : i32 to vector<1x256xi32>
      %87 = arith.cmpi sge, %85, %86 : vector<1x256xi32>
      %c1_i32_42 = arith.constant 1 : i32
      %88 = vector.broadcast %c1_i32_42 : i32 to vector<1x256xi32>
      %89 = arith.addi %39, %88 : vector<1x256xi32>
      %c16_i32_43 = arith.constant 16 : i32
      %90 = vector.broadcast %c16_i32_43 : i32 to vector<1x256xi32>
      %91 = arith.cmpi slt, %89, %90 : vector<1x256xi32>
      %92 = arith.andi %87, %91 : vector<1x256xi1>
      %93 = arith.extui %92 : vector<1x256xi1> to vector<1x256xi32>
      %94 = arith.sitofp %93 : vector<1x256xi32> to vector<1x256xf32>
      %c2_i32 = arith.constant 2 : i32
      %95 = vector.broadcast %c2_i32 : i32 to vector<1x256xi32>
      %96 = arith.addi %39, %95 : vector<1x256xi32>
      %c0_i32_44 = arith.constant 0 : i32
      %97 = vector.broadcast %c0_i32_44 : i32 to vector<1x256xi32>
      %98 = arith.cmpi sge, %96, %97 : vector<1x256xi32>
      %c2_i32_45 = arith.constant 2 : i32
      %99 = vector.broadcast %c2_i32_45 : i32 to vector<1x256xi32>
      %100 = arith.addi %39, %99 : vector<1x256xi32>
      %c16_i32_46 = arith.constant 16 : i32
      %101 = vector.broadcast %c16_i32_46 : i32 to vector<1x256xi32>
      %102 = arith.cmpi slt, %100, %101 : vector<1x256xi32>
      %103 = arith.andi %98, %102 : vector<1x256xi1>
      %104 = arith.extui %103 : vector<1x256xi1> to vector<1x256xi32>
      %105 = arith.sitofp %104 : vector<1x256xi32> to vector<1x256xf32>
      %c3_i32 = arith.constant 3 : i32
      %106 = vector.broadcast %c3_i32 : i32 to vector<1x256xi32>
      %107 = arith.addi %39, %106 : vector<1x256xi32>
      %c0_i32_47 = arith.constant 0 : i32
      %108 = vector.broadcast %c0_i32_47 : i32 to vector<1x256xi32>
      %109 = arith.cmpi sge, %107, %108 : vector<1x256xi32>
      %c3_i32_48 = arith.constant 3 : i32
      %110 = vector.broadcast %c3_i32_48 : i32 to vector<1x256xi32>
      %111 = arith.addi %39, %110 : vector<1x256xi32>
      %c16_i32_49 = arith.constant 16 : i32
      %112 = vector.broadcast %c16_i32_49 : i32 to vector<1x256xi32>
      %113 = arith.cmpi slt, %111, %112 : vector<1x256xi32>
      %114 = arith.andi %109, %113 : vector<1x256xi1>
      %115 = arith.extui %114 : vector<1x256xi1> to vector<1x256xi32>
      %116 = arith.sitofp %115 : vector<1x256xi32> to vector<1x256xf32>
      %cst_50 = arith.constant 0.000000e+00 : f32
      %117 = vector.broadcast %cst_50 : f32 to vector<1x256xf32>
      %c0_51 = arith.constant 0 : index
      %c0_52 = arith.constant 0 : index
      %c77 = arith.constant 77 : index
      %118 = vector.load %arg7[%c0_51, %c0_52, %c77] : memref<2x1x435xf32, #tpu.memory_space<vmem>>, vector<1x1x256xf32>
      %119 = vector.shape_cast %118 : vector<1x1x256xf32> to vector<1x256xf32>
      %c0_53 = arith.constant 0 : index
      %120 = memref.load %arg3[%c0_53] : memref<98xf32, #tpu.memory_space<smem>>
      %121 = vector.broadcast %120 : f32 to vector<1x256xf32>
      %122 = arith.mulf %121, %50 : vector<1x256xf32>
      %123 = arith.mulf %122, %119 : vector<1x256xf32>
      %124 = arith.addf %117, %123 : vector<1x256xf32>
      %c0_54 = arith.constant 0 : index
      %c0_55 = arith.constant 0 : index
      %c78 = arith.constant 78 : index
      %125 = vector.load %arg7[%c0_54, %c0_55, %c78] : memref<2x1x435xf32, #tpu.memory_space<vmem>>, vector<1x1x256xf32>
      %126 = vector.shape_cast %125 : vector<1x1x256xf32> to vector<1x256xf32>
      %c1_56 = arith.constant 1 : index
      %127 = memref.load %arg3[%c1_56] : memref<98xf32, #tpu.memory_space<smem>>
      %128 = vector.broadcast %127 : f32 to vector<1x256xf32>
      %129 = arith.mulf %128, %61 : vector<1x256xf32>
      %130 = arith.mulf %129, %126 : vector<1x256xf32>
      %131 = arith.addf %124, %130 : vector<1x256xf32>
      %c0_57 = arith.constant 0 : index
      %c0_58 = arith.constant 0 : index
      %c79 = arith.constant 79 : index
      %132 = vector.load %arg7[%c0_57, %c0_58, %c79] : memref<2x1x435xf32, #tpu.memory_space<vmem>>, vector<1x1x256xf32>
      %133 = vector.shape_cast %132 : vector<1x1x256xf32> to vector<1x256xf32>
      %c2 = arith.constant 2 : index
      %134 = memref.load %arg3[%c2] : memref<98xf32, #tpu.memory_space<smem>>
      %135 = vector.broadcast %134 : f32 to vector<1x256xf32>
      %136 = arith.mulf %135, %72 : vector<1x256xf32>
      %137 = arith.mulf %136, %133 : vector<1x256xf32>
      %138 = arith.addf %131, %137 : vector<1x256xf32>
      %c0_59 = arith.constant 0 : index
      %c0_60 = arith.constant 0 : index
      %c80 = arith.constant 80 : index
      %139 = vector.load %arg7[%c0_59, %c0_60, %c80] : memref<2x1x435xf32, #tpu.memory_space<vmem>>, vector<1x1x256xf32>
      %140 = vector.shape_cast %139 : vector<1x1x256xf32> to vector<1x256xf32>
      %c3 = arith.constant 3 : index
      %141 = memref.load %arg3[%c3] : memref<98xf32, #tpu.memory_space<smem>>
      %142 = vector.broadcast %141 : f32 to vector<1x256xf32>
      %143 = arith.mulf %142, %83 : vector<1x256xf32>
      %144 = arith.mulf %143, %140 : vector<1x256xf32>
      %145 = arith.addf %138, %144 : vector<1x256xf32>
      %c0_61 = arith.constant 0 : index
      %c0_62 = arith.constant 0 : index
      %c81 = arith.constant 81 : index
      %146 = vector.load %arg7[%c0_61, %c0_62, %c81] : memref<2x1x435xf32, #tpu.memory_space<vmem>>, vector<1x1x256xf32>
      %147 = vector.shape_cast %146 : vector<1x1x256xf32> to vector<1x256xf32>
      %c4 = arith.constant 4 : index
      %148 = memref.load %arg3[%c4] : memref<98xf32, #tpu.memory_space<smem>>
      %149 = vector.broadcast %148 : f32 to vector<1x256xf32>
      %150 = arith.mulf %149, %94 : vector<1x256xf32>
      %151 = arith.mulf %150, %147 : vector<1x256xf32>
      %152 = arith.addf %145, %151 : vector<1x256xf32>
      %c0_63 = arith.constant 0 : index
      %c0_64 = arith.constant 0 : index
      %c82 = arith.constant 82 : index
      %153 = vector.load %arg7[%c0_63, %c0_64, %c82] : memref<2x1x435xf32, #tpu.memory_space<vmem>>, vector<1x1x256xf32>
      %154 = vector.shape_cast %153 : vector<1x1x256xf32> to vector<1x256xf32>
      %c5 = arith.constant 5 : index
      %155 = memref.load %arg3[%c5] : memref<98xf32, #tpu.memory_space<smem>>
      %156 = vector.broadcast %155 : f32 to vector<1x256xf32>
      %157 = arith.mulf %156, %105 : vector<1x256xf32>
      %158 = arith.mulf %157, %154 : vector<1x256xf32>
      %159 = arith.addf %152, %158 : vector<1x256xf32>
      %c0_65 = arith.constant 0 : index
      %c0_66 = arith.constant 0 : index
      %c83 = arith.constant 83 : index
      %160 = vector.load %arg7[%c0_65, %c0_66, %c83] : memref<2x1x435xf32, #tpu.memory_space<vmem>>, vector<1x1x256xf32>
      %161 = vector.shape_cast %160 : vector<1x1x256xf32> to vector<1x256xf32>
      %c6 = arith.constant 6 : index
      %162 = memref.load %arg3[%c6] : memref<98xf32, #tpu.memory_space<smem>>
      %163 = vector.broadcast %162 : f32 to vector<1x256xf32>
      %164 = arith.mulf %163, %116 : vector<1x256xf32>
      %165 = arith.mulf %164, %161 : vector<1x256xf32>
      %166 = arith.addf %159, %165 : vector<1x256xf32>
      %c0_67 = arith.constant 0 : index
      %c0_68 = arith.constant 0 : index
      %c93 = arith.constant 93 : index
      %167 = vector.load %arg7[%c0_67, %c0_68, %c93] : memref<2x1x435xf32, #tpu.memory_space<vmem>>, vector<1x1x256xf32>
      %168 = vector.shape_cast %167 : vector<1x1x256xf32> to vector<1x256xf32>
      %c7 = arith.constant 7 : index
      %169 = memref.load %arg3[%c7] : memref<98xf32, #tpu.memory_space<smem>>
      %170 = vector.broadcast %169 : f32 to vector<1x256xf32>
      %171 = arith.mulf %170, %50 : vector<1x256xf32>
      %172 = arith.mulf %171, %168 : vector<1x256xf32>
      %173 = arith.addf %166, %172 : vector<1x256xf32>
      %c0_69 = arith.constant 0 : index
      %c0_70 = arith.constant 0 : index
      %c94 = arith.constant 94 : index
      %174 = vector.load %arg7[%c0_69, %c0_70, %c94] : memref<2x1x435xf32, #tpu.memory_space<vmem>>, vector<1x1x256xf32>
      %175 = vector.shape_cast %174 : vector<1x1x256xf32> to vector<1x256xf32>
      %c8 = arith.constant 8 : index
      %176 = memref.load %arg3[%c8] : memref<98xf32, #tpu.memory_space<smem>>
      %177 = vector.broadcast %176 : f32 to vector<1x256xf32>
      %178 = arith.mulf %177, %61 : vector<1x256xf32>
      %179 = arith.mulf %178, %175 : vector<1x256xf32>
      %180 = arith.addf %173, %179 : vector<1x256xf32>
      %c0_71 = arith.constant 0 : index
      %c0_72 = arith.constant 0 : index
      %c95 = arith.constant 95 : index
      %181 = vector.load %arg7[%c0_71, %c0_72, %c95] : memref<2x1x435xf32, #tpu.memory_space<vmem>>, vector<1x1x256xf32>
      %182 = vector.shape_cast %181 : vector<1x1x256xf32> to vector<1x256xf32>
      %c9 = arith.constant 9 : index
      %183 = memref.load %arg3[%c9] : memref<98xf32, #tpu.memory_space<smem>>
      %184 = vector.broadcast %183 : f32 to vector<1x256xf32>
      %185 = arith.mulf %184, %72 : vector<1x256xf32>
      %186 = arith.mulf %185, %182 : vector<1x256xf32>
      %187 = arith.addf %180, %186 : vector<1x256xf32>
      %c0_73 = arith.constant 0 : index
      %c0_74 = arith.constant 0 : index
      %c96 = arith.constant 96 : index
      %188 = vector.load %arg7[%c0_73, %c0_74, %c96] : memref<2x1x435xf32, #tpu.memory_space<vmem>>, vector<1x1x256xf32>
      %189 = vector.shape_cast %188 : vector<1x1x256xf32> to vector<1x256xf32>
      %c10 = arith.constant 10 : index
      %190 = memref.load %arg3[%c10] : memref<98xf32, #tpu.memory_space<smem>>
      %191 = vector.broadcast %190 : f32 to vector<1x256xf32>
      %192 = arith.mulf %191, %83 : vector<1x256xf32>
      %193 = arith.mulf %192, %189 : vector<1x256xf32>
      %194 = arith.addf %187, %193 : vector<1x256xf32>
      %c0_75 = arith.constant 0 : index
      %c0_76 = arith.constant 0 : index
      %c97 = arith.constant 97 : index
      %195 = vector.load %arg7[%c0_75, %c0_76, %c97] : memref<2x1x435xf32, #tpu.memory_space<vmem>>, vector<1x1x256xf32>
      %196 = vector.shape_cast %195 : vector<1x1x256xf32> to vector<1x256xf32>
      %c11 = arith.constant 11 : index
      %197 = memref.load %arg3[%c11] : memref<98xf32, #tpu.memory_space<smem>>
      %198 = vector.broadcast %197 : f32 to vector<1x256xf32>
      %199 = arith.mulf %198, %94 : vector<1x256xf32>
      %200 = arith.mulf %199, %196 : vector<1x256xf32>
      %201 = arith.addf %194, %200 : vector<1x256xf32>
      %c0_77 = arith.constant 0 : index
      %c0_78 = arith.constant 0 : index
      %c98 = arith.constant 98 : index
      %202 = vector.load %arg7[%c0_77, %c0_78, %c98] : memref<2x1x435xf32, #tpu.memory_space<vmem>>, vector<1x1x256xf32>
      %203 = vector.shape_cast %202 : vector<1x1x256xf32> to vector<1x256xf32>
      %c12 = arith.constant 12 : index
      %204 = memref.load %arg3[%c12] : memref<98xf32, #tpu.memory_space<smem>>
      %205 = vector.broadcast %204 : f32 to vector<1x256xf32>
      %206 = arith.mulf %205, %105 : vector<1x256xf32>
      %207 = arith.mulf %206, %203 : vector<1x256xf32>
      %208 = arith.addf %201, %207 : vector<1x256xf32>
      %c0_79 = arith.constant 0 : index
      %c0_80 = arith.constant 0 : index
      %c99 = arith.constant 99 : index
      %209 = vector.load %arg7[%c0_79, %c0_80, %c99] : memref<2x1x435xf32, #tpu.memory_space<vmem>>, vector<1x1x256xf32>
      %210 = vector.shape_cast %209 : vector<1x1x256xf32> to vector<1x256xf32>
      %c13 = arith.constant 13 : index
      %211 = memref.load %arg3[%c13] : memref<98xf32, #tpu.memory_space<smem>>
      %212 = vector.broadcast %211 : f32 to vector<1x256xf32>
      %213 = arith.mulf %212, %116 : vector<1x256xf32>
      %214 = arith.mulf %213, %210 : vector<1x256xf32>
      %215 = arith.addf %208, %214 : vector<1x256xf32>
      %c0_81 = arith.constant 0 : index
      %c0_82 = arith.constant 0 : index
      %c109 = arith.constant 109 : index
      %216 = vector.load %arg7[%c0_81, %c0_82, %c109] : memref<2x1x435xf32, #tpu.memory_space<vmem>>, vector<1x1x256xf32>
      %217 = vector.shape_cast %216 : vector<1x1x256xf32> to vector<1x256xf32>
      %c14 = arith.constant 14 : index
      %218 = memref.load %arg3[%c14] : memref<98xf32, #tpu.memory_space<smem>>
      %219 = vector.broadcast %218 : f32 to vector<1x256xf32>
      %220 = arith.mulf %219, %50 : vector<1x256xf32>
      %221 = arith.mulf %220, %217 : vector<1x256xf32>
      %222 = arith.addf %215, %221 : vector<1x256xf32>
      %c0_83 = arith.constant 0 : index
      %c0_84 = arith.constant 0 : index
      %c110 = arith.constant 110 : index
      %223 = vector.load %arg7[%c0_83, %c0_84, %c110] : memref<2x1x435xf32, #tpu.memory_space<vmem>>, vector<1x1x256xf32>
      %224 = vector.shape_cast %223 : vector<1x1x256xf32> to vector<1x256xf32>
      %c15 = arith.constant 15 : index
      %225 = memref.load %arg3[%c15] : memref<98xf32, #tpu.memory_space<smem>>
      %226 = vector.broadcast %225 : f32 to vector<1x256xf32>
      %227 = arith.mulf %226, %61 : vector<1x256xf32>
      %228 = arith.mulf %227, %224 : vector<1x256xf32>
      %229 = arith.addf %222, %228 : vector<1x256xf32>
      %c0_85 = arith.constant 0 : index
      %c0_86 = arith.constant 0 : index
      %c111 = arith.constant 111 : index
      %230 = vector.load %arg7[%c0_85, %c0_86, %c111] : memref<2x1x435xf32, #tpu.memory_space<vmem>>, vector<1x1x256xf32>
      %231 = vector.shape_cast %230 : vector<1x1x256xf32> to vector<1x256xf32>
      %c16 = arith.constant 16 : index
      %232 = memref.load %arg3[%c16] : memref<98xf32, #tpu.memory_space<smem>>
      %233 = vector.broadcast %232 : f32 to vector<1x256xf32>
      %234 = arith.mulf %233, %72 : vector<1x256xf32>
      %235 = arith.mulf %234, %231 : vector<1x256xf32>
      %236 = arith.addf %229, %235 : vector<1x256xf32>
      %c0_87 = arith.constant 0 : index
      %c0_88 = arith.constant 0 : index
      %c112 = arith.constant 112 : index
      %237 = vector.load %arg7[%c0_87, %c0_88, %c112] : memref<2x1x435xf32, #tpu.memory_space<vmem>>, vector<1x1x256xf32>
      %238 = vector.shape_cast %237 : vector<1x1x256xf32> to vector<1x256xf32>
      %c17 = arith.constant 17 : index
      %239 = memref.load %arg3[%c17] : memref<98xf32, #tpu.memory_space<smem>>
      %240 = vector.broadcast %239 : f32 to vector<1x256xf32>
      %241 = arith.mulf %240, %83 : vector<1x256xf32>
      %242 = arith.mulf %241, %238 : vector<1x256xf32>
      %243 = arith.addf %236, %242 : vector<1x256xf32>
      %c0_89 = arith.constant 0 : index
      %c0_90 = arith.constant 0 : index
      %c113 = arith.constant 113 : index
      %244 = vector.load %arg7[%c0_89, %c0_90, %c113] : memref<2x1x435xf32, #tpu.memory_space<vmem>>, vector<1x1x256xf32>
      %245 = vector.shape_cast %244 : vector<1x1x256xf32> to vector<1x256xf32>
      %c18 = arith.constant 18 : index
      %246 = memref.load %arg3[%c18] : memref<98xf32, #tpu.memory_space<smem>>
      %247 = vector.broadcast %246 : f32 to vector<1x256xf32>
      %248 = arith.mulf %247, %94 : vector<1x256xf32>
      %249 = arith.mulf %248, %245 : vector<1x256xf32>
      %250 = arith.addf %243, %249 : vector<1x256xf32>
      %c0_91 = arith.constant 0 : index
      %c0_92 = arith.constant 0 : index
      %c114 = arith.constant 114 : index
      %251 = vector.load %arg7[%c0_91, %c0_92, %c114] : memref<2x1x435xf32, #tpu.memory_space<vmem>>, vector<1x1x256xf32>
      %252 = vector.shape_cast %251 : vector<1x1x256xf32> to vector<1x256xf32>
      %c19 = arith.constant 19 : index
      %253 = memref.load %arg3[%c19] : memref<98xf32, #tpu.memory_space<smem>>
      %254 = vector.broadcast %253 : f32 to vector<1x256xf32>
      %255 = arith.mulf %254, %105 : vector<1x256xf32>
      %256 = arith.mulf %255, %252 : vector<1x256xf32>
      %257 = arith.addf %250, %256 : vector<1x256xf32>
      %c0_93 = arith.constant 0 : index
      %c0_94 = arith.constant 0 : index
      %c115 = arith.constant 115 : index
      %258 = vector.load %arg7[%c0_93, %c0_94, %c115] : memref<2x1x435xf32, #tpu.memory_space<vmem>>, vector<1x1x256xf32>
      %259 = vector.shape_cast %258 : vector<1x1x256xf32> to vector<1x256xf32>
      %c20 = arith.constant 20 : index
      %260 = memref.load %arg3[%c20] : memref<98xf32, #tpu.memory_space<smem>>
      %261 = vector.broadcast %260 : f32 to vector<1x256xf32>
      %262 = arith.mulf %261, %116 : vector<1x256xf32>
      %263 = arith.mulf %262, %259 : vector<1x256xf32>
      %264 = arith.addf %257, %263 : vector<1x256xf32>
      %c0_95 = arith.constant 0 : index
      %c0_96 = arith.constant 0 : index
      %c125 = arith.constant 125 : index
      %265 = vector.load %arg7[%c0_95, %c0_96, %c125] : memref<2x1x435xf32, #tpu.memory_space<vmem>>, vector<1x1x256xf32>
      %266 = vector.shape_cast %265 : vector<1x1x256xf32> to vector<1x256xf32>
      %c21 = arith.constant 21 : index
      %267 = memref.load %arg3[%c21] : memref<98xf32, #tpu.memory_space<smem>>
      %268 = vector.broadcast %267 : f32 to vector<1x256xf32>
      %269 = arith.mulf %268, %50 : vector<1x256xf32>
      %270 = arith.mulf %269, %266 : vector<1x256xf32>
      %271 = arith.addf %264, %270 : vector<1x256xf32>
      %c0_97 = arith.constant 0 : index
      %c0_98 = arith.constant 0 : index
      %c126 = arith.constant 126 : index
      %272 = vector.load %arg7[%c0_97, %c0_98, %c126] : memref<2x1x435xf32, #tpu.memory_space<vmem>>, vector<1x1x256xf32>
      %273 = vector.shape_cast %272 : vector<1x1x256xf32> to vector<1x256xf32>
      %c22 = arith.constant 22 : index
      %274 = memref.load %arg3[%c22] : memref<98xf32, #tpu.memory_space<smem>>
      %275 = vector.broadcast %274 : f32 to vector<1x256xf32>
      %276 = arith.mulf %275, %61 : vector<1x256xf32>
      %277 = arith.mulf %276, %273 : vector<1x256xf32>
      %278 = arith.addf %271, %277 : vector<1x256xf32>
      %c0_99 = arith.constant 0 : index
      %c0_100 = arith.constant 0 : index
      %c127 = arith.constant 127 : index
      %279 = vector.load %arg7[%c0_99, %c0_100, %c127] : memref<2x1x435xf32, #tpu.memory_space<vmem>>, vector<1x1x256xf32>
      %280 = vector.shape_cast %279 : vector<1x1x256xf32> to vector<1x256xf32>
      %c23 = arith.constant 23 : index
      %281 = memref.load %arg3[%c23] : memref<98xf32, #tpu.memory_space<smem>>
      %282 = vector.broadcast %281 : f32 to vector<1x256xf32>
      %283 = arith.mulf %282, %72 : vector<1x256xf32>
      %284 = arith.mulf %283, %280 : vector<1x256xf32>
      %285 = arith.addf %278, %284 : vector<1x256xf32>
      %c0_101 = arith.constant 0 : index
      %c0_102 = arith.constant 0 : index
      %c128_103 = arith.constant 128 : index
      %286 = vector.load %arg7[%c0_101, %c0_102, %c128_103] : memref<2x1x435xf32, #tpu.memory_space<vmem>>, vector<1x1x256xf32>
      %287 = vector.shape_cast %286 : vector<1x1x256xf32> to vector<1x256xf32>
      %c24 = arith.constant 24 : index
      %288 = memref.load %arg3[%c24] : memref<98xf32, #tpu.memory_space<smem>>
      %289 = vector.broadcast %288 : f32 to vector<1x256xf32>
      %290 = arith.mulf %289, %83 : vector<1x256xf32>
      %291 = arith.mulf %290, %287 : vector<1x256xf32>
      %292 = arith.addf %285, %291 : vector<1x256xf32>
      %c0_104 = arith.constant 0 : index
      %c0_105 = arith.constant 0 : index
      %c129 = arith.constant 129 : index
      %293 = vector.load %arg7[%c0_104, %c0_105, %c129] : memref<2x1x435xf32, #tpu.memory_space<vmem>>, vector<1x1x256xf32>
      %294 = vector.shape_cast %293 : vector<1x1x256xf32> to vector<1x256xf32>
      %c25 = arith.constant 25 : index
      %295 = memref.load %arg3[%c25] : memref<98xf32, #tpu.memory_space<smem>>
      %296 = vector.broadcast %295 : f32 to vector<1x256xf32>
      %297 = arith.mulf %296, %94 : vector<1x256xf32>
      %298 = arith.mulf %297, %294 : vector<1x256xf32>
      %299 = arith.addf %292, %298 : vector<1x256xf32>
      %c0_106 = arith.constant 0 : index
      %c0_107 = arith.constant 0 : index
      %c130 = arith.constant 130 : index
      %300 = vector.load %arg7[%c0_106, %c0_107, %c130] : memref<2x1x435xf32, #tpu.memory_space<vmem>>, vector<1x1x256xf32>
      %301 = vector.shape_cast %300 : vector<1x1x256xf32> to vector<1x256xf32>
      %c26 = arith.constant 26 : index
      %302 = memref.load %arg3[%c26] : memref<98xf32, #tpu.memory_space<smem>>
      %303 = vector.broadcast %302 : f32 to vector<1x256xf32>
      %304 = arith.mulf %303, %105 : vector<1x256xf32>
      %305 = arith.mulf %304, %301 : vector<1x256xf32>
      %306 = arith.addf %299, %305 : vector<1x256xf32>
      %c0_108 = arith.constant 0 : index
      %c0_109 = arith.constant 0 : index
      %c131 = arith.constant 131 : index
      %307 = vector.load %arg7[%c0_108, %c0_109, %c131] : memref<2x1x435xf32, #tpu.memory_space<vmem>>, vector<1x1x256xf32>
      %308 = vector.shape_cast %307 : vector<1x1x256xf32> to vector<1x256xf32>
      %c27 = arith.constant 27 : index
      %309 = memref.load %arg3[%c27] : memref<98xf32, #tpu.memory_space<smem>>
      %310 = vector.broadcast %309 : f32 to vector<1x256xf32>
      %311 = arith.mulf %310, %116 : vector<1x256xf32>
      %312 = arith.mulf %311, %308 : vector<1x256xf32>
      %313 = arith.addf %306, %312 : vector<1x256xf32>
      %c0_110 = arith.constant 0 : index
      %c0_111 = arith.constant 0 : index
      %c141 = arith.constant 141 : index
      %314 = vector.load %arg7[%c0_110, %c0_111, %c141] : memref<2x1x435xf32, #tpu.memory_space<vmem>>, vector<1x1x256xf32>
      %315 = vector.shape_cast %314 : vector<1x1x256xf32> to vector<1x256xf32>
      %c28 = arith.constant 28 : index
      %316 = memref.load %arg3[%c28] : memref<98xf32, #tpu.memory_space<smem>>
      %317 = vector.broadcast %316 : f32 to vector<1x256xf32>
      %318 = arith.mulf %317, %50 : vector<1x256xf32>
      %319 = arith.mulf %318, %315 : vector<1x256xf32>
      %320 = arith.addf %313, %319 : vector<1x256xf32>
      %c0_112 = arith.constant 0 : index
      %c0_113 = arith.constant 0 : index
      %c142 = arith.constant 142 : index
      %321 = vector.load %arg7[%c0_112, %c0_113, %c142] : memref<2x1x435xf32, #tpu.memory_space<vmem>>, vector<1x1x256xf32>
      %322 = vector.shape_cast %321 : vector<1x1x256xf32> to vector<1x256xf32>
      %c29 = arith.constant 29 : index
      %323 = memref.load %arg3[%c29] : memref<98xf32, #tpu.memory_space<smem>>
      %324 = vector.broadcast %323 : f32 to vector<1x256xf32>
      %325 = arith.mulf %324, %61 : vector<1x256xf32>
      %326 = arith.mulf %325, %322 : vector<1x256xf32>
      %327 = arith.addf %320, %326 : vector<1x256xf32>
      %c0_114 = arith.constant 0 : index
      %c0_115 = arith.constant 0 : index
      %c143 = arith.constant 143 : index
      %328 = vector.load %arg7[%c0_114, %c0_115, %c143] : memref<2x1x435xf32, #tpu.memory_space<vmem>>, vector<1x1x256xf32>
      %329 = vector.shape_cast %328 : vector<1x1x256xf32> to vector<1x256xf32>
      %c30 = arith.constant 30 : index
      %330 = memref.load %arg3[%c30] : memref<98xf32, #tpu.memory_space<smem>>
      %331 = vector.broadcast %330 : f32 to vector<1x256xf32>
      %332 = arith.mulf %331, %72 : vector<1x256xf32>
      %333 = arith.mulf %332, %329 : vector<1x256xf32>
      %334 = arith.addf %327, %333 : vector<1x256xf32>
      %c0_116 = arith.constant 0 : index
      %c0_117 = arith.constant 0 : index
      %c144 = arith.constant 144 : index
      %335 = vector.load %arg7[%c0_116, %c0_117, %c144] : memref<2x1x435xf32, #tpu.memory_space<vmem>>, vector<1x1x256xf32>
      %336 = vector.shape_cast %335 : vector<1x1x256xf32> to vector<1x256xf32>
      %c31 = arith.constant 31 : index
      %337 = memref.load %arg3[%c31] : memref<98xf32, #tpu.memory_space<smem>>
      %338 = vector.broadcast %337 : f32 to vector<1x256xf32>
      %339 = arith.mulf %338, %83 : vector<1x256xf32>
      %340 = arith.mulf %339, %336 : vector<1x256xf32>
      %341 = arith.addf %334, %340 : vector<1x256xf32>
      %c0_118 = arith.constant 0 : index
      %c0_119 = arith.constant 0 : index
      %c145 = arith.constant 145 : index
      %342 = vector.load %arg7[%c0_118, %c0_119, %c145] : memref<2x1x435xf32, #tpu.memory_space<vmem>>, vector<1x1x256xf32>
      %343 = vector.shape_cast %342 : vector<1x1x256xf32> to vector<1x256xf32>
      %c32 = arith.constant 32 : index
      %344 = memref.load %arg3[%c32] : memref<98xf32, #tpu.memory_space<smem>>
      %345 = vector.broadcast %344 : f32 to vector<1x256xf32>
      %346 = arith.mulf %345, %94 : vector<1x256xf32>
      %347 = arith.mulf %346, %343 : vector<1x256xf32>
      %348 = arith.addf %341, %347 : vector<1x256xf32>
      %c0_120 = arith.constant 0 : index
      %c0_121 = arith.constant 0 : index
      %c146 = arith.constant 146 : index
      %349 = vector.load %arg7[%c0_120, %c0_121, %c146] : memref<2x1x435xf32, #tpu.memory_space<vmem>>, vector<1x1x256xf32>
      %350 = vector.shape_cast %349 : vector<1x1x256xf32> to vector<1x256xf32>
      %c33 = arith.constant 33 : index
      %351 = memref.load %arg3[%c33] : memref<98xf32, #tpu.memory_space<smem>>
      %352 = vector.broadcast %351 : f32 to vector<1x256xf32>
      %353 = arith.mulf %352, %105 : vector<1x256xf32>
      %354 = arith.mulf %353, %350 : vector<1x256xf32>
      %355 = arith.addf %348, %354 : vector<1x256xf32>
      %c0_122 = arith.constant 0 : index
      %c0_123 = arith.constant 0 : index
      %c147 = arith.constant 147 : index
      %356 = vector.load %arg7[%c0_122, %c0_123, %c147] : memref<2x1x435xf32, #tpu.memory_space<vmem>>, vector<1x1x256xf32>
      %357 = vector.shape_cast %356 : vector<1x1x256xf32> to vector<1x256xf32>
      %c34 = arith.constant 34 : index
      %358 = memref.load %arg3[%c34] : memref<98xf32, #tpu.memory_space<smem>>
      %359 = vector.broadcast %358 : f32 to vector<1x256xf32>
      %360 = arith.mulf %359, %116 : vector<1x256xf32>
      %361 = arith.mulf %360, %357 : vector<1x256xf32>
      %362 = arith.addf %355, %361 : vector<1x256xf32>
      %c0_124 = arith.constant 0 : index
      %c0_125 = arith.constant 0 : index
      %c157 = arith.constant 157 : index
      %363 = vector.load %arg7[%c0_124, %c0_125, %c157] : memref<2x1x435xf32, #tpu.memory_space<vmem>>, vector<1x1x256xf32>
      %364 = vector.shape_cast %363 : vector<1x1x256xf32> to vector<1x256xf32>
      %c35 = arith.constant 35 : index
      %365 = memref.load %arg3[%c35] : memref<98xf32, #tpu.memory_space<smem>>
      %366 = vector.broadcast %365 : f32 to vector<1x256xf32>
      %367 = arith.mulf %366, %50 : vector<1x256xf32>
      %368 = arith.mulf %367, %364 : vector<1x256xf32>
      %369 = arith.addf %362, %368 : vector<1x256xf32>
      %c0_126 = arith.constant 0 : index
      %c0_127 = arith.constant 0 : index
      %c158 = arith.constant 158 : index
      %370 = vector.load %arg7[%c0_126, %c0_127, %c158] : memref<2x1x435xf32, #tpu.memory_space<vmem>>, vector<1x1x256xf32>
      %371 = vector.shape_cast %370 : vector<1x1x256xf32> to vector<1x256xf32>
      %c36 = arith.constant 36 : index
      %372 = memref.load %arg3[%c36] : memref<98xf32, #tpu.memory_space<smem>>
      %373 = vector.broadcast %372 : f32 to vector<1x256xf32>
      %374 = arith.mulf %373, %61 : vector<1x256xf32>
      %375 = arith.mulf %374, %371 : vector<1x256xf32>
      %376 = arith.addf %369, %375 : vector<1x256xf32>
      %c0_128 = arith.constant 0 : index
      %c0_129 = arith.constant 0 : index
      %c159 = arith.constant 159 : index
      %377 = vector.load %arg7[%c0_128, %c0_129, %c159] : memref<2x1x435xf32, #tpu.memory_space<vmem>>, vector<1x1x256xf32>
      %378 = vector.shape_cast %377 : vector<1x1x256xf32> to vector<1x256xf32>
      %c37 = arith.constant 37 : index
      %379 = memref.load %arg3[%c37] : memref<98xf32, #tpu.memory_space<smem>>
      %380 = vector.broadcast %379 : f32 to vector<1x256xf32>
      %381 = arith.mulf %380, %72 : vector<1x256xf32>
      %382 = arith.mulf %381, %378 : vector<1x256xf32>
      %383 = arith.addf %376, %382 : vector<1x256xf32>
      %c0_130 = arith.constant 0 : index
      %c0_131 = arith.constant 0 : index
      %c160 = arith.constant 160 : index
      %384 = vector.load %arg7[%c0_130, %c0_131, %c160] : memref<2x1x435xf32, #tpu.memory_space<vmem>>, vector<1x1x256xf32>
      %385 = vector.shape_cast %384 : vector<1x1x256xf32> to vector<1x256xf32>
      %c38 = arith.constant 38 : index
      %386 = memref.load %arg3[%c38] : memref<98xf32, #tpu.memory_space<smem>>
      %387 = vector.broadcast %386 : f32 to vector<1x256xf32>
      %388 = arith.mulf %387, %83 : vector<1x256xf32>
      %389 = arith.mulf %388, %385 : vector<1x256xf32>
      %390 = arith.addf %383, %389 : vector<1x256xf32>
      %c0_132 = arith.constant 0 : index
      %c0_133 = arith.constant 0 : index
      %c161 = arith.constant 161 : index
      %391 = vector.load %arg7[%c0_132, %c0_133, %c161] : memref<2x1x435xf32, #tpu.memory_space<vmem>>, vector<1x1x256xf32>
      %392 = vector.shape_cast %391 : vector<1x1x256xf32> to vector<1x256xf32>
      %c39 = arith.constant 39 : index
      %393 = memref.load %arg3[%c39] : memref<98xf32, #tpu.memory_space<smem>>
      %394 = vector.broadcast %393 : f32 to vector<1x256xf32>
      %395 = arith.mulf %394, %94 : vector<1x256xf32>
      %396 = arith.mulf %395, %392 : vector<1x256xf32>
      %397 = arith.addf %390, %396 : vector<1x256xf32>
      %c0_134 = arith.constant 0 : index
      %c0_135 = arith.constant 0 : index
      %c162 = arith.constant 162 : index
      %398 = vector.load %arg7[%c0_134, %c0_135, %c162] : memref<2x1x435xf32, #tpu.memory_space<vmem>>, vector<1x1x256xf32>
      %399 = vector.shape_cast %398 : vector<1x1x256xf32> to vector<1x256xf32>
      %c40 = arith.constant 40 : index
      %400 = memref.load %arg3[%c40] : memref<98xf32, #tpu.memory_space<smem>>
      %401 = vector.broadcast %400 : f32 to vector<1x256xf32>
      %402 = arith.mulf %401, %105 : vector<1x256xf32>
      %403 = arith.mulf %402, %399 : vector<1x256xf32>
      %404 = arith.addf %397, %403 : vector<1x256xf32>
      %c0_136 = arith.constant 0 : index
      %c0_137 = arith.constant 0 : index
      %c163 = arith.constant 163 : index
      %405 = vector.load %arg7[%c0_136, %c0_137, %c163] : memref<2x1x435xf32, #tpu.memory_space<vmem>>, vector<1x1x256xf32>
      %406 = vector.shape_cast %405 : vector<1x1x256xf32> to vector<1x256xf32>
      %c41 = arith.constant 41 : index
      %407 = memref.load %arg3[%c41] : memref<98xf32, #tpu.memory_space<smem>>
      %408 = vector.broadcast %407 : f32 to vector<1x256xf32>
      %409 = arith.mulf %408, %116 : vector<1x256xf32>
      %410 = arith.mulf %409, %406 : vector<1x256xf32>
      %411 = arith.addf %404, %410 : vector<1x256xf32>
      %c0_138 = arith.constant 0 : index
      %c0_139 = arith.constant 0 : index
      %c173 = arith.constant 173 : index
      %412 = vector.load %arg7[%c0_138, %c0_139, %c173] : memref<2x1x435xf32, #tpu.memory_space<vmem>>, vector<1x1x256xf32>
      %413 = vector.shape_cast %412 : vector<1x1x256xf32> to vector<1x256xf32>
      %c42 = arith.constant 42 : index
      %414 = memref.load %arg3[%c42] : memref<98xf32, #tpu.memory_space<smem>>
      %415 = vector.broadcast %414 : f32 to vector<1x256xf32>
      %416 = arith.mulf %415, %50 : vector<1x256xf32>
      %417 = arith.mulf %416, %413 : vector<1x256xf32>
      %418 = arith.addf %411, %417 : vector<1x256xf32>
      %c0_140 = arith.constant 0 : index
      %c0_141 = arith.constant 0 : index
      %c174 = arith.constant 174 : index
      %419 = vector.load %arg7[%c0_140, %c0_141, %c174] : memref<2x1x435xf32, #tpu.memory_space<vmem>>, vector<1x1x256xf32>
      %420 = vector.shape_cast %419 : vector<1x1x256xf32> to vector<1x256xf32>
      %c43 = arith.constant 43 : index
      %421 = memref.load %arg3[%c43] : memref<98xf32, #tpu.memory_space<smem>>
      %422 = vector.broadcast %421 : f32 to vector<1x256xf32>
      %423 = arith.mulf %422, %61 : vector<1x256xf32>
      %424 = arith.mulf %423, %420 : vector<1x256xf32>
      %425 = arith.addf %418, %424 : vector<1x256xf32>
      %c0_142 = arith.constant 0 : index
      %c0_143 = arith.constant 0 : index
      %c175 = arith.constant 175 : index
      %426 = vector.load %arg7[%c0_142, %c0_143, %c175] : memref<2x1x435xf32, #tpu.memory_space<vmem>>, vector<1x1x256xf32>
      %427 = vector.shape_cast %426 : vector<1x1x256xf32> to vector<1x256xf32>
      %c44 = arith.constant 44 : index
      %428 = memref.load %arg3[%c44] : memref<98xf32, #tpu.memory_space<smem>>
      %429 = vector.broadcast %428 : f32 to vector<1x256xf32>
      %430 = arith.mulf %429, %72 : vector<1x256xf32>
      %431 = arith.mulf %430, %427 : vector<1x256xf32>
      %432 = arith.addf %425, %431 : vector<1x256xf32>
      %c0_144 = arith.constant 0 : index
      %c0_145 = arith.constant 0 : index
      %c176 = arith.constant 176 : index
      %433 = vector.load %arg7[%c0_144, %c0_145, %c176] : memref<2x1x435xf32, #tpu.memory_space<vmem>>, vector<1x1x256xf32>
      %434 = vector.shape_cast %433 : vector<1x1x256xf32> to vector<1x256xf32>
      %c45 = arith.constant 45 : index
      %435 = memref.load %arg3[%c45] : memref<98xf32, #tpu.memory_space<smem>>
      %436 = vector.broadcast %435 : f32 to vector<1x256xf32>
      %437 = arith.mulf %436, %83 : vector<1x256xf32>
      %438 = arith.mulf %437, %434 : vector<1x256xf32>
      %439 = arith.addf %432, %438 : vector<1x256xf32>
      %c0_146 = arith.constant 0 : index
      %c0_147 = arith.constant 0 : index
      %c177 = arith.constant 177 : index
      %440 = vector.load %arg7[%c0_146, %c0_147, %c177] : memref<2x1x435xf32, #tpu.memory_space<vmem>>, vector<1x1x256xf32>
      %441 = vector.shape_cast %440 : vector<1x1x256xf32> to vector<1x256xf32>
      %c46 = arith.constant 46 : index
      %442 = memref.load %arg3[%c46] : memref<98xf32, #tpu.memory_space<smem>>
      %443 = vector.broadcast %442 : f32 to vector<1x256xf32>
      %444 = arith.mulf %443, %94 : vector<1x256xf32>
      %445 = arith.mulf %444, %441 : vector<1x256xf32>
      %446 = arith.addf %439, %445 : vector<1x256xf32>
      %c0_148 = arith.constant 0 : index
      %c0_149 = arith.constant 0 : index
      %c178 = arith.constant 178 : index
      %447 = vector.load %arg7[%c0_148, %c0_149, %c178] : memref<2x1x435xf32, #tpu.memory_space<vmem>>, vector<1x1x256xf32>
      %448 = vector.shape_cast %447 : vector<1x1x256xf32> to vector<1x256xf32>
      %c47 = arith.constant 47 : index
      %449 = memref.load %arg3[%c47] : memref<98xf32, #tpu.memory_space<smem>>
      %450 = vector.broadcast %449 : f32 to vector<1x256xf32>
      %451 = arith.mulf %450, %105 : vector<1x256xf32>
      %452 = arith.mulf %451, %448 : vector<1x256xf32>
      %453 = arith.addf %446, %452 : vector<1x256xf32>
      %c0_150 = arith.constant 0 : index
      %c0_151 = arith.constant 0 : index
      %c179 = arith.constant 179 : index
      %454 = vector.load %arg7[%c0_150, %c0_151, %c179] : memref<2x1x435xf32, #tpu.memory_space<vmem>>, vector<1x1x256xf32>
      %455 = vector.shape_cast %454 : vector<1x1x256xf32> to vector<1x256xf32>
      %c48 = arith.constant 48 : index
      %456 = memref.load %arg3[%c48] : memref<98xf32, #tpu.memory_space<smem>>
      %457 = vector.broadcast %456 : f32 to vector<1x256xf32>
      %458 = arith.mulf %457, %116 : vector<1x256xf32>
      %459 = arith.mulf %458, %455 : vector<1x256xf32>
      %460 = arith.addf %453, %459 : vector<1x256xf32>
      %c1_152 = arith.constant 1 : index
      %c0_153 = arith.constant 0 : index
      %c77_154 = arith.constant 77 : index
      %461 = vector.load %arg7[%c1_152, %c0_153, %c77_154] : memref<2x1x435xf32, #tpu.memory_space<vmem>>, vector<1x1x256xf32>
      %462 = vector.shape_cast %461 : vector<1x1x256xf32> to vector<1x256xf32>
      %c49 = arith.constant 49 : index
      %463 = memref.load %arg3[%c49] : memref<98xf32, #tpu.memory_space<smem>>
      %464 = vector.broadcast %463 : f32 to vector<1x256xf32>
      %465 = arith.mulf %464, %50 : vector<1x256xf32>
      %466 = arith.mulf %465, %462 : vector<1x256xf32>
      %467 = arith.addf %460, %466 : vector<1x256xf32>
      %c1_155 = arith.constant 1 : index
      %c0_156 = arith.constant 0 : index
      %c78_157 = arith.constant 78 : index
      %468 = vector.load %arg7[%c1_155, %c0_156, %c78_157] : memref<2x1x435xf32, #tpu.memory_space<vmem>>, vector<1x1x256xf32>
      %469 = vector.shape_cast %468 : vector<1x1x256xf32> to vector<1x256xf32>
      %c50 = arith.constant 50 : index
      %470 = memref.load %arg3[%c50] : memref<98xf32, #tpu.memory_space<smem>>
      %471 = vector.broadcast %470 : f32 to vector<1x256xf32>
      %472 = arith.mulf %471, %61 : vector<1x256xf32>
      %473 = arith.mulf %472, %469 : vector<1x256xf32>
      %474 = arith.addf %467, %473 : vector<1x256xf32>
      %c1_158 = arith.constant 1 : index
      %c0_159 = arith.constant 0 : index
      %c79_160 = arith.constant 79 : index
      %475 = vector.load %arg7[%c1_158, %c0_159, %c79_160] : memref<2x1x435xf32, #tpu.memory_space<vmem>>, vector<1x1x256xf32>
      %476 = vector.shape_cast %475 : vector<1x1x256xf32> to vector<1x256xf32>
      %c51 = arith.constant 51 : index
      %477 = memref.load %arg3[%c51] : memref<98xf32, #tpu.memory_space<smem>>
      %478 = vector.broadcast %477 : f32 to vector<1x256xf32>
      %479 = arith.mulf %478, %72 : vector<1x256xf32>
      %480 = arith.mulf %479, %476 : vector<1x256xf32>
      %481 = arith.addf %474, %480 : vector<1x256xf32>
      %c1_161 = arith.constant 1 : index
      %c0_162 = arith.constant 0 : index
      %c80_163 = arith.constant 80 : index
      %482 = vector.load %arg7[%c1_161, %c0_162, %c80_163] : memref<2x1x435xf32, #tpu.memory_space<vmem>>, vector<1x1x256xf32>
      %483 = vector.shape_cast %482 : vector<1x1x256xf32> to vector<1x256xf32>
      %c52 = arith.constant 52 : index
      %484 = memref.load %arg3[%c52] : memref<98xf32, #tpu.memory_space<smem>>
      %485 = vector.broadcast %484 : f32 to vector<1x256xf32>
      %486 = arith.mulf %485, %83 : vector<1x256xf32>
      %487 = arith.mulf %486, %483 : vector<1x256xf32>
      %488 = arith.addf %481, %487 : vector<1x256xf32>
      %c1_164 = arith.constant 1 : index
      %c0_165 = arith.constant 0 : index
      %c81_166 = arith.constant 81 : index
      %489 = vector.load %arg7[%c1_164, %c0_165, %c81_166] : memref<2x1x435xf32, #tpu.memory_space<vmem>>, vector<1x1x256xf32>
      %490 = vector.shape_cast %489 : vector<1x1x256xf32> to vector<1x256xf32>
      %c53 = arith.constant 53 : index
      %491 = memref.load %arg3[%c53] : memref<98xf32, #tpu.memory_space<smem>>
      %492 = vector.broadcast %491 : f32 to vector<1x256xf32>
      %493 = arith.mulf %492, %94 : vector<1x256xf32>
      %494 = arith.mulf %493, %490 : vector<1x256xf32>
      %495 = arith.addf %488, %494 : vector<1x256xf32>
      %c1_167 = arith.constant 1 : index
      %c0_168 = arith.constant 0 : index
      %c82_169 = arith.constant 82 : index
      %496 = vector.load %arg7[%c1_167, %c0_168, %c82_169] : memref<2x1x435xf32, #tpu.memory_space<vmem>>, vector<1x1x256xf32>
      %497 = vector.shape_cast %496 : vector<1x1x256xf32> to vector<1x256xf32>
      %c54 = arith.constant 54 : index
      %498 = memref.load %arg3[%c54] : memref<98xf32, #tpu.memory_space<smem>>
      %499 = vector.broadcast %498 : f32 to vector<1x256xf32>
      %500 = arith.mulf %499, %105 : vector<1x256xf32>
      %501 = arith.mulf %500, %497 : vector<1x256xf32>
      %502 = arith.addf %495, %501 : vector<1x256xf32>
      %c1_170 = arith.constant 1 : index
      %c0_171 = arith.constant 0 : index
      %c83_172 = arith.constant 83 : index
      %503 = vector.load %arg7[%c1_170, %c0_171, %c83_172] : memref<2x1x435xf32, #tpu.memory_space<vmem>>, vector<1x1x256xf32>
      %504 = vector.shape_cast %503 : vector<1x1x256xf32> to vector<1x256xf32>
      %c55 = arith.constant 55 : index
      %505 = memref.load %arg3[%c55] : memref<98xf32, #tpu.memory_space<smem>>
      %506 = vector.broadcast %505 : f32 to vector<1x256xf32>
      %507 = arith.mulf %506, %116 : vector<1x256xf32>
      %508 = arith.mulf %507, %504 : vector<1x256xf32>
      %509 = arith.addf %502, %508 : vector<1x256xf32>
      %c1_173 = arith.constant 1 : index
      %c0_174 = arith.constant 0 : index
      %c93_175 = arith.constant 93 : index
      %510 = vector.load %arg7[%c1_173, %c0_174, %c93_175] : memref<2x1x435xf32, #tpu.memory_space<vmem>>, vector<1x1x256xf32>
      %511 = vector.shape_cast %510 : vector<1x1x256xf32> to vector<1x256xf32>
      %c56 = arith.constant 56 : index
      %512 = memref.load %arg3[%c56] : memref<98xf32, #tpu.memory_space<smem>>
      %513 = vector.broadcast %512 : f32 to vector<1x256xf32>
      %514 = arith.mulf %513, %50 : vector<1x256xf32>
      %515 = arith.mulf %514, %511 : vector<1x256xf32>
      %516 = arith.addf %509, %515 : vector<1x256xf32>
      %c1_176 = arith.constant 1 : index
      %c0_177 = arith.constant 0 : index
      %c94_178 = arith.constant 94 : index
      %517 = vector.load %arg7[%c1_176, %c0_177, %c94_178] : memref<2x1x435xf32, #tpu.memory_space<vmem>>, vector<1x1x256xf32>
      %518 = vector.shape_cast %517 : vector<1x1x256xf32> to vector<1x256xf32>
      %c57 = arith.constant 57 : index
      %519 = memref.load %arg3[%c57] : memref<98xf32, #tpu.memory_space<smem>>
      %520 = vector.broadcast %519 : f32 to vector<1x256xf32>
      %521 = arith.mulf %520, %61 : vector<1x256xf32>
      %522 = arith.mulf %521, %518 : vector<1x256xf32>
      %523 = arith.addf %516, %522 : vector<1x256xf32>
      %c1_179 = arith.constant 1 : index
      %c0_180 = arith.constant 0 : index
      %c95_181 = arith.constant 95 : index
      %524 = vector.load %arg7[%c1_179, %c0_180, %c95_181] : memref<2x1x435xf32, #tpu.memory_space<vmem>>, vector<1x1x256xf32>
      %525 = vector.shape_cast %524 : vector<1x1x256xf32> to vector<1x256xf32>
      %c58 = arith.constant 58 : index
      %526 = memref.load %arg3[%c58] : memref<98xf32, #tpu.memory_space<smem>>
      %527 = vector.broadcast %526 : f32 to vector<1x256xf32>
      %528 = arith.mulf %527, %72 : vector<1x256xf32>
      %529 = arith.mulf %528, %525 : vector<1x256xf32>
      %530 = arith.addf %523, %529 : vector<1x256xf32>
      %c1_182 = arith.constant 1 : index
      %c0_183 = arith.constant 0 : index
      %c96_184 = arith.constant 96 : index
      %531 = vector.load %arg7[%c1_182, %c0_183, %c96_184] : memref<2x1x435xf32, #tpu.memory_space<vmem>>, vector<1x1x256xf32>
      %532 = vector.shape_cast %531 : vector<1x1x256xf32> to vector<1x256xf32>
      %c59 = arith.constant 59 : index
      %533 = memref.load %arg3[%c59] : memref<98xf32, #tpu.memory_space<smem>>
      %534 = vector.broadcast %533 : f32 to vector<1x256xf32>
      %535 = arith.mulf %534, %83 : vector<1x256xf32>
      %536 = arith.mulf %535, %532 : vector<1x256xf32>
      %537 = arith.addf %530, %536 : vector<1x256xf32>
      %c1_185 = arith.constant 1 : index
      %c0_186 = arith.constant 0 : index
      %c97_187 = arith.constant 97 : index
      %538 = vector.load %arg7[%c1_185, %c0_186, %c97_187] : memref<2x1x435xf32, #tpu.memory_space<vmem>>, vector<1x1x256xf32>
      %539 = vector.shape_cast %538 : vector<1x1x256xf32> to vector<1x256xf32>
      %c60 = arith.constant 60 : index
      %540 = memref.load %arg3[%c60] : memref<98xf32, #tpu.memory_space<smem>>
      %541 = vector.broadcast %540 : f32 to vector<1x256xf32>
      %542 = arith.mulf %541, %94 : vector<1x256xf32>
      %543 = arith.mulf %542, %539 : vector<1x256xf32>
      %544 = arith.addf %537, %543 : vector<1x256xf32>
      %c1_188 = arith.constant 1 : index
      %c0_189 = arith.constant 0 : index
      %c98_190 = arith.constant 98 : index
      %545 = vector.load %arg7[%c1_188, %c0_189, %c98_190] : memref<2x1x435xf32, #tpu.memory_space<vmem>>, vector<1x1x256xf32>
      %546 = vector.shape_cast %545 : vector<1x1x256xf32> to vector<1x256xf32>
      %c61 = arith.constant 61 : index
      %547 = memref.load %arg3[%c61] : memref<98xf32, #tpu.memory_space<smem>>
      %548 = vector.broadcast %547 : f32 to vector<1x256xf32>
      %549 = arith.mulf %548, %105 : vector<1x256xf32>
      %550 = arith.mulf %549, %546 : vector<1x256xf32>
      %551 = arith.addf %544, %550 : vector<1x256xf32>
      %c1_191 = arith.constant 1 : index
      %c0_192 = arith.constant 0 : index
      %c99_193 = arith.constant 99 : index
      %552 = vector.load %arg7[%c1_191, %c0_192, %c99_193] : memref<2x1x435xf32, #tpu.memory_space<vmem>>, vector<1x1x256xf32>
      %553 = vector.shape_cast %552 : vector<1x1x256xf32> to vector<1x256xf32>
      %c62 = arith.constant 62 : index
      %554 = memref.load %arg3[%c62] : memref<98xf32, #tpu.memory_space<smem>>
      %555 = vector.broadcast %554 : f32 to vector<1x256xf32>
      %556 = arith.mulf %555, %116 : vector<1x256xf32>
      %557 = arith.mulf %556, %553 : vector<1x256xf32>
      %558 = arith.addf %551, %557 : vector<1x256xf32>
      %c1_194 = arith.constant 1 : index
      %c0_195 = arith.constant 0 : index
      %c109_196 = arith.constant 109 : index
      %559 = vector.load %arg7[%c1_194, %c0_195, %c109_196] : memref<2x1x435xf32, #tpu.memory_space<vmem>>, vector<1x1x256xf32>
      %560 = vector.shape_cast %559 : vector<1x1x256xf32> to vector<1x256xf32>
      %c63 = arith.constant 63 : index
      %561 = memref.load %arg3[%c63] : memref<98xf32, #tpu.memory_space<smem>>
      %562 = vector.broadcast %561 : f32 to vector<1x256xf32>
      %563 = arith.mulf %562, %50 : vector<1x256xf32>
      %564 = arith.mulf %563, %560 : vector<1x256xf32>
      %565 = arith.addf %558, %564 : vector<1x256xf32>
      %c1_197 = arith.constant 1 : index
      %c0_198 = arith.constant 0 : index
      %c110_199 = arith.constant 110 : index
      %566 = vector.load %arg7[%c1_197, %c0_198, %c110_199] : memref<2x1x435xf32, #tpu.memory_space<vmem>>, vector<1x1x256xf32>
      %567 = vector.shape_cast %566 : vector<1x1x256xf32> to vector<1x256xf32>
      %c64 = arith.constant 64 : index
      %568 = memref.load %arg3[%c64] : memref<98xf32, #tpu.memory_space<smem>>
      %569 = vector.broadcast %568 : f32 to vector<1x256xf32>
      %570 = arith.mulf %569, %61 : vector<1x256xf32>
      %571 = arith.mulf %570, %567 : vector<1x256xf32>
      %572 = arith.addf %565, %571 : vector<1x256xf32>
      %c1_200 = arith.constant 1 : index
      %c0_201 = arith.constant 0 : index
      %c111_202 = arith.constant 111 : index
      %573 = vector.load %arg7[%c1_200, %c0_201, %c111_202] : memref<2x1x435xf32, #tpu.memory_space<vmem>>, vector<1x1x256xf32>
      %574 = vector.shape_cast %573 : vector<1x1x256xf32> to vector<1x256xf32>
      %c65 = arith.constant 65 : index
      %575 = memref.load %arg3[%c65] : memref<98xf32, #tpu.memory_space<smem>>
      %576 = vector.broadcast %575 : f32 to vector<1x256xf32>
      %577 = arith.mulf %576, %72 : vector<1x256xf32>
      %578 = arith.mulf %577, %574 : vector<1x256xf32>
      %579 = arith.addf %572, %578 : vector<1x256xf32>
      %c1_203 = arith.constant 1 : index
      %c0_204 = arith.constant 0 : index
      %c112_205 = arith.constant 112 : index
      %580 = vector.load %arg7[%c1_203, %c0_204, %c112_205] : memref<2x1x435xf32, #tpu.memory_space<vmem>>, vector<1x1x256xf32>
      %581 = vector.shape_cast %580 : vector<1x1x256xf32> to vector<1x256xf32>
      %c66 = arith.constant 66 : index
      %582 = memref.load %arg3[%c66] : memref<98xf32, #tpu.memory_space<smem>>
      %583 = vector.broadcast %582 : f32 to vector<1x256xf32>
      %584 = arith.mulf %583, %83 : vector<1x256xf32>
      %585 = arith.mulf %584, %581 : vector<1x256xf32>
      %586 = arith.addf %579, %585 : vector<1x256xf32>
      %c1_206 = arith.constant 1 : index
      %c0_207 = arith.constant 0 : index
      %c113_208 = arith.constant 113 : index
      %587 = vector.load %arg7[%c1_206, %c0_207, %c113_208] : memref<2x1x435xf32, #tpu.memory_space<vmem>>, vector<1x1x256xf32>
      %588 = vector.shape_cast %587 : vector<1x1x256xf32> to vector<1x256xf32>
      %c67 = arith.constant 67 : index
      %589 = memref.load %arg3[%c67] : memref<98xf32, #tpu.memory_space<smem>>
      %590 = vector.broadcast %589 : f32 to vector<1x256xf32>
      %591 = arith.mulf %590, %94 : vector<1x256xf32>
      %592 = arith.mulf %591, %588 : vector<1x256xf32>
      %593 = arith.addf %586, %592 : vector<1x256xf32>
      %c1_209 = arith.constant 1 : index
      %c0_210 = arith.constant 0 : index
      %c114_211 = arith.constant 114 : index
      %594 = vector.load %arg7[%c1_209, %c0_210, %c114_211] : memref<2x1x435xf32, #tpu.memory_space<vmem>>, vector<1x1x256xf32>
      %595 = vector.shape_cast %594 : vector<1x1x256xf32> to vector<1x256xf32>
      %c68 = arith.constant 68 : index
      %596 = memref.load %arg3[%c68] : memref<98xf32, #tpu.memory_space<smem>>
      %597 = vector.broadcast %596 : f32 to vector<1x256xf32>
      %598 = arith.mulf %597, %105 : vector<1x256xf32>
      %599 = arith.mulf %598, %595 : vector<1x256xf32>
      %600 = arith.addf %593, %599 : vector<1x256xf32>
      %c1_212 = arith.constant 1 : index
      %c0_213 = arith.constant 0 : index
      %c115_214 = arith.constant 115 : index
      %601 = vector.load %arg7[%c1_212, %c0_213, %c115_214] : memref<2x1x435xf32, #tpu.memory_space<vmem>>, vector<1x1x256xf32>
      %602 = vector.shape_cast %601 : vector<1x1x256xf32> to vector<1x256xf32>
      %c69 = arith.constant 69 : index
      %603 = memref.load %arg3[%c69] : memref<98xf32, #tpu.memory_space<smem>>
      %604 = vector.broadcast %603 : f32 to vector<1x256xf32>
      %605 = arith.mulf %604, %116 : vector<1x256xf32>
      %606 = arith.mulf %605, %602 : vector<1x256xf32>
      %607 = arith.addf %600, %606 : vector<1x256xf32>
      %c1_215 = arith.constant 1 : index
      %c0_216 = arith.constant 0 : index
      %c125_217 = arith.constant 125 : index
      %608 = vector.load %arg7[%c1_215, %c0_216, %c125_217] : memref<2x1x435xf32, #tpu.memory_space<vmem>>, vector<1x1x256xf32>
      %609 = vector.shape_cast %608 : vector<1x1x256xf32> to vector<1x256xf32>
      %c70 = arith.constant 70 : index
      %610 = memref.load %arg3[%c70] : memref<98xf32, #tpu.memory_space<smem>>
      %611 = vector.broadcast %610 : f32 to vector<1x256xf32>
      %612 = arith.mulf %611, %50 : vector<1x256xf32>
      %613 = arith.mulf %612, %609 : vector<1x256xf32>
      %614 = arith.addf %607, %613 : vector<1x256xf32>
      %c1_218 = arith.constant 1 : index
      %c0_219 = arith.constant 0 : index
      %c126_220 = arith.constant 126 : index
      %615 = vector.load %arg7[%c1_218, %c0_219, %c126_220] : memref<2x1x435xf32, #tpu.memory_space<vmem>>, vector<1x1x256xf32>
      %616 = vector.shape_cast %615 : vector<1x1x256xf32> to vector<1x256xf32>
      %c71 = arith.constant 71 : index
      %617 = memref.load %arg3[%c71] : memref<98xf32, #tpu.memory_space<smem>>
      %618 = vector.broadcast %617 : f32 to vector<1x256xf32>
      %619 = arith.mulf %618, %61 : vector<1x256xf32>
      %620 = arith.mulf %619, %616 : vector<1x256xf32>
      %621 = arith.addf %614, %620 : vector<1x256xf32>
      %c1_221 = arith.constant 1 : index
      %c0_222 = arith.constant 0 : index
      %c127_223 = arith.constant 127 : index
      %622 = vector.load %arg7[%c1_221, %c0_222, %c127_223] : memref<2x1x435xf32, #tpu.memory_space<vmem>>, vector<1x1x256xf32>
      %623 = vector.shape_cast %622 : vector<1x1x256xf32> to vector<1x256xf32>
      %c72 = arith.constant 72 : index
      %624 = memref.load %arg3[%c72] : memref<98xf32, #tpu.memory_space<smem>>
      %625 = vector.broadcast %624 : f32 to vector<1x256xf32>
      %626 = arith.mulf %625, %72 : vector<1x256xf32>
      %627 = arith.mulf %626, %623 : vector<1x256xf32>
      %628 = arith.addf %621, %627 : vector<1x256xf32>
      %c1_224 = arith.constant 1 : index
      %c0_225 = arith.constant 0 : index
      %c128_226 = arith.constant 128 : index
      %629 = vector.load %arg7[%c1_224, %c0_225, %c128_226] : memref<2x1x435xf32, #tpu.memory_space<vmem>>, vector<1x1x256xf32>
      %630 = vector.shape_cast %629 : vector<1x1x256xf32> to vector<1x256xf32>
      %c73 = arith.constant 73 : index
      %631 = memref.load %arg3[%c73] : memref<98xf32, #tpu.memory_space<smem>>
      %632 = vector.broadcast %631 : f32 to vector<1x256xf32>
      %633 = arith.mulf %632, %83 : vector<1x256xf32>
      %634 = arith.mulf %633, %630 : vector<1x256xf32>
      %635 = arith.addf %628, %634 : vector<1x256xf32>
      %c1_227 = arith.constant 1 : index
      %c0_228 = arith.constant 0 : index
      %c129_229 = arith.constant 129 : index
      %636 = vector.load %arg7[%c1_227, %c0_228, %c129_229] : memref<2x1x435xf32, #tpu.memory_space<vmem>>, vector<1x1x256xf32>
      %637 = vector.shape_cast %636 : vector<1x1x256xf32> to vector<1x256xf32>
      %c74 = arith.constant 74 : index
      %638 = memref.load %arg3[%c74] : memref<98xf32, #tpu.memory_space<smem>>
      %639 = vector.broadcast %638 : f32 to vector<1x256xf32>
      %640 = arith.mulf %639, %94 : vector<1x256xf32>
      %641 = arith.mulf %640, %637 : vector<1x256xf32>
      %642 = arith.addf %635, %641 : vector<1x256xf32>
      %c1_230 = arith.constant 1 : index
      %c0_231 = arith.constant 0 : index
      %c130_232 = arith.constant 130 : index
      %643 = vector.load %arg7[%c1_230, %c0_231, %c130_232] : memref<2x1x435xf32, #tpu.memory_space<vmem>>, vector<1x1x256xf32>
      %644 = vector.shape_cast %643 : vector<1x1x256xf32> to vector<1x256xf32>
      %c75 = arith.constant 75 : index
      %645 = memref.load %arg3[%c75] : memref<98xf32, #tpu.memory_space<smem>>
      %646 = vector.broadcast %645 : f32 to vector<1x256xf32>
      %647 = arith.mulf %646, %105 : vector<1x256xf32>
      %648 = arith.mulf %647, %644 : vector<1x256xf32>
      %649 = arith.addf %642, %648 : vector<1x256xf32>
      %c1_233 = arith.constant 1 : index
      %c0_234 = arith.constant 0 : index
      %c131_235 = arith.constant 131 : index
      %650 = vector.load %arg7[%c1_233, %c0_234, %c131_235] : memref<2x1x435xf32, #tpu.memory_space<vmem>>, vector<1x1x256xf32>
      %651 = vector.shape_cast %650 : vector<1x1x256xf32> to vector<1x256xf32>
      %c76 = arith.constant 76 : index
      %652 = memref.load %arg3[%c76] : memref<98xf32, #tpu.memory_space<smem>>
      %653 = vector.broadcast %652 : f32 to vector<1x256xf32>
      %654 = arith.mulf %653, %116 : vector<1x256xf32>
      %655 = arith.mulf %654, %651 : vector<1x256xf32>
      %656 = arith.addf %649, %655 : vector<1x256xf32>
      %c1_236 = arith.constant 1 : index
      %c0_237 = arith.constant 0 : index
      %c141_238 = arith.constant 141 : index
      %657 = vector.load %arg7[%c1_236, %c0_237, %c141_238] : memref<2x1x435xf32, #tpu.memory_space<vmem>>, vector<1x1x256xf32>
      %658 = vector.shape_cast %657 : vector<1x1x256xf32> to vector<1x256xf32>
      %c77_239 = arith.constant 77 : index
      %659 = memref.load %arg3[%c77_239] : memref<98xf32, #tpu.memory_space<smem>>
      %660 = vector.broadcast %659 : f32 to vector<1x256xf32>
      %661 = arith.mulf %660, %50 : vector<1x256xf32>
      %662 = arith.mulf %661, %658 : vector<1x256xf32>
      %663 = arith.addf %656, %662 : vector<1x256xf32>
      %c1_240 = arith.constant 1 : index
      %c0_241 = arith.constant 0 : index
      %c142_242 = arith.constant 142 : index
      %664 = vector.load %arg7[%c1_240, %c0_241, %c142_242] : memref<2x1x435xf32, #tpu.memory_space<vmem>>, vector<1x1x256xf32>
      %665 = vector.shape_cast %664 : vector<1x1x256xf32> to vector<1x256xf32>
      %c78_243 = arith.constant 78 : index
      %666 = memref.load %arg3[%c78_243] : memref<98xf32, #tpu.memory_space<smem>>
      %667 = vector.broadcast %666 : f32 to vector<1x256xf32>
      %668 = arith.mulf %667, %61 : vector<1x256xf32>
      %669 = arith.mulf %668, %665 : vector<1x256xf32>
      %670 = arith.addf %663, %669 : vector<1x256xf32>
      %c1_244 = arith.constant 1 : index
      %c0_245 = arith.constant 0 : index
      %c143_246 = arith.constant 143 : index
      %671 = vector.load %arg7[%c1_244, %c0_245, %c143_246] : memref<2x1x435xf32, #tpu.memory_space<vmem>>, vector<1x1x256xf32>
      %672 = vector.shape_cast %671 : vector<1x1x256xf32> to vector<1x256xf32>
      %c79_247 = arith.constant 79 : index
      %673 = memref.load %arg3[%c79_247] : memref<98xf32, #tpu.memory_space<smem>>
      %674 = vector.broadcast %673 : f32 to vector<1x256xf32>
      %675 = arith.mulf %674, %72 : vector<1x256xf32>
      %676 = arith.mulf %675, %672 : vector<1x256xf32>
      %677 = arith.addf %670, %676 : vector<1x256xf32>
      %c1_248 = arith.constant 1 : index
      %c0_249 = arith.constant 0 : index
      %c144_250 = arith.constant 144 : index
      %678 = vector.load %arg7[%c1_248, %c0_249, %c144_250] : memref<2x1x435xf32, #tpu.memory_space<vmem>>, vector<1x1x256xf32>
      %679 = vector.shape_cast %678 : vector<1x1x256xf32> to vector<1x256xf32>
      %c80_251 = arith.constant 80 : index
      %680 = memref.load %arg3[%c80_251] : memref<98xf32, #tpu.memory_space<smem>>
      %681 = vector.broadcast %680 : f32 to vector<1x256xf32>
      %682 = arith.mulf %681, %83 : vector<1x256xf32>
      %683 = arith.mulf %682, %679 : vector<1x256xf32>
      %684 = arith.addf %677, %683 : vector<1x256xf32>
      %c1_252 = arith.constant 1 : index
      %c0_253 = arith.constant 0 : index
      %c145_254 = arith.constant 145 : index
      %685 = vector.load %arg7[%c1_252, %c0_253, %c145_254] : memref<2x1x435xf32, #tpu.memory_space<vmem>>, vector<1x1x256xf32>
      %686 = vector.shape_cast %685 : vector<1x1x256xf32> to vector<1x256xf32>
      %c81_255 = arith.constant 81 : index
      %687 = memref.load %arg3[%c81_255] : memref<98xf32, #tpu.memory_space<smem>>
      %688 = vector.broadcast %687 : f32 to vector<1x256xf32>
      %689 = arith.mulf %688, %94 : vector<1x256xf32>
      %690 = arith.mulf %689, %686 : vector<1x256xf32>
      %691 = arith.addf %684, %690 : vector<1x256xf32>
      %c1_256 = arith.constant 1 : index
      %c0_257 = arith.constant 0 : index
      %c146_258 = arith.constant 146 : index
      %692 = vector.load %arg7[%c1_256, %c0_257, %c146_258] : memref<2x1x435xf32, #tpu.memory_space<vmem>>, vector<1x1x256xf32>
      %693 = vector.shape_cast %692 : vector<1x1x256xf32> to vector<1x256xf32>
      %c82_259 = arith.constant 82 : index
      %694 = memref.load %arg3[%c82_259] : memref<98xf32, #tpu.memory_space<smem>>
      %695 = vector.broadcast %694 : f32 to vector<1x256xf32>
      %696 = arith.mulf %695, %105 : vector<1x256xf32>
      %697 = arith.mulf %696, %693 : vector<1x256xf32>
      %698 = arith.addf %691, %697 : vector<1x256xf32>
      %c1_260 = arith.constant 1 : index
      %c0_261 = arith.constant 0 : index
      %c147_262 = arith.constant 147 : index
      %699 = vector.load %arg7[%c1_260, %c0_261, %c147_262] : memref<2x1x435xf32, #tpu.memory_space<vmem>>, vector<1x1x256xf32>
      %700 = vector.shape_cast %699 : vector<1x1x256xf32> to vector<1x256xf32>
      %c83_263 = arith.constant 83 : index
      %701 = memref.load %arg3[%c83_263] : memref<98xf32, #tpu.memory_space<smem>>
      %702 = vector.broadcast %701 : f32 to vector<1x256xf32>
      %703 = arith.mulf %702, %116 : vector<1x256xf32>
      %704 = arith.mulf %703, %700 : vector<1x256xf32>
      %705 = arith.addf %698, %704 : vector<1x256xf32>
      %c1_264 = arith.constant 1 : index
      %c0_265 = arith.constant 0 : index
      %c157_266 = arith.constant 157 : index
      %706 = vector.load %arg7[%c1_264, %c0_265, %c157_266] : memref<2x1x435xf32, #tpu.memory_space<vmem>>, vector<1x1x256xf32>
      %707 = vector.shape_cast %706 : vector<1x1x256xf32> to vector<1x256xf32>
      %c84 = arith.constant 84 : index
      %708 = memref.load %arg3[%c84] : memref<98xf32, #tpu.memory_space<smem>>
      %709 = vector.broadcast %708 : f32 to vector<1x256xf32>
      %710 = arith.mulf %709, %50 : vector<1x256xf32>
      %711 = arith.mulf %710, %707 : vector<1x256xf32>
      %712 = arith.addf %705, %711 : vector<1x256xf32>
      %c1_267 = arith.constant 1 : index
      %c0_268 = arith.constant 0 : index
      %c158_269 = arith.constant 158 : index
      %713 = vector.load %arg7[%c1_267, %c0_268, %c158_269] : memref<2x1x435xf32, #tpu.memory_space<vmem>>, vector<1x1x256xf32>
      %714 = vector.shape_cast %713 : vector<1x1x256xf32> to vector<1x256xf32>
      %c85 = arith.constant 85 : index
      %715 = memref.load %arg3[%c85] : memref<98xf32, #tpu.memory_space<smem>>
      %716 = vector.broadcast %715 : f32 to vector<1x256xf32>
      %717 = arith.mulf %716, %61 : vector<1x256xf32>
      %718 = arith.mulf %717, %714 : vector<1x256xf32>
      %719 = arith.addf %712, %718 : vector<1x256xf32>
      %c1_270 = arith.constant 1 : index
      %c0_271 = arith.constant 0 : index
      %c159_272 = arith.constant 159 : index
      %720 = vector.load %arg7[%c1_270, %c0_271, %c159_272] : memref<2x1x435xf32, #tpu.memory_space<vmem>>, vector<1x1x256xf32>
      %721 = vector.shape_cast %720 : vector<1x1x256xf32> to vector<1x256xf32>
      %c86 = arith.constant 86 : index
      %722 = memref.load %arg3[%c86] : memref<98xf32, #tpu.memory_space<smem>>
      %723 = vector.broadcast %722 : f32 to vector<1x256xf32>
      %724 = arith.mulf %723, %72 : vector<1x256xf32>
      %725 = arith.mulf %724, %721 : vector<1x256xf32>
      %726 = arith.addf %719, %725 : vector<1x256xf32>
      %c1_273 = arith.constant 1 : index
      %c0_274 = arith.constant 0 : index
      %c160_275 = arith.constant 160 : index
      %727 = vector.load %arg7[%c1_273, %c0_274, %c160_275] : memref<2x1x435xf32, #tpu.memory_space<vmem>>, vector<1x1x256xf32>
      %728 = vector.shape_cast %727 : vector<1x1x256xf32> to vector<1x256xf32>
      %c87 = arith.constant 87 : index
      %729 = memref.load %arg3[%c87] : memref<98xf32, #tpu.memory_space<smem>>
      %730 = vector.broadcast %729 : f32 to vector<1x256xf32>
      %731 = arith.mulf %730, %83 : vector<1x256xf32>
      %732 = arith.mulf %731, %728 : vector<1x256xf32>
      %733 = arith.addf %726, %732 : vector<1x256xf32>
      %c1_276 = arith.constant 1 : index
      %c0_277 = arith.constant 0 : index
      %c161_278 = arith.constant 161 : index
      %734 = vector.load %arg7[%c1_276, %c0_277, %c161_278] : memref<2x1x435xf32, #tpu.memory_space<vmem>>, vector<1x1x256xf32>
      %735 = vector.shape_cast %734 : vector<1x1x256xf32> to vector<1x256xf32>
      %c88 = arith.constant 88 : index
      %736 = memref.load %arg3[%c88] : memref<98xf32, #tpu.memory_space<smem>>
      %737 = vector.broadcast %736 : f32 to vector<1x256xf32>
      %738 = arith.mulf %737, %94 : vector<1x256xf32>
      %739 = arith.mulf %738, %735 : vector<1x256xf32>
      %740 = arith.addf %733, %739 : vector<1x256xf32>
      %c1_279 = arith.constant 1 : index
      %c0_280 = arith.constant 0 : index
      %c162_281 = arith.constant 162 : index
      %741 = vector.load %arg7[%c1_279, %c0_280, %c162_281] : memref<2x1x435xf32, #tpu.memory_space<vmem>>, vector<1x1x256xf32>
      %742 = vector.shape_cast %741 : vector<1x1x256xf32> to vector<1x256xf32>
      %c89 = arith.constant 89 : index
      %743 = memref.load %arg3[%c89] : memref<98xf32, #tpu.memory_space<smem>>
      %744 = vector.broadcast %743 : f32 to vector<1x256xf32>
      %745 = arith.mulf %744, %105 : vector<1x256xf32>
      %746 = arith.mulf %745, %742 : vector<1x256xf32>
      %747 = arith.addf %740, %746 : vector<1x256xf32>
      %c1_282 = arith.constant 1 : index
      %c0_283 = arith.constant 0 : index
      %c163_284 = arith.constant 163 : index
      %748 = vector.load %arg7[%c1_282, %c0_283, %c163_284] : memref<2x1x435xf32, #tpu.memory_space<vmem>>, vector<1x1x256xf32>
      %749 = vector.shape_cast %748 : vector<1x1x256xf32> to vector<1x256xf32>
      %c90 = arith.constant 90 : index
      %750 = memref.load %arg3[%c90] : memref<98xf32, #tpu.memory_space<smem>>
      %751 = vector.broadcast %750 : f32 to vector<1x256xf32>
      %752 = arith.mulf %751, %116 : vector<1x256xf32>
      %753 = arith.mulf %752, %749 : vector<1x256xf32>
      %754 = arith.addf %747, %753 : vector<1x256xf32>
      %c1_285 = arith.constant 1 : index
      %c0_286 = arith.constant 0 : index
      %c173_287 = arith.constant 173 : index
      %755 = vector.load %arg7[%c1_285, %c0_286, %c173_287] : memref<2x1x435xf32, #tpu.memory_space<vmem>>, vector<1x1x256xf32>
      %756 = vector.shape_cast %755 : vector<1x1x256xf32> to vector<1x256xf32>
      %c91 = arith.constant 91 : index
      %757 = memref.load %arg3[%c91] : memref<98xf32, #tpu.memory_space<smem>>
      %758 = vector.broadcast %757 : f32 to vector<1x256xf32>
      %759 = arith.mulf %758, %50 : vector<1x256xf32>
      %760 = arith.mulf %759, %756 : vector<1x256xf32>
      %761 = arith.addf %754, %760 : vector<1x256xf32>
      %c1_288 = arith.constant 1 : index
      %c0_289 = arith.constant 0 : index
      %c174_290 = arith.constant 174 : index
      %762 = vector.load %arg7[%c1_288, %c0_289, %c174_290] : memref<2x1x435xf32, #tpu.memory_space<vmem>>, vector<1x1x256xf32>
      %763 = vector.shape_cast %762 : vector<1x1x256xf32> to vector<1x256xf32>
      %c92 = arith.constant 92 : index
      %764 = memref.load %arg3[%c92] : memref<98xf32, #tpu.memory_space<smem>>
      %765 = vector.broadcast %764 : f32 to vector<1x256xf32>
      %766 = arith.mulf %765, %61 : vector<1x256xf32>
      %767 = arith.mulf %766, %763 : vector<1x256xf32>
      %768 = arith.addf %761, %767 : vector<1x256xf32>
      %c1_291 = arith.constant 1 : index
      %c0_292 = arith.constant 0 : index
      %c175_293 = arith.constant 175 : index
      %769 = vector.load %arg7[%c1_291, %c0_292, %c175_293] : memref<2x1x435xf32, #tpu.memory_space<vmem>>, vector<1x1x256xf32>
      %770 = vector.shape_cast %769 : vector<1x1x256xf32> to vector<1x256xf32>
      %c93_294 = arith.constant 93 : index
      %771 = memref.load %arg3[%c93_294] : memref<98xf32, #tpu.memory_space<smem>>
      %772 = vector.broadcast %771 : f32 to vector<1x256xf32>
      %773 = arith.mulf %772, %72 : vector<1x256xf32>
      %774 = arith.mulf %773, %770 : vector<1x256xf32>
      %775 = arith.addf %768, %774 : vector<1x256xf32>
      %c1_295 = arith.constant 1 : index
      %c0_296 = arith.constant 0 : index
      %c176_297 = arith.constant 176 : index
      %776 = vector.load %arg7[%c1_295, %c0_296, %c176_297] : memref<2x1x435xf32, #tpu.memory_space<vmem>>, vector<1x1x256xf32>
      %777 = vector.shape_cast %776 : vector<1x1x256xf32> to vector<1x256xf32>
      %c94_298 = arith.constant 94 : index
      %778 = memref.load %arg3[%c94_298] : memref<98xf32, #tpu.memory_space<smem>>
      %779 = vector.broadcast %778 : f32 to vector<1x256xf32>
      %780 = arith.mulf %779, %83 : vector<1x256xf32>
      %781 = arith.mulf %780, %777 : vector<1x256xf32>
      %782 = arith.addf %775, %781 : vector<1x256xf32>
      %c1_299 = arith.constant 1 : index
      %c0_300 = arith.constant 0 : index
      %c177_301 = arith.constant 177 : index
      %783 = vector.load %arg7[%c1_299, %c0_300, %c177_301] : memref<2x1x435xf32, #tpu.memory_space<vmem>>, vector<1x1x256xf32>
      %784 = vector.shape_cast %783 : vector<1x1x256xf32> to vector<1x256xf32>
      %c95_302 = arith.constant 95 : index
      %785 = memref.load %arg3[%c95_302] : memref<98xf32, #tpu.memory_space<smem>>
      %786 = vector.broadcast %785 : f32 to vector<1x256xf32>
      %787 = arith.mulf %786, %94 : vector<1x256xf32>
      %788 = arith.mulf %787, %784 : vector<1x256xf32>
      %789 = arith.addf %782, %788 : vector<1x256xf32>
      %c1_303 = arith.constant 1 : index
      %c0_304 = arith.constant 0 : index
      %c178_305 = arith.constant 178 : index
      %790 = vector.load %arg7[%c1_303, %c0_304, %c178_305] : memref<2x1x435xf32, #tpu.memory_space<vmem>>, vector<1x1x256xf32>
      %791 = vector.shape_cast %790 : vector<1x1x256xf32> to vector<1x256xf32>
      %c96_306 = arith.constant 96 : index
      %792 = memref.load %arg3[%c96_306] : memref<98xf32, #tpu.memory_space<smem>>
      %793 = vector.broadcast %792 : f32 to vector<1x256xf32>
      %794 = arith.mulf %793, %105 : vector<1x256xf32>
      %795 = arith.mulf %794, %791 : vector<1x256xf32>
      %796 = arith.addf %789, %795 : vector<1x256xf32>
      %c1_307 = arith.constant 1 : index
      %c0_308 = arith.constant 0 : index
      %c179_309 = arith.constant 179 : index
      %797 = vector.load %arg7[%c1_307, %c0_308, %c179_309] : memref<2x1x435xf32, #tpu.memory_space<vmem>>, vector<1x1x256xf32>
      %798 = vector.shape_cast %797 : vector<1x1x256xf32> to vector<1x256xf32>
      %c97_310 = arith.constant 97 : index
      %799 = memref.load %arg3[%c97_310] : memref<98xf32, #tpu.memory_space<smem>>
      %800 = vector.broadcast %799 : f32 to vector<1x256xf32>
      %801 = arith.mulf %800, %116 : vector<1x256xf32>
      %802 = arith.mulf %801, %798 : vector<1x256xf32>
      %803 = arith.addf %796, %802 : vector<1x256xf32>
      %804 = arith.negf %803 : vector<1x256xf32>
      %805 = math.exp %804 : vector<1x256xf32>
      %cst_311 = arith.constant 1.000000e+00 : f32
      %806 = vector.broadcast %cst_311 : f32 to vector<1x256xf32>
      %807 = arith.addf %806, %805 : vector<1x256xf32>
      %808 = arith.divf %806, %807 : vector<1x256xf32>
      %c0_312 = arith.constant 0 : index
      %c0_313 = arith.constant 0 : index
      %c0_314 = arith.constant 0 : index
      %809 = vector.load %arg4[%c0_312, %c0_313, %c0_314] : memref<1x1x256xf32, #tpu.memory_space<vmem>>, vector<1x1x256xf32>
      %810 = vector.shape_cast %809 : vector<1x1x256xf32> to vector<1x256xf32>
      %811 = vector.shape_cast %808 : vector<1x256xf32> to vector<1x1x256xf32>
      tpu.vector_store %arg4[%c0_312, %c0_313, %c0_314], %811 {strides = array<i32>} : memref<1x1x256xf32, #tpu.memory_space<vmem>>, vector<1x1x256xf32>,
    } else {
    }
    return
  }
  func.func @transform_0(%arg0: i32, %arg1: i32) -> (i32, i32, i32) {
    %c0_i32 = arith.constant 0 : i32
    %c0_i32_0 = arith.constant 0 : i32
    return %arg0, %arg1, %c0_i32 : i32, i32, i32
  }
  func.func @transform_1(%arg0: i32, %arg1: i32) -> i32 {
    %c0_i32 = arith.constant 0 : i32
    %c0_i32_0 = arith.constant 0 : i32
    return %c0_i32 : i32
  }
  func.func @transform_2(%arg0: i32, %arg1: i32) -> (i32, i32, i32) {
    %c0_i32 = arith.constant 0 : i32
    %c0_i32_0 = arith.constant 0 : i32
    %c0_i32_1 = arith.constant 0 : i32
    return %arg0, %c0_i32, %c0_i32_0 : i32, i32, i32
  }
}

</mosaic_0001>

<bundles_post_ra>
// kernel: tpu_custom_call.1
= control target key start
LH: loop header
LB: loop body
LE: loop exit
PB: predicated region body
PF: predicated region fallthrough
CT: control target
= control target key end

     0   :  { %7 = vsyncpa [#allocation6], 0  ;;  %s5435_s0 = inlined_call_operand.hbm [shape: f32[2,4,256], index: 0, kind: input, shape index: {}]   ;;  %s5436_s1 = inlined_call_operand.vmem [shape: f32[98], index: 1, kind: input, shape index: {}]   ;;  %s5437_s2 = inlined_call_operand.hbm [shape: f32[2,1,256], index: 2, kind: output, shape index: {}]  }
   0x1   :  { %9 = vsyncpa [#allocation6 + $0x1], 0 }
   0x2   :  { %10 = vsyncpa [#allocation8], 0 }
   0x3   :  { %11 = vsyncpa [#allocation7], 0 }
   0x4   :  { %13 = vsyncpa [#allocation7 + $0x1], 0  ;;  %s2918_s9 = smov 0   ;;  %s2920_s10 = smov 0  }
   0x5   :  { %s2922_s11 = smov 0   ;;  %s2924_s12 = smov 0  }
   0x6   :  { %s2926_s13 = smov 0   ;;  %s2928_s14 = smov 0  }
   0x7 LB: > { %s2455_s15 = sadd.s32 4294967295, %s2848_s14   ;;  %s2456_s16 = sadd.s32 4294967294, %s2848_s14   ;;  %s2848_s14 = sphi %s2928_s14, %s19_s14   ;;  %s2844_s13 = sphi %s2926_s13, %s6068_s13   ;;  %s2840_s12 = sphi %s2924_s12, %s6067_s12   ;;  %s2836_s11 = sphi %s2922_s11, %s6066_s11   ;;  %s2832_s10 = sphi %s2920_s10, %s6065_s10   ;;  %s2828_s9 = sphi %s2918_s9, %s6064_s9  }
   0x8   : > { %p53_p0 = scmp.ne.s32.totalorder %s2832_s10, %s2828_s9  ;;  %p2952_p1 = scmp.eq.s32.totalorder %s2455_s15, 0 }
   0x9   : > { %p2956_p2 = scmp.eq.s32.totalorder %s2455_s15, 1  ;;  %p104_p3 = scmp.eq.s32.totalorder %s2456_s16, 1 }
   0xa   : > { %s5604_s17 = scalar_select %p2952_p1, 1, 0 }
   0xb   : > { %p2962_p4 = por %p2952_p1, %p53_p0  ;;  %p2457_p5 = scmp.ge.s32.totalorder %s2848_s14, 1 }
   0xc   : > { %p2967_p6 = por %p104_p3, %p53_p0  ;;  %p111_p7 = scmp.lt.s32.totalorder %s2848_s14, 3 }
   0xd   : > { %s5606_s19 = scalar_select %p2962_p4, 1, 0 }
   0xe   : > { %s5607_s20 = scalar_select %p2967_p6, 1, 0 }
   0xf   : > { %s124_s23 = sshll.u32 %s5436_s1, 4  ;;  %p2975_p8 = pnand %p2457_p5, %p111_p7  ;;  %s125_s23 = int_to_ptr.vmem [resolvable:$true] %s124_s23 }
  0x10   : > { %s31_s26 = sadd.s32 1, %s2844_s13  ;;  %s40_s27 = sadd.s32 1, %s2836_s11 }
  0x11   : > { %p2593_p10 = pneg %p2975_p8  ;;  %p33_p12 = scmp.ge.s32.totalorder %s31_s26, 2 }
  0x12   : > { %s2717_s28 = scalar_lea.vmem %s125_s23, 16  ;;  %p2725_p7 = scmp.lt.s32.totalorder %s125_s23, %s125_s23 }
  0x13   : > { %p2984_p11 = pnand %p2593_p10, %p2952_p1  ;;  %p2718_p13 = scmp.ne.s32.totalorder %s125_s23, %s2717_s28 }
  0x14   : > { %p2726_p6 = scmp.lt.s32.totalorder %s2717_s28, %s2717_s28 }
  0x15   : > { %p2719_p0 = pneg %p2984_p11 }
  0x16   : > { %p2727_p9 = por %p2726_p6, %p2725_p7 }
  0x17   : > { %p2720_p3 = pnand %p2719_p0, %p2718_p13 }
  0x19   : > { %p2721_p5 = pneg %p2720_p3 }
  0x1b   : > { %p2728_p4 = pnand %p2727_p9, %p2721_p5 }
  0x1d   : > { %2731 = shalt.err (!%p2728_p4)
}
  0x1e   : > { %s2850_s29 = smov [#allocation9]   ;;  %s6070_s26 = smov (%p33_p12, %s31_s26), 0 }
  0x1f   : > { %2596 = dma.vmem_to_smem (!%p2984_p11), %s125_s23, 16, %s2850_s29, [#allocation8]  }
  0x20   : > { %p47_p10 = scmp.ne.s32.totalorder %s2836_s11, %s2832_s10  ;;  %p48_p6 = scmp.eq.s32.totalorder %s2848_s14, 0 }
  0x21   : > { %s35_s30 = ssub.s32 %s2844_s13, %s6070_s26  ;;  %p2606_p4 = scmp.lt.s32.totalorder %s2848_s14, 2 }
  0x22   : > { %p38_p9 = scmp.eq.s32.totalorder %s35_s30, 0  ;;  %p49_p13 = por %p48_p6, %p47_p10 }
  0x23   : > { %p3004_p0 = por %p2956_p2, %p47_p10  ;;  %s135_s4 = sand.u32 1, %s2836_s11  }
  0x24   : > { %s3010_s5 = scalar_select %p38_p9, %s2836_s11, %s40_s27  }
  0x25   : > { %s5610_s3 = scalar_select %p3004_p0, 1, 0 }
  0x26   : > { %s2460_s6 = sshll.u32 %s135_s4, 3  ;;  %s2583_s7 = sshll.u32 %s2844_s13, 7 }
  0x27   : > { %s3016_s16 = scalar_lea.hbm %s5435_s0, %s2583_s7  ;;  %s139_s21 = scalar_lea.vmem [#allocation5], %s2460_s6 }
  0x28   : > { %s149_s18 = sshll.u32 %s139_s21, 4  ;;  %p3020_p2 = pnand %p2606_p4, %p49_p13  ;;  %s3018_s18 = int_to_ptr.vmem [resolvable:$true] %s149_s18 }
  0x29   : > { %s136_s23 = scalar_lea.sflag [#allocation6], %s135_s4  ;;  %s2732_s25 = scalar_lea.hbm %s3016_s16, 128 }
  0x2a   : > { %p2733_p11 = scmp.ne.s32.totalorder %s3016_s16, %s2732_s25  ;;  %p2734_p12 = pneg %p3020_p2 }
  0x2b   : > { %s2737_s29 = scalar_lea.hbm %s5435_s0, 256  ;;  %p2738_p7 = scmp.lt.u32.totalorder %s3016_s16, %s5435_s0 }
  0x2c   : > { %p2735_p3 = pnand %p2734_p12, %p2733_p11  ;;  %p2739_p10 = scmp.lt.u32.totalorder %s2737_s29, %s2732_s25 }
  0x2d   : > { %p2741_p4 = scmp.lt.u32.totalorder %s2732_s25, %s3016_s16 }
  0x2e   : > { %p2736_p5 = pneg %p2735_p3  ;;  %p2740_p6 = por %p2739_p10, %p2738_p7 }
  0x30   : > { %p2742_p9 = por %p2741_p4, %p2740_p6 }
  0x32   : > { %p2743_p13 = pnand %p2742_p9, %p2736_p5 }
  0x34   : > { %2746 = shalt.err (!%p2743_p13)
}
  0x35   : > { %s2747_s4 = scalar_lea.vmem %s3018_s18, 128  ;;  %s2851_s7 = smov [#allocation5]  }
  0x36   : > { %p2748_p11 = scmp.ne.s32.totalorder %s3018_s18, %s2747_s4  ;;  %s2752_s8 = sshll.u32 %s2851_s7, 4  ;;  %s2753_s8 = int_to_ptr.vmem [resolvable:$false] %s2752_s8 }
  0x37   : > { %s2754_s15 = scalar_lea.vmem %s2753_s8, 256  ;;  %p2755_p1 = scmp.lt.s32.totalorder %s3018_s18, %s2753_s8 }
  0x38   : > { %p2750_p3 = pnand %p2748_p11, %p2734_p12  ;;  %p2756_p7 = scmp.lt.s32.totalorder %s2754_s15, %s2747_s4 }
  0x3a   : > { %p2751_p0 = pneg %p2750_p3  ;;  %p2757_p10 = por %p2756_p7, %p2755_p1 }
  0x3c   : > { %p2758_p6 = pnand %p2757_p10, %p2751_p0 }
  0x3e   : > { %2761 = shalt.err (!%p2758_p6)
}
  0x3f   : > { %2600 = dma.hbm_to_vmem [thread:$0]  (!%p3020_p2), %s3016_s16, 128, %s3018_s18, %s136_s23  }
  0x40   : > { %158 = sbr.rel (%p2975_p8) target bundleno = 864 (0x360), region = 28 }
  0x47   : > { %s3052_s21 = sand.u32 1, %s2832_s10   ;;  %p5612_p1 = scmp.ne.s32.totalorder %s5606_s19, 0 }
  0x48   : > { %s2464_s25 = sshll.u32 %s3052_s21, 3  ;;  %s161_s27 = scalar_lea.sflag [#allocation6], %s3052_s21 }
  0x49   : > { %s164_s28 = scalar_lea.vmem [#allocation5], %s2464_s25 }
  0x4a   : > { %2815 = dma.done.wait (%p5612_p1), %s161_s27, 128  }
  0x4b   : > { %2817 = vsyncadd (%p5612_p1), %s161_s27, 4294967168  ;;  %p5613_p0 = scmp.ne.s32.totalorder %s5604_s17, 0 }
  0x4d   : > { %2819 = dma.done.wait (%p5613_p0), [#allocation8], 16  }
  0x4e   : > { %2821 = vsyncadd (%p5613_p0), [#allocation8], 4294967280 }
  0x4f   : > { %173 = sfence }
  0x50   : > { %v190_v0 = vld [vmem:[%s164_s28] sm:$0xff]  ;;  %vm194_vm0 = vcmask 1043456   ;;  %v233_v1 = vlaneseq  ;;  %v2852_v13 = vmov 0.0   ;;  %v2853_v14 = vmov 1966171168   ;;  %s2854_s17 = smov 51  }
  0x51   : > { %v192_v2 = vcombine.high %v190_v0, %v190_v0  ;;  %v195_v3 = vsel %vm194_vm0, %v190_v0, 0.0  ;;  %v209_v4 = vsel %vm194_vm0, %v190_v0, -inf  ;;  %v231_v15 = vunpack.c.l.s4 %v2853_v14  ;;  %s2855_s19 = smov 50   ;;  %s2856_s24 = smov 49  }
  0x52   : > { %v196_v5 = vrot.slane %v195_v3, 4  ;;  %v210_v6 = vrot.slane %v209_v4, 4  ;;  %vm324_vm1 = vcmp.lt.s32.totalorder %v233_v1, 435  ;;  %v234_v25 = vshrl.u32 %v233_v1, 7  ;;  %s2857_s16 = smov 48   ;;  %s2858_s18 = smov 47  }
  0x53   : > { %v202_v7 = vsel %vm194_vm0, %v192_v2, 0.0  ;;  %v216_v8 = vsel %vm194_vm0, %v192_v2, -inf  ;;  %326 = vst.msk [vmem:[#allocation4] sm:$0xf] %vm324_vm1, %v2852_v13  ;;  %327 = vst.msk [vmem:[#allocation4 + $0x4] sm:$0xf] %vm324_vm1, %v2852_v13  ;;  %v232_v24 = vunpack.c.0.s8 %v231_v15 }
  0x54   : > { %v197_v9 = vadd.f32 %v196_v5, %v195_v3  ;;  %v203_v10 = vrot.slane %v202_v7, 4  ;;  %v211_v11 = vmax.f32 %v209_v4, %v210_v6  ;;  %v217_v12 = vrot.slane %v216_v8, 4  ;;  %s2859_s22 = smov 46   ;;  %s2860_s23 = smov 45  }
  0x55   : > { %v3066_v36 = vsub.s32 %v232_v24, %v234_v25  ;;  %vm3070_vm2 = vcmp.lt.s32.totalorder %v233_v1, 256  ;;  %v5615_v41 = vmov 0  ;;  %v336_v44 = vand.u32 127, %v233_v1  ;;  %s2861_s29 = smov 35   ;;  %s2862_s30 = smov 34  }
  0x56   : > { %v198_v16 = vrot.slane %v197_v9, 2  ;;  %v204_v17 = vadd.f32 %v203_v10, %v202_v7  ;;  %v212_v18 = vrot.slane %v211_v11, 2  ;;  %v218_v19 = vmax.f32 %v216_v8, %v217_v12  ;;  %s2863_s6 = smov 33   ;;  %s2864_s4 = smov 32  }
  0x57   : > { %5614 = vst [vmem:[#allocation14_spill] sm:$0xff] %v3066_v36  ;;  %v5616_v41 = vsel %vm3070_vm2, 4294967295, %v5615_v41  ;;  %v337_v45 = vadd.s32 128, %v336_v44  ;;  %v342_v46 = vand.u32 15, %v336_v44  ;;  %v3091_v56 = vsub.s32 2, %v234_v25  ;;  %s2865_s7 = smov 31  }
  0x58   : > { %v199_v20 = vadd.f32 %v198_v16, %v197_v9  ;;  %v205_v21 = vrot.slane %v204_v17, 2  ;;  %v213_v22 = vmax.f32 %v211_v11, %v212_v18  ;;  %v219_v23 = vrot.slane %v218_v19, 2  ;;  %5617 = vst [vmem:[#allocation15_spill] sm:$0xff] %v5616_v41  ;;  %s5543_s8 = smov 30   ;;  %s5442_s15 = smov 29  }
  0x59   : > { %v349_v47 = vand.u32 15, %v337_v45  ;;  %v362_v48 = vadd.s32 4294967293, %v342_v46  ;;  %v374_v53 = vadd.s32 4294967294, %v342_v46  ;;  %5618 = vst [vmem:[#allocation16_spill] sm:$0xff] %v3091_v56  ;;  %v3093_v57 = vsub.s32 0, %v234_v25  ;;  %s5446_s25 = smov 19  }
  0x5a   : > { %v200_v26 = vrot.slane %v199_v20, 1  ;;  %v206_v27 = vadd.f32 %v205_v21, %v204_v17  ;;  %v214_v28 = vrot.slane %v213_v22, 1  ;;  %v220_v29 = vmax.f32 %v218_v19, %v219_v23  ;;  %s5444_s27 = smov 18   ;;  %s5537_s28 = smov 17  }
  0x5b   : > { %v363_v49 = vadd.s32 4294967293, %v349_v47  ;;  %vm364_vm3 = vcmp.ge.s32.totalorder %v362_v48, 0  ;;  %v375_v54 = vadd.s32 4294967294, %v349_v47  ;;  %vm376_vm5 = vcmp.ge.s32.totalorder %v374_v53, 0  ;;  %5619 = vst [vmem:[#allocation17_spill] sm:$0xff] %v3093_v57  ;;  %p6061_p2 = scmp.ne.s32.totalorder %s5610_s3, 0 }
  0x5c   : > { %v201_v30 = vadd.f32 %v200_v26, %v199_v20  ;;  %v207_v31 = vrot.slane %v206_v27, 1  ;;  %v215_v32 = vmax.f32 %v213_v22, %v214_v28  ;;  %v221_v33 = vrot.slane %v220_v29, 1 }
  0x5d   : > { %vm365_vm4 = vcmp.ge.s32.totalorder %v363_v49, 0  ;;  %v3081_v51 = vsel %vm364_vm3, 1.0, %v2852_v13  ;;  %vm377_vm6 = vcmp.ge.s32.totalorder %v375_v54, 0  ;;  %v3089_v55 = vsel %vm376_vm5, 1.0, %v2852_v13 }
  0x5e   : > { %v208_v34 = vadd.f32 %v207_v31, %v206_v27  ;;  %v222_v35 = vmax.f32 %v220_v29, %v221_v33  ;;  %v3084_v52 = vsel %vm365_vm4, 1.0, %v2852_v13  ;;  %v3096_v58 = vsel %vm377_vm6, 1.0, %v2852_v13 }
  0x5f   : > { %v386_v59 = vadd.s32 4294967295, %v342_v46  ;;  %v3098_v60 = vsub.s32 1, %v234_v25  ;;  %v387_v1 = vadd.s32 4294967295, %v349_v47  ;;  %v408_v4 = vadd.s32 1, %v342_v46 }
  0x60   : > { %v229_v37 = vcombine.low %v201_v30, %v208_v34  ;;  %v252_v38 = vcombine.low %v215_v32, %v222_v35  ;;  %v409_v6 = vadd.s32 1, %v349_v47  ;;  %v420_v8 = vadd.s32 2, %v342_v46 }
  0x61   : > { %5620 = vst [vmem:[#allocation18_spill] sm:$0xff] %v3098_v60  ;;  %vm388_vm7 = vcmp.ge.s32.totalorder %v386_v59, 0  ;;  %vm389_vm8 = vcmp.ge.s32.totalorder %v387_v1, 0  ;;  %vm412_vm9 = vcmp.lt.s32.totalorder %v408_v4, 16  ;;  %v421_v9 = vadd.s32 2, %v349_v47 }
  0x62   : > { %v236_v39 = vrot.slane %v229_v37, %v3066_v36  ;;  %v259_v40 = vrot.slane %v252_v38, %v3066_v36  ;;  %v3101_v62 = vsel %vm388_vm7, 1.0, %v2852_v13  ;;  %v3117_v3 = vsel %vm389_vm8, 1.0, %v2852_v13 }
  0x63   : > { %v3128_v5 = vsel %vm412_vm9, 1.0, %v2852_v13  ;;  %vm413_vm10 = vcmp.lt.s32.totalorder %v409_v6, 16  ;;  %vm424_vm11 = vcmp.lt.s32.totalorder %v420_v8, 16  ;;  %vm425_vm12 = vcmp.lt.s32.totalorder %v421_v9, 16 }
  0x64   : > { %v243_v42 = vrot.slane %v236_v39, %v3066_v36  ;;  %v266_v43 = vrot.slane %v259_v40, %v3066_v36  ;;  %5621 = vst [vmem:[#allocation19_spill] sm:$0xff] %v3128_v5  ;;  %v3135_v7 = vsel %vm413_vm10, 1.0, %v2852_v13  ;;  %v3142_v10 = vsel %vm424_vm11, 1.0, %v2852_v13 }
  0x65   : > { %5622 = vst [vmem:[#allocation20_spill] sm:$0xff] %v3142_v10  ;;  %v3145_v11 = vsel %vm425_vm12, 1.0, %v2852_v13  ;;  %v432_v12 = vadd.s32 3, %v342_v46  ;;  %v433_v15 = vadd.s32 3, %v349_v47  ;;  %vm487_vm15 = vcmask 408576  }
  0x66   : > { %249 = vst.msk [vmem:[#allocation2] sm:$0x3] %vm3070_vm2, %v243_v42  ;;  %268 = vst.msk [vmem:[#allocation3] sm:$0x3] %vm3070_vm2, %v266_v43  ;;  %vm468_vm0 = vcmask 416768   ;;  %vm506_vm1 = vcmask 400384  }
  0x67   : > { %5623 = vst [vmem:[#allocation21_spill] sm:$0xff] %v3145_v11  ;;  %vm436_vm13 = vcmp.lt.s32.totalorder %v432_v12, 16  ;;  %vm437_vm14 = vcmp.lt.s32.totalorder %v433_v15, 16  ;;  %vm525_vm3 = vcmask 392192   ;;  %vm544_vm4 = vcmask 384000  }
  0x68   : > { %v3152_v14 = vsel %vm436_vm13, 1.0, %v2852_v13  ;;  %v3159_v16 = vsel %vm437_vm14, 1.0, %v2852_v13  ;;  %vm563_vm5 = vcmask 375808   ;;  %vm582_vm6 = vcmask 367616  }
  0x69   : > { %vm5554_vm7 = vcmask 285696   ;;  %vm5555_vm8 = vcmask 277504   ;;  %vm5556_vm9 = vcmask 269312   ;;  %vm5557_vm10 = vcmask 261120  }
  0x6a   : > { %vm5558_vm11 = vcmask 252928   ;;  %vm5559_vm12 = vcmask 244736   ;;  %vm5562_vm13 = vcmask 236544   ;;  %vm734_vm14 = vcmask 154624  }
  0x6d   : > { %v328_v50 = vld [vmem:[#allocation2] sm:$0x3]  ;;  %v332_v39 = vld [vmem:[#allocation3] sm:$0x3] }
  0x6e   : > { %331 = vst.msk [vmem:[#allocation4 + $0x1] sm:$0x3] %vm3070_vm2, %v328_v50  ;;  %334 = vst.msk [vmem:[#allocation4 + $0x5] sm:$0x3] %vm3070_vm2, %v332_v39 }
  0x75   : > { %v444_v61 = vld [vmem:[#allocation4] sm:$0x7] }
  0x76   : > { %v3104_v63 = vrot.slane %v444_v61, %v3091_v56  ;;  %v3107_v0 = vrot.slane %v444_v61, %v3093_v57  ;;  %v3114_v2 = vrot.slane %v444_v61, %v3098_v60  ;;  %v934_v28 = vld [vmem:[#allocation4 + $0x1] sm:$0x7] }
  0x77   : > { %v3306_v31 = vrot.slane %v934_v28, %v3098_v60  ;;  %v3309_v32 = vrot.slane %v934_v28, %v3093_v57  ;;  %v3320_v35 = vrot.slane %v934_v28, %v3091_v56 }
  0x78   : > { %466 = vrot.lane.b32.xlu1 %v3104_v63, %s2854_s17  ;;  %462 = vrot.lane.b32.xlu0 %v3107_v0, %s2854_s17 }
  0x7c   : > { %481 = vrot.lane.b32.xlu1 %v3107_v0, %s2855_s19  ;;  %464 = vrot.lane.b32.xlu0 %v3114_v2, %s2854_s17 }
  0x80   : > { %485 = vrot.lane.b32.xlu1 %v3104_v63, %s2855_s19  ;;  %483 = vrot.lane.b32.xlu0 %v3114_v2, %s2855_s19 }
  0x84   : > { %502 = vrot.lane.b32.xlu1 %v3114_v2, %s2856_s24  ;;  %500 = vrot.lane.b32.xlu0 %v3107_v0, %s2856_s24 }
  0x88   : > { %519 = vrot.lane.b32.xlu1 %v3107_v0, %s2857_s16  ;;  %504 = vrot.lane.b32.xlu0 %v3104_v63, %s2856_s24 }
  0x8c   : > { %523 = vrot.lane.b32.xlu1 %v3104_v63, %s2857_s16  ;;  %521 = vrot.lane.b32.xlu0 %v3114_v2, %s2857_s16 }
  0x90   : > { %540 = vrot.lane.b32.xlu1 %v3114_v2, %s2858_s18  ;;  %538 = vrot.lane.b32.xlu0 %v3107_v0, %s2858_s18 }
  0x94   : > { %557 = vrot.lane.b32.xlu1 %v3107_v0, %s2859_s22  ;;  %542 = vrot.lane.b32.xlu0 %v3104_v63, %s2858_s18 }
  0x98   : > { %561 = vrot.lane.b32.xlu1 %v3104_v63, %s2859_s22  ;;  %559 = vrot.lane.b32.xlu0 %v3114_v2, %s2859_s22 }
  0x9c   : > { %578 = vrot.lane.b32.xlu1 %v3114_v2, %s2860_s23  ;;  %576 = vrot.lane.b32.xlu0 %v3107_v0, %s2860_s23 }
  0xa0   : > { %595 = vrot.lane.b32.xlu1 %v3107_v0, %s2861_s29  ;;  %580 = vrot.lane.b32.xlu0 %v3104_v63, %s2860_s23 }
  0xa4   : > { %599 = vrot.lane.b32.xlu1 %v3104_v63, %s2861_s29  ;;  %597 = vrot.lane.b32.xlu0 %v3114_v2, %s2861_s29 }
  0xa8   : > { %616 = vrot.lane.b32.xlu1 %v3114_v2, %s2862_s30  ;;  %614 = vrot.lane.b32.xlu0 %v3107_v0, %s2862_s30 }
  0xac   : > { %633 = vrot.lane.b32.xlu1 %v3107_v0, %s2863_s6  ;;  %618 = vrot.lane.b32.xlu0 %v3104_v63, %s2862_s30 }
  0xb0   : > { %637 = vrot.lane.b32.xlu1 %v3104_v63, %s2863_s6  ;;  %635 = vrot.lane.b32.xlu0 %v3114_v2, %s2863_s6 }
  0xb4   : > { %654 = vrot.lane.b32.xlu1 %v3114_v2, %s2864_s4  ;;  %652 = vrot.lane.b32.xlu0 %v3107_v0, %s2864_s4 }
  0xb8   : > { %671 = vrot.lane.b32.xlu1 %v3107_v0, %s2865_s7  ;;  %656 = vrot.lane.b32.xlu0 %v3104_v63, %s2864_s4 }
  0xbc   : > { %675 = vrot.lane.b32.xlu1 %v3104_v63, %s2865_s7  ;;  %673 = vrot.lane.b32.xlu0 %v3114_v2, %s2865_s7 }
  0xc0   : > { %692 = vrot.lane.b32.xlu1 %v3114_v2, %s5543_s8  ;;  %690 = vrot.lane.b32.xlu0 %v3107_v0, %s5543_s8 }
  0xc4   : > { %709 = vrot.lane.b32.xlu1 %v3107_v0, %s5442_s15  ;;  %694 = vrot.lane.b32.xlu0 %v3104_v63, %s5543_s8  ;;  %s3800_s8 = sld [smem:[#allocation9 + $0x13]] }
  0xc8   : > { %713 = vrot.lane.b32.xlu1 %v3104_v63, %s5442_s15  ;;  %711 = vrot.lane.b32.xlu0 %v3114_v2, %s5442_s15  ;;  %s5448_s15 = smov 16  }
  0xcc   : > { %730 = vrot.lane.b32.xlu1 %v3114_v2, %s5446_s25  ;;  %728 = vrot.lane.b32.xlu0 %v3107_v0, %s5446_s25 }
  0xd0   : > { %747 = vrot.lane.b32.xlu1 %v3107_v0, %s5444_s27  ;;  %732 = vrot.lane.b32.xlu0 %v3104_v63, %s5446_s25  ;;  %s5452_s25 = smov 14  }
  0xd4   : > { %751 = vrot.lane.b32.xlu1 %v3104_v63, %s5444_s27  ;;  %749 = vrot.lane.b32.xlu0 %v3114_v2, %s5444_s27  ;;  %s5450_s27 = smov 15  }
  0xd8   : > { %768 = vrot.lane.b32.xlu1 %v3114_v2, %s5537_s28  ;;  %766 = vrot.lane.b32.xlu0 %v3107_v0, %s5537_s28 }
  0xdc   : > { %785 = vrot.lane.b32.xlu1 %v3107_v0, %s5448_s15  ;;  %770 = vrot.lane.b32.xlu0 %v3104_v63, %s5537_s28  ;;  %s3775_s28 = sld [smem:[#allocation9 + $0xf]] }
  0xe0   : > { %789 = vrot.lane.b32.xlu1 %v3104_v63, %s5448_s15  ;;  %787 = vrot.lane.b32.xlu0 %v3114_v2, %s5448_s15  ;;  %s5454_s15 = smov 13  }
  0xe4   : > { %806 = vrot.lane.b32.xlu1 %v3114_v2, %s5450_s27  ;;  %804 = vrot.lane.b32.xlu0 %v3107_v0, %s5450_s27 }
  0xe8   : > { %823 = vrot.lane.b32.xlu1 %v3107_v0, %s5452_s25  ;;  %808 = vrot.lane.b32.xlu0 %v3104_v63, %s5450_s27  ;;  %s5460_s27 = smov 3  }
  0xea   : > { %v3249_v13 = vpop.permute.xlu1 %466  ;;  %v3251_v17 = vpop.permute.xlu0 %462 }
  0xec   : > { %827 = vrot.lane.b32.xlu1 %v3104_v63, %s5452_s25  ;;  %825 = vrot.lane.b32.xlu0 %v3114_v2, %s5452_s25  ;;  %s5456_s25 = smov 2  }
  0xee   : > { %v3257_v18 = vpop.permute.xlu1 %481  ;;  %v3259_v19 = vpop.permute.xlu0 %464 }
  0xf0   : > { %844 = vrot.lane.b32.xlu1 %v3114_v2, %s5454_s15  ;;  %842 = vrot.lane.b32.xlu0 %v3107_v0, %s5454_s15 }
  0xf2   : > { %v3265_v20 = vpop.permute.xlu1 %485  ;;  %v3267_v21 = vpop.permute.xlu0 %483 }
  0xf4   : > { %861 = vrot.lane.b32.xlu1 %v3107_v0, %s5460_s27  ;;  %846 = vrot.lane.b32.xlu0 %v3104_v63, %s5454_s15  ;;  %s5458_s15 = smov 1  }
  0xf6   : > { %v3273_v22 = vpop.permute.xlu1 %502  ;;  %v3275_v23 = vpop.permute.xlu0 %500 }
  0xf8   : > { %865 = vrot.lane.b32.xlu1 %v3104_v63, %s5460_s27  ;;  %863 = vrot.lane.b32.xlu0 %v3114_v2, %s5460_s27  ;;  %s5466_s27 = smov 125  }
  0xfa   : > { %v3281_v24 = vpop.permute.xlu1 %519  ;;  %v3283_v25 = vpop.permute.xlu0 %504 }
  0xfc   : > { %882 = vrot.lane.b32.xlu1 %v3114_v2, %s5456_s25  ;;  %880 = vrot.lane.b32.xlu0 %v3107_v0, %s5456_s25 }
  0xfe   : > { %v3289_v26 = vpop.permute.xlu1 %523  ;;  %v3291_v27 = vpop.permute.xlu0 %521 }
 0x100   : > { %899 = vrot.lane.b32.xlu1 %v3107_v0, %s5458_s15  ;;  %884 = vrot.lane.b32.xlu0 %v3104_v63, %s5456_s25  ;;  %s5462_s25 = smov 127  }
 0x102   : > { %v3297_v29 = vpop.permute.xlu1 %540  ;;  %v3299_v30 = vpop.permute.xlu0 %538 }
 0x104   : > { %903 = vrot.lane.b32.xlu1 %v3104_v63, %s5458_s15  ;;  %901 = vrot.lane.b32.xlu0 %v3114_v2, %s5458_s15  ;;  %s5464_s15 = smov 126  }
 0x106   : > { %v3311_v33 = vpop.permute.xlu1 %557  ;;  %v3313_v34 = vpop.permute.xlu0 %542 }
 0x108   : > { %954 = vrot.lane.b32.xlu1 %v3306_v31, %s5462_s25  ;;  %952 = vrot.lane.b32.xlu0 %v3309_v32, %s5462_s25 }
 0x10a   : > { %v3322_v37 = vpop.permute.xlu1 %561  ;;  %v3324_v38 = vpop.permute.xlu0 %559 }
 0x10c   : > { %971 = vrot.lane.b32.xlu1 %v3309_v32, %s5464_s15  ;;  %956 = vrot.lane.b32.xlu0 %v3320_v35, %s5462_s25  ;;  %s5468_s25 = smov 115  }
 0x10e   : > { %v3330_v40 = vpop.permute.xlu1 %578  ;;  %v3332_v42 = vpop.permute.xlu0 %576 }
 0x110   : > { %975 = vrot.lane.b32.xlu1 %v3320_v35, %s5464_s15  ;;  %973 = vrot.lane.b32.xlu0 %v3306_v31, %s5464_s15  ;;  %s5470_s15 = smov 114  }
 0x112   : > { %v3340_v43 = vpop.permute.xlu1 %595  ;;  %v3342_v44 = vpop.permute.xlu0 %580 }
 0x114   : > { %992 = vrot.lane.b32.xlu1 %v3306_v31, %s5466_s27  ;;  %990 = vrot.lane.b32.xlu0 %v3309_v32, %s5466_s27 }
 0x116   : > { %v3348_v45 = vpop.permute.xlu1 %599  ;;  %v3350_v46 = vpop.permute.xlu0 %597 }
 0x117   : > { %5624 = vst [vmem:[#allocation22_spill] sm:$0xff] %v3348_v45  ;;  %v744_v45 = vstv %s3775_s28  ;;  %s3980_s28 = sld [smem:[#allocation9 + $0x18]] }
 0x118   : > { %1009 = vrot.lane.b32.xlu1 %v3309_v32, %s5468_s25  ;;  %994 = vrot.lane.b32.xlu0 %v3320_v35, %s5466_s27  ;;  %s5472_s27 = smov 113  }
 0x11a   : > { %v3356_v47 = vpop.permute.xlu1 %616  ;;  %v3358_v48 = vpop.permute.xlu0 %614 }
 0x11b   : > { %5625 = vst [vmem:[#allocation23_spill] sm:$0xff] %v3358_v48  ;;  %v820_v48 = vstv %s3800_s8  ;;  %s3911_s8 = sld [smem:[#allocation9 + $0x17]] }
 0x11c   : > { %1013 = vrot.lane.b32.xlu1 %v3320_v35, %s5468_s25  ;;  %1011 = vrot.lane.b32.xlu0 %v3306_v31, %s5468_s25  ;;  %s5474_s25 = smov 112  }
 0x11e   : > { %v3364_v49 = vpop.permute.xlu1 %633  ;;  %v3366_v50 = vpop.permute.xlu0 %618 }
 0x11f   : > { %5626 = vst [vmem:[#allocation24_spill] sm:$0xff] %v3364_v49  ;;  %5627 = vst [vmem:[#allocation25_spill] sm:$0xff] %v3366_v50 }
 0x120   : > { %1030 = vrot.lane.b32.xlu1 %v3306_v31, %s5470_s15  ;;  %1028 = vrot.lane.b32.xlu0 %v3309_v32, %s5470_s15 }
 0x122   : > { %v3372_v53 = vpop.permute.xlu1 %637  ;;  %v3374_v54 = vpop.permute.xlu0 %635 }
 0x123   : > { %5628 = vst [vmem:[#allocation26_spill] sm:$0xff] %v3372_v53  ;;  %5629 = vst [vmem:[#allocation27_spill] sm:$0xff] %v3374_v54 }
 0x124   : > { %1047 = vrot.lane.b32.xlu1 %v3309_v32, %s5472_s27  ;;  %1032 = vrot.lane.b32.xlu0 %v3320_v35, %s5470_s15  ;;  %s5479_s15 = smov 111  }
 0x126   : > { %v3380_v59 = vpop.permute.xlu1 %654  ;;  %v3382_v61 = vpop.permute.xlu0 %652 }
 0x127   : > { %5630 = vst [vmem:[#allocation28_spill] sm:$0xff] %v3380_v59  ;;  %5631 = vst [vmem:[#allocation29_spill] sm:$0xff] %v3382_v61 }
 0x128   : > { %1051 = vrot.lane.b32.xlu1 %v3320_v35, %s5472_s27  ;;  %1049 = vrot.lane.b32.xlu0 %v3306_v31, %s5472_s27  ;;  %s5481_s27 = smov 110  }
 0x12a   : > { %v3388_v63 = vpop.permute.xlu1 %671  ;;  %v3390_v0 = vpop.permute.xlu0 %656 }
 0x12b   : > { %5632 = vst [vmem:[#allocation30_spill] sm:$0xff] %v3388_v63  ;;  %5633 = vst [vmem:[#allocation31_spill] sm:$0xff] %v3390_v0 }
 0x12c   : > { %1068 = vrot.lane.b32.xlu1 %v3306_v31, %s5474_s25  ;;  %1066 = vrot.lane.b32.xlu0 %v3309_v32, %s5474_s25 }
 0x12e   : > { %v3396_v1 = vpop.permute.xlu1 %675  ;;  %v3398_v2 = vpop.permute.xlu0 %673 }
 0x12f   : > { %5634 = vst [vmem:[#allocation32_spill] sm:$0xff] %v3396_v1  ;;  %5635 = vst [vmem:[#allocation33_spill] sm:$0xff] %v3398_v2 }
 0x130   : > { %1085 = vrot.lane.b32.xlu1 %v3309_v32, %s5479_s15  ;;  %1070 = vrot.lane.b32.xlu0 %v3320_v35, %s5474_s25  ;;  %s5484_s25 = smov 109  }
 0x132   : > { %v3404_v4 = vpop.permute.xlu1 %692  ;;  %v3406_v6 = vpop.permute.xlu0 %690 }
 0x133   : > { %5636 = vst [vmem:[#allocation34_spill] sm:$0xff] %v3404_v4  ;;  %5637 = vst [vmem:[#allocation35_spill] sm:$0xff] %v3406_v6 }
 0x134   : > { %1089 = vrot.lane.b32.xlu1 %v3320_v35, %s5479_s15  ;;  %1087 = vrot.lane.b32.xlu0 %v3306_v31, %s5479_s15  ;;  %s5487_s15 = smov 99  }
 0x136   : > { %v3412_v8 = vpop.permute.xlu1 %709  ;;  %v3414_v9 = vpop.permute.xlu0 %694 }
 0x137   : > { %5638 = vst [vmem:[#allocation36_spill] sm:$0xff] %v3412_v8  ;;  %5639 = vst [vmem:[#allocation37_spill] sm:$0xff] %v3414_v9 }
 0x138   : > { %1106 = vrot.lane.b32.xlu1 %v3306_v31, %s5481_s27  ;;  %1104 = vrot.lane.b32.xlu0 %v3309_v32, %s5481_s27 }
 0x13a   : > { %v3420_v12 = vpop.permute.xlu1 %713  ;;  %v3422_v15 = vpop.permute.xlu0 %711 }
 0x13b   : > { %5640 = vst [vmem:[#allocation38_spill] sm:$0xff] %v3420_v12  ;;  %5641 = vst [vmem:[#allocation39_spill] sm:$0xff] %v3422_v15 }
 0x13c   : > { %1123 = vrot.lane.b32.xlu1 %v3309_v32, %s5484_s25  ;;  %1108 = vrot.lane.b32.xlu0 %v3320_v35, %s5481_s27  ;;  %s5490_s27 = smov 98  }
 0x13e   : > { %v3428_v28 = vpop.permute.xlu1 %730  ;;  %v3430_v39 = vpop.permute.xlu0 %728 }
 0x13f   : > { %5642 = vst [vmem:[#allocation40_spill] sm:$0xff] %v3428_v28  ;;  %5643 = vst [vmem:[#allocation41_spill] sm:$0xff] %v3430_v39 }
 0x140   : > { %1127 = vrot.lane.b32.xlu1 %v3320_v35, %s5484_s25  ;;  %1125 = vrot.lane.b32.xlu0 %v3306_v31, %s5484_s25  ;;  %s5493_s25 = smov 97  }
 0x142   : > { %v3436_v41 = vpop.permute.xlu1 %747  ;;  %v3438_v36 = vpop.permute.xlu0 %732 }
 0x143   : > { %5644 = vst [vmem:[#allocation42_spill] sm:$0xff] %v3436_v41  ;;  %5645 = vst [vmem:[#allocation43_spill] sm:$0xff] %v3438_v36 }
 0x144   : > { %1144 = vrot.lane.b32.xlu1 %v3306_v31, %s5487_s15  ;;  %1142 = vrot.lane.b32.xlu0 %v3309_v32, %s5487_s15 }
 0x146   : > { %v3444_v12 = vpop.permute.xlu1 %751  ;;  %v3446_v39 = vpop.permute.xlu0 %749 }
 0x147   : > { %5646 = vst [vmem:[#allocation44_spill] sm:$0xff] %v3444_v12  ;;  %5647 = vst [vmem:[#allocation45_spill] sm:$0xff] %v3446_v39 }
 0x148   : > { %1161 = vrot.lane.b32.xlu1 %v3309_v32, %s5490_s27  ;;  %1146 = vrot.lane.b32.xlu0 %v3320_v35, %s5487_s15  ;;  %s5496_s15 = smov 96  }
 0x14a   : > { %v3452_v41 = vpop.permute.xlu1 %768  ;;  %v3454_v36 = vpop.permute.xlu0 %766 }
 0x14b   : > { %5648 = vst [vmem:[#allocation46_spill] sm:$0xff] %v3452_v41  ;;  %5649 = vst [vmem:[#allocation47_spill] sm:$0xff] %v3454_v36 }
 0x14c   : > { %1165 = vrot.lane.b32.xlu1 %v3320_v35, %s5490_s27  ;;  %1163 = vrot.lane.b32.xlu0 %v3306_v31, %s5490_s27  ;;  %s5499_s27 = smov 95  }
 0x14e   : > { %v3460_v12 = vpop.permute.xlu1 %785  ;;  %v3462_v39 = vpop.permute.xlu0 %770 }
 0x14f   : > { %5650 = vst [vmem:[#allocation48_spill] sm:$0xff] %v3460_v12  ;;  %5651 = vst [vmem:[#allocation49_spill] sm:$0xff] %v3462_v39 }
 0x150   : > { %1182 = vrot.lane.b32.xlu1 %v3306_v31, %s5493_s25  ;;  %1180 = vrot.lane.b32.xlu0 %v3309_v32, %s5493_s25 }
 0x152   : > { %v3468_v41 = vpop.permute.xlu1 %789  ;;  %v3470_v36 = vpop.permute.xlu0 %787 }
 0x153   : > { %5652 = vst [vmem:[#allocation50_spill] sm:$0xff] %v3468_v41  ;;  %5653 = vst [vmem:[#allocation51_spill] sm:$0xff] %v3470_v36 }
 0x154   : > { %1199 = vrot.lane.b32.xlu1 %v3309_v32, %s5496_s15  ;;  %1184 = vrot.lane.b32.xlu0 %v3320_v35, %s5493_s25  ;;  %s5502_s25 = smov 94  }
 0x156   : > { %v3476_v12 = vpop.permute.xlu1 %806  ;;  %v3478_v39 = vpop.permute.xlu0 %804 }
 0x157   : > { %5654 = vst [vmem:[#allocation52_spill] sm:$0xff] %v3476_v12  ;;  %5655 = vst [vmem:[#allocation53_spill] sm:$0xff] %v3478_v39 }
 0x158   : > { %1203 = vrot.lane.b32.xlu1 %v3320_v35, %s5496_s15  ;;  %1201 = vrot.lane.b32.xlu0 %v3306_v31, %s5496_s15  ;;  %s5505_s15 = smov 93  }
 0x15a   : > { %v3484_v41 = vpop.permute.xlu1 %823  ;;  %v3486_v36 = vpop.permute.xlu0 %808 }
 0x15b   : > { %5656 = vst [vmem:[#allocation54_spill] sm:$0xff] %v3484_v41  ;;  %5657 = vst [vmem:[#allocation55_spill] sm:$0xff] %v3486_v36 }
 0x15c   : > { %1220 = vrot.lane.b32.xlu1 %v3306_v31, %s5499_s27  ;;  %1218 = vrot.lane.b32.xlu0 %v3309_v32, %s5499_s27 }
 0x15e   : > { %v3492_v12 = vpop.permute.xlu1 %827  ;;  %v3494_v39 = vpop.permute.xlu0 %825 }
 0x15f   : > { %5658 = vst [vmem:[#allocation56_spill] sm:$0xff] %v3492_v12  ;;  %5659 = vst [vmem:[#allocation57_spill] sm:$0xff] %v3494_v39 }
 0x160   : > { %1237 = vrot.lane.b32.xlu1 %v3309_v32, %s5502_s25  ;;  %1222 = vrot.lane.b32.xlu0 %v3320_v35, %s5499_s27  ;;  %s5508_s27 = smov 83  }
 0x162   : > { %v3500_v41 = vpop.permute.xlu1 %844  ;;  %v3502_v36 = vpop.permute.xlu0 %842 }
 0x163   : > { %5660 = vst [vmem:[#allocation58_spill] sm:$0xff] %v3500_v41  ;;  %5661 = vst [vmem:[#allocation59_spill] sm:$0xff] %v3502_v36 }
 0x164   : > { %1241 = vrot.lane.b32.xlu1 %v3320_v35, %s5502_s25  ;;  %1239 = vrot.lane.b32.xlu0 %v3306_v31, %s5502_s25  ;;  %s5511_s25 = smov 82  }
 0x166   : > { %v3508_v12 = vpop.permute.xlu1 %861  ;;  %v3510_v39 = vpop.permute.xlu0 %846 }
 0x167   : > { %5662 = vst [vmem:[#allocation60_spill] sm:$0xff] %v3508_v12  ;;  %5663 = vst [vmem:[#allocation61_spill] sm:$0xff] %v3510_v39 }
 0x168   : > { %1258 = vrot.lane.b32.xlu1 %v3306_v31, %s5505_s15  ;;  %1256 = vrot.lane.b32.xlu0 %v3309_v32, %s5505_s15 }
 0x16a   : > { %v3516_v41 = vpop.permute.xlu1 %865  ;;  %v3518_v36 = vpop.permute.xlu0 %863 }
 0x16b   : > { %5664 = vst [vmem:[#allocation62_spill] sm:$0xff] %v3516_v41  ;;  %5665 = vst [vmem:[#allocation63_spill] sm:$0xff] %v3518_v36 }
 0x16c   : > { %1275 = vrot.lane.b32.xlu1 %v3309_v32, %s5508_s27  ;;  %1260 = vrot.lane.b32.xlu0 %v3320_v35, %s5505_s15  ;;  %s5514_s15 = smov 81  }
 0x16e   : > { %v3524_v12 = vpop.permute.xlu1 %882  ;;  %v3526_v39 = vpop.permute.xlu0 %880 }
 0x16f   : > { %5666 = vst [vmem:[#allocation64_spill] sm:$0xff] %v3524_v12  ;;  %5667 = vst [vmem:[#allocation65_spill] sm:$0xff] %v3526_v39 }
 0x170   : > { %1279 = vrot.lane.b32.xlu1 %v3320_v35, %s5508_s27  ;;  %1277 = vrot.lane.b32.xlu0 %v3306_v31, %s5508_s27  ;;  %s5517_s27 = smov 80  }
 0x172   : > { %v3532_v41 = vpop.permute.xlu1 %899  ;;  %v3534_v36 = vpop.permute.xlu0 %884 }
 0x173   : > { %5668 = vst [vmem:[#allocation66_spill] sm:$0xff] %v3532_v41  ;;  %5669 = vst [vmem:[#allocation67_spill] sm:$0xff] %v3534_v36 }
 0x174   : > { %1296 = vrot.lane.b32.xlu1 %v3306_v31, %s5511_s25  ;;  %1294 = vrot.lane.b32.xlu0 %v3309_v32, %s5511_s25 }
 0x176   : > { %v3540_v12 = vpop.permute.xlu1 %903  ;;  %v3542_v39 = vpop.permute.xlu0 %901 }
 0x177   : > { %5670 = vst [vmem:[#allocation68_spill] sm:$0xff] %v3540_v12  ;;  %5671 = vst [vmem:[#allocation69_spill] sm:$0xff] %v3542_v39 }
 0x178   : > { %1313 = vrot.lane.b32.xlu1 %v3309_v32, %s5514_s15  ;;  %1298 = vrot.lane.b32.xlu0 %v3320_v35, %s5511_s25  ;;  %s5535_s25 = smov 79  }
 0x17a   : > { %v3548_v41 = vpop.permute.xlu1 %954  ;;  %v3550_v36 = vpop.permute.xlu0 %952 }
 0x17b   : > { %5672 = vst [vmem:[#allocation70_spill] sm:$0xff] %v3548_v41  ;;  %5673 = vst [vmem:[#allocation71_spill] sm:$0xff] %v3550_v36 }
 0x17c   : > { %1317 = vrot.lane.b32.xlu1 %v3320_v35, %s5514_s15  ;;  %1315 = vrot.lane.b32.xlu0 %v3306_v31, %s5514_s15  ;;  %s5532_s15 = smov 78  }
 0x17e   : > { %v3556_v12 = vpop.permute.xlu1 %971  ;;  %v3558_v39 = vpop.permute.xlu0 %956 }
 0x17f   : > { %5674 = vst [vmem:[#allocation72_spill] sm:$0xff] %v3556_v12  ;;  %5675 = vst [vmem:[#allocation73_spill] sm:$0xff] %v3558_v39 }
 0x180   : > { %1334 = vrot.lane.b32.xlu1 %v3306_v31, %s5517_s27  ;;  %1332 = vrot.lane.b32.xlu0 %v3309_v32, %s5517_s27 }
 0x182   : > { %v3564_v41 = vpop.permute.xlu1 %975  ;;  %v3566_v36 = vpop.permute.xlu0 %973 }
 0x183   : > { %5676 = vst [vmem:[#allocation74_spill] sm:$0xff] %v3564_v41  ;;  %5677 = vst [vmem:[#allocation75_spill] sm:$0xff] %v3566_v36 }
 0x184   : > { %1351 = vrot.lane.b32.xlu1 %v3309_v32, %s5535_s25  ;;  %1336 = vrot.lane.b32.xlu0 %v3320_v35, %s5517_s27  ;;  %s5529_s27 = smov 77  }
 0x186   : > { %v3572_v12 = vpop.permute.xlu1 %992  ;;  %v3574_v39 = vpop.permute.xlu0 %990 }
 0x187   : > { %5678 = vst [vmem:[#allocation76_spill] sm:$0xff] %v3572_v12  ;;  %5679 = vst [vmem:[#allocation77_spill] sm:$0xff] %v3574_v39 }
 0x188   : > { %1355 = vrot.lane.b32.xlu1 %v3320_v35, %s5535_s25  ;;  %1353 = vrot.lane.b32.xlu0 %v3306_v31, %s5535_s25  ;;  %s3761_s25 = sld [smem:[#allocation9 + $0xc]] }
 0x18a   : > { %v3580_v41 = vpop.permute.xlu1 %1009  ;;  %v3582_v36 = vpop.permute.xlu0 %994 }
 0x18b   : > { %5680 = vst [vmem:[#allocation78_spill] sm:$0xff] %v3580_v41  ;;  %5681 = vst [vmem:[#allocation79_spill] sm:$0xff] %v3582_v36  ;;  %v1404_v41 = vld [vmem:[#allocation4 + $0x4] sm:$0x7] }
 0x18c   : > { %1372 = vrot.lane.b32.xlu1 %v3306_v31, %s5532_s15  ;;  %1370 = vrot.lane.b32.xlu0 %v3309_v32, %s5532_s15 }
 0x18e   : > { %v3588_v12 = vpop.permute.xlu1 %1013  ;;  %v3590_v39 = vpop.permute.xlu0 %1011  ;;  %v687_v54 = vstv %s3761_s25  ;;  %s5736_s25 = smov 30  }
 0x18f   : > { %5682 = vst [vmem:[#allocation80_spill] sm:$0xff] %v3588_v12  ;;  %5683 = vst [vmem:[#allocation81_spill] sm:$0xff] %v3590_v39  ;;  %v3605_v12 = vrot.slane %v1404_v41, %v3098_v60  ;;  %v3608_v39 = vrot.slane %v1404_v41, %v3093_v57 }
 0x190   : > { %1389 = vrot.lane.b32.xlu1 %v3309_v32, %s5529_s27  ;;  %1374 = vrot.lane.b32.xlu0 %v3320_v35, %s5532_s15  ;;  %s3758_s15 = sld [smem:[#allocation9 + $0xb]] }
 0x192   : > { %v3596_v36 = vpop.permute.xlu1 %1030  ;;  %v3598_v28 = vpop.permute.xlu0 %1028 }
 0x193   : > { %5684 = vst [vmem:[#allocation82_spill] sm:$0xff] %v3596_v36  ;;  %5685 = vst [vmem:[#allocation83_spill] sm:$0xff] %v3598_v28 }
 0x194   : > { %1393 = vrot.lane.b32.xlu1 %v3320_v35, %s5529_s27  ;;  %1391 = vrot.lane.b32.xlu0 %v3306_v31, %s5529_s27  ;;  %v3619_v35 = vrot.slane %v1404_v41, %v3091_v56  ;;  %s3751_s27 = sld [smem:[#allocation9 + $0x9]] }
 0x196   : > { %v3610_v32 = vpop.permute.xlu1 %1047  ;;  %v3612_v9 = vpop.permute.xlu0 %1032 }
 0x197   : > { %5686 = vst [vmem:[#allocation84_spill] sm:$0xff] %v3610_v32  ;;  %5687 = vst [vmem:[#allocation85_spill] sm:$0xff] %v3612_v9 }
 0x198   : > { %1424 = vrot.lane.b32.xlu1 %v3605_v12, %s2854_s17  ;;  %1422 = vrot.lane.b32.xlu0 %v3608_v39, %s2854_s17 }
 0x19a   : > { %v3621_v31 = vpop.permute.xlu1 %1051  ;;  %v3623_v28 = vpop.permute.xlu0 %1049  ;;  %v630_v53 = vstv %s3751_s27  ;;  %s5745_s27 = smov 29  }
 0x19b   : > { %5688 = vst [vmem:[#allocation86_spill] sm:$0xff] %v3621_v31  ;;  %5689 = vst [vmem:[#allocation87_spill] sm:$0xff] %v3623_v28 }
 0x19c   : > { %1440 = vrot.lane.b32.xlu1 %v3608_v39, %s2855_s19  ;;  %1426 = vrot.lane.b32.xlu0 %v3619_v35, %s2854_s17  ;;  %s3721_s17 = sld [smem:[#allocation9]] }
 0x19e   : > { %v3629_v32 = vpop.permute.xlu1 %1068  ;;  %v3631_v9 = vpop.permute.xlu0 %1066 }
 0x19f   : > { %5690 = vst [vmem:[#allocation88_spill] sm:$0xff] %v3629_v32  ;;  %5691 = vst [vmem:[#allocation89_spill] sm:$0xff] %v3631_v9 }
 0x1a0   : > { %1444 = vrot.lane.b32.xlu1 %v3619_v35, %s2855_s19  ;;  %1442 = vrot.lane.b32.xlu0 %v3605_v12, %s2855_s19  ;;  %s3723_s19 = sld [smem:[#allocation9 + $0x1]] }
 0x1a2   : > { %v3637_v41 = vpop.permute.xlu1 %1085  ;;  %v3639_v56 = vpop.permute.xlu0 %1070 }
 0x1a3   : > { %5692 = vst [vmem:[#allocation90_spill] sm:$0xff] %v3637_v41  ;;  %5693 = vst [vmem:[#allocation91_spill] sm:$0xff] %v3639_v56 }
 0x1a4   : > { %1460 = vrot.lane.b32.xlu1 %v3605_v12, %s2856_s24  ;;  %1458 = vrot.lane.b32.xlu0 %v3608_v39, %s2856_s24 }
 0x1a6   : > { %v3645_v31 = vpop.permute.xlu1 %1089  ;;  %v3647_v32 = vpop.permute.xlu0 %1087 }
 0x1a7   : > { %5694 = vst [vmem:[#allocation92_spill] sm:$0xff] %v3645_v31  ;;  %5695 = vst [vmem:[#allocation93_spill] sm:$0xff] %v3647_v32 }
 0x1a8   : > { %1476 = vrot.lane.b32.xlu1 %v3608_v39, %s2857_s16  ;;  %1462 = vrot.lane.b32.xlu0 %v3619_v35, %s2856_s24  ;;  %s3729_s24 = sld [smem:[#allocation9 + $0x2]] }
 0x1aa   : > { %v3653_v9 = vpop.permute.xlu1 %1106  ;;  %v3655_v41 = vpop.permute.xlu0 %1104 }
 0x1ab   : > { %5696 = vst [vmem:[#allocation94_spill] sm:$0xff] %v3653_v9  ;;  %5697 = vst [vmem:[#allocation95_spill] sm:$0xff] %v3655_v41 }
 0x1ac   : > { %1480 = vrot.lane.b32.xlu1 %v3619_v35, %s2857_s16  ;;  %1478 = vrot.lane.b32.xlu0 %v3605_v12, %s2857_s16  ;;  %s3735_s16 = sld [smem:[#allocation9 + $0x4]] }
 0x1ae   : > { %v3661_v56 = vpop.permute.xlu1 %1123  ;;  %v3663_v31 = vpop.permute.xlu0 %1108 }
 0x1af   : > { %5698 = vst [vmem:[#allocation96_spill] sm:$0xff] %v3661_v56  ;;  %5699 = vst [vmem:[#allocation97_spill] sm:$0xff] %v3663_v31 }
 0x1b0   : > { %1496 = vrot.lane.b32.xlu1 %v3605_v12, %s2858_s18  ;;  %1494 = vrot.lane.b32.xlu0 %v3608_v39, %s2858_s18 }
 0x1b2   : > { %v3669_v32 = vpop.permute.xlu1 %1127  ;;  %v3671_v9 = vpop.permute.xlu0 %1125  ;;  %v535_v15 = vstv %s3735_s16  ;;  %s3819_s16 = sld [smem:[#allocation9 + $0x14]] }
 0x1b3   : > { %5700 = vst [vmem:[#allocation98_spill] sm:$0xff] %v3669_v32  ;;  %5701 = vst [vmem:[#allocation99_spill] sm:$0xff] %v3671_v9  ;;  %v3812_v0 = vmul.f32 %v3128_v5, %v535_v15  ;;  %v3815_v63 = vmul.f32 %v3135_v7, %v535_v15  ;;  %v668_v15 = vstv %s3758_s15  ;;  %s3885_s15 = sld [smem:[#allocation9 + $0xa]] }
 0x1b4   : > { %1512 = vrot.lane.b32.xlu1 %v3608_v39, %s2859_s22  ;;  %1498 = vrot.lane.b32.xlu0 %v3619_v35, %s2858_s18  ;;  %s3737_s18 = sld [smem:[#allocation9 + $0x5]]  ;;  %v3865_v60 = vmul.f32 %v3128_v5, %v668_v15 }
 0x1b6   : > { %v3677_v41 = vpop.permute.xlu1 %1144  ;;  %v3679_v56 = vpop.permute.xlu0 %1142  ;;  %5729 = vst [vmem:[#allocation127_spill] sm:$0xff] %v3865_v60 }
 0x1b7   : > { %5702 = vst [vmem:[#allocation100_spill] sm:$0xff] %v3677_v41  ;;  %5703 = vst [vmem:[#allocation101_spill] sm:$0xff] %v3679_v56 }
 0x1b8   : > { %1516 = vrot.lane.b32.xlu1 %v3619_v35, %s2859_s22  ;;  %1514 = vrot.lane.b32.xlu0 %v3605_v12, %s2859_s22  ;;  %s3739_s22 = sld [smem:[#allocation9 + $0x6]] }
 0x1ba   : > { %v3685_v31 = vpop.permute.xlu1 %1161  ;;  %v3687_v32 = vpop.permute.xlu0 %1146 }
 0x1bb   : > { %5704 = vst [vmem:[#allocation102_spill] sm:$0xff] %v3685_v31  ;;  %5705 = vst [vmem:[#allocation103_spill] sm:$0xff] %v3687_v32 }
 0x1bc   : > { %1532 = vrot.lane.b32.xlu1 %v3605_v12, %s2860_s23  ;;  %1530 = vrot.lane.b32.xlu0 %v3608_v39, %s2860_s23 }
 0x1be   : > { %v3693_v9 = vpop.permute.xlu1 %1165  ;;  %v3695_v41 = vpop.permute.xlu0 %1163 }
 0x1bf   : > { %5706 = vst [vmem:[#allocation104_spill] sm:$0xff] %v3693_v9  ;;  %5707 = vst [vmem:[#allocation105_spill] sm:$0xff] %v3695_v41 }
 0x1c0   : > { %1548 = vrot.lane.b32.xlu1 %v3608_v39, %s2861_s29  ;;  %1534 = vrot.lane.b32.xlu0 %v3619_v35, %s2860_s23  ;;  %s3745_s23 = sld [smem:[#allocation9 + $0x3]] }
 0x1c2   : > { %v3701_v56 = vpop.permute.xlu1 %1182  ;;  %v3703_v31 = vpop.permute.xlu0 %1180 }
 0x1c3   : > { %5708 = vst [vmem:[#allocation106_spill] sm:$0xff] %v3701_v56  ;;  %5709 = vst [vmem:[#allocation107_spill] sm:$0xff] %v3703_v31  ;;  %v497_v31 = vstv %s3729_s24  ;;  %s3798_s24 = sld [smem:[#allocation9 + $0x12]] }
 0x1c4   : > { %1552 = vrot.lane.b32.xlu1 %v3619_v35, %s2861_s29  ;;  %1550 = vrot.lane.b32.xlu0 %v3605_v12, %s2861_s29  ;;  %s3747_s29 = sld [smem:[#allocation9 + $0x7]] }
 0x1c6   : > { %v3709_v32 = vpop.permute.xlu1 %1199  ;;  %v3711_v9 = vpop.permute.xlu0 %1184 }
 0x1c7   : > { %5710 = vst [vmem:[#allocation108_spill] sm:$0xff] %v3709_v32  ;;  %5711 = vst [vmem:[#allocation109_spill] sm:$0xff] %v3711_v9 }
 0x1c8   : > { %1568 = vrot.lane.b32.xlu1 %v3605_v12, %s2862_s30  ;;  %1566 = vrot.lane.b32.xlu0 %v3608_v39, %s2862_s30 }
 0x1ca   : > { %v3717_v41 = vpop.permute.xlu1 %1203  ;;  %v3719_v56 = vpop.permute.xlu0 %1201  ;;  %v592_v4 = vstv %s3747_s29  ;;  %s4059_s29 = sld [smem:[#allocation9 + $0x11]] }
 0x1cb   : > { %5712 = vst [vmem:[#allocation110_spill] sm:$0xff] %v3717_v41  ;;  %5713 = vst [vmem:[#allocation111_spill] sm:$0xff] %v3719_v56  ;;  %v446_v41 = vstv %s3721_s17  ;;  %v478_v56 = vstv %s3723_s19  ;;  %s3773_s17 = sld [smem:[#allocation9 + $0xe]]  ;;  %s3788_s19 = sld [smem:[#allocation9 + $0x10]]  ;;  %v3844_v49 = vmul.f32 %v3084_v52, %v592_v4 }
 0x1cc   : > { %1584 = vrot.lane.b32.xlu1 %v3608_v39, %s2863_s6  ;;  %1570 = vrot.lane.b32.xlu0 %v3619_v35, %s2862_s30  ;;  %s3749_s30 = sld [smem:[#allocation9 + $0x8]]  ;;  %v3782_v36 = vmul.f32 %v3084_v52, %v446_v41  ;;  %v3785_v8 = vmul.f32 %v3089_v55, %v478_v56  ;;  %v3791_v1 = vmul.f32 %v3096_v58, %v478_v56 }
 0x1cd   : > { %v3807_v56 = vmul.f32 %v3117_v3, %v497_v31  ;;  %5724 = vst [vmem:[#allocation122_spill] sm:$0xff] %v3844_v49  ;;  %v3862_v49 = vmul.f32 %v3117_v3, %v630_v53 }
 0x1ce   : > { %v3731_v32 = vpop.permute.xlu1 %1220  ;;  %v3733_v9 = vpop.permute.xlu0 %1218 }
 0x1cf   : > { %5714 = vst [vmem:[#allocation112_spill] sm:$0xff] %v3731_v32  ;;  %5715 = vst [vmem:[#allocation113_spill] sm:$0xff] %v3733_v9 }
 0x1d0   : > { %1588 = vrot.lane.b32.xlu1 %v3619_v35, %s2863_s6  ;;  %1586 = vrot.lane.b32.xlu0 %v3605_v12, %s2863_s6  ;;  %s3768_s6 = sld [smem:[#allocation9 + $0xd]]  ;;  %5728 = vst [vmem:[#allocation126_spill] sm:$0xff] %v3862_v49 }
 0x1d1   : > { %v763_v49 = vstv %s3788_s19  ;;  %s5782_s19 = smov 17  }
 0x1d2   : > { %v3753_v9 = vpop.permute.xlu1 %1237  ;;  %v3755_v32 = vpop.permute.xlu0 %1222  ;;  %v611_v2 = vstv %s3749_s30  ;;  %s5757_s30 = smov 18  }
 0x1d3   : > { %5716 = vst [vmem:[#allocation114_spill] sm:$0xff] %v3753_v9  ;;  %5717 = vst [vmem:[#allocation115_spill] sm:$0xff] %v3755_v32  ;;  %v3771_v9 = vmul.f32 %v3081_v51, %v446_v41  ;;  %v573_v41 = vstv %s3739_s22  ;;  %s5753_s22 = smov 19  }
 0x1d4   : > { %1604 = vrot.lane.b32.xlu1 %v3605_v12, %s2864_s4  ;;  %1602 = vrot.lane.b32.xlu0 %v3608_v39, %s2864_s4  ;;  %v3832_v50 = vmul.f32 %v3152_v14, %v573_v41 }
 0x1d6   : > { %v3777_v32 = vpop.permute.xlu1 %1241  ;;  %v3779_v28 = vpop.permute.xlu0 %1239 }
 0x1d7   : > { %5718 = vst [vmem:[#allocation116_spill] sm:$0xff] %v3777_v32  ;;  %5719 = vst [vmem:[#allocation117_spill] sm:$0xff] %v3779_v28  ;;  %v3794_v32 = vmul.f32 %v3101_v62, %v497_v31  ;;  %v554_v28 = vstv %s3737_s18  ;;  %s4018_s18 = sld [smem:[#allocation9 + $0x19]] }
 0x1d8   : > { %1620 = vrot.lane.b32.xlu1 %v3608_v39, %s2865_s7  ;;  %1606 = vrot.lane.b32.xlu0 %v3619_v35, %s2864_s4  ;;  %v3826_v31 = vmul.f32 %v3142_v10, %v554_v28  ;;  %v3829_v6 = vmul.f32 %v3145_v11, %v554_v28  ;;  %s3835_s4 = sld [smem:[#allocation9 + $0x15]]  ;;  %v3852_v28 = vmul.f32 %v3089_v55, %v611_v2 }
 0x1da   : > { %v3821_v61 = vpop.permute.xlu1 %1258  ;;  %v3823_v59 = vpop.permute.xlu0 %1256  ;;  %5725 = vst [vmem:[#allocation123_spill] sm:$0xff] %v3852_v28 }
 0x1db   : > { %5720 = vst [vmem:[#allocation118_spill] sm:$0xff] %v3821_v61  ;;  %5721 = vst [vmem:[#allocation119_spill] sm:$0xff] %v3823_v59  ;;  %v3838_v61 = vmul.f32 %v3159_v16, %v573_v41  ;;  %v3841_v59 = vmul.f32 %v3081_v51, %v592_v4  ;;  %v3855_v41 = vmul.f32 %v3096_v58, %v611_v2  ;;  %v706_v4 = vstv %s3768_s6  ;;  %s4085_s6 = sld [smem:[#allocation9 + $0x1b]] }
 0x1dc   : > { %1624 = vrot.lane.b32.xlu1 %v3619_v35, %s2865_s7  ;;  %1622 = vrot.lane.b32.xlu0 %v3605_v12, %s2865_s7  ;;  %s3869_s7 = sld [smem:[#allocation9 + $0x16]]  ;;  %v3888_v60 = vmul.f32 %v3152_v14, %v706_v4 }
 0x1dd   : > { %5722 = vst [vmem:[#allocation120_spill] sm:$0xff] %v3838_v61  ;;  %5723 = vst [vmem:[#allocation121_spill] sm:$0xff] %v3841_v59  ;;  %v3858_v61 = vmul.f32 %v3101_v62, %v630_v53  ;;  %v725_v59 = vstv %s3773_s17  ;;  %v3882_v53 = vmul.f32 %v3145_v11, %v687_v54  ;;  %s4118_s17 = sld [smem:[#allocation9 + $0x1c]] }
 0x1de   : > { %5726 = vst [vmem:[#allocation124_spill] sm:$0xff] %v3855_v41  ;;  %v3871_v28 = vpop.permute.xlu1 %1275  ;;  %v3873_v2 = vpop.permute.xlu0 %1260  ;;  %v3876_v41 = vmul.f32 %v3135_v7, %v668_v15  ;;  %5734 = vst [vmem:[#allocation132_spill] sm:$0xff] %v3888_v60  ;;  %v3903_v15 = vmul.f32 %v3084_v52, %v725_v59  ;;  %v3917_v60 = vmul.f32 %v3101_v62, %v763_v49 }
 0x1df   : > { %5727 = vst [vmem:[#allocation125_spill] sm:$0xff] %v3858_v61  ;;  %5730 = vst [vmem:[#allocation128_spill] sm:$0xff] %v3871_v28  ;;  %v3879_v61 = vmul.f32 %v3142_v10, %v687_v54  ;;  %v3891_v28 = vmul.f32 %v3159_v16, %v706_v4  ;;  %v3900_v54 = vmul.f32 %v3081_v51, %v725_v59  ;;  %v839_v59 = vstv %s3819_s16  ;;  %s5793_s16 = smov 16  }
 0x1e0   : > { %5731 = vst [vmem:[#allocation129_spill] sm:$0xff] %v3873_v2  ;;  %5732 = vst [vmem:[#allocation130_spill] sm:$0xff] %v3876_v41  ;;  %v801_v2 = vstv %s3798_s24  ;;  %1640 = vrot.lane.b32.xlu1 %v3605_v12, %s5736_s25  ;;  %1638 = vrot.lane.b32.xlu0 %v3608_v39, %s5736_s25  ;;  %v3909_v4 = vmul.f32 %v3096_v58, %v744_v45  ;;  %s4153_s24 = sld [smem:[#allocation9 + $0x1d]] }
 0x1e1   : > { %5733 = vst [vmem:[#allocation131_spill] sm:$0xff] %v3882_v53  ;;  %5735 = vst [vmem:[#allocation133_spill] sm:$0xff] %v3891_v28  ;;  %v3906_v53 = vmul.f32 %v3089_v55, %v744_v45  ;;  %v488_v28 = vsel %vm487_vm15, %v3257_v18, %v3267_v21  ;;  %v3928_v45 = vmul.f32 %v3128_v5, %v801_v2  ;;  %v858_v18 = vstv %s3835_s4  ;;  %s4186_s4 = sld [smem:[#allocation9 + $0x1e]] }
 0x1e2   : > { %5737 = vst [vmem:[#allocation134_spill] sm:$0xff] %v3900_v54  ;;  %5738 = vst [vmem:[#allocation135_spill] sm:$0xff] %v3903_v15  ;;  %v3920_v54 = vmul.f32 %v3117_v3, %v763_v49  ;;  %v3923_v15 = vpop.permute.xlu1 %1279  ;;  %v3925_v41 = vpop.permute.xlu0 %1277  ;;  %v469_v49 = vsel %vm468_vm0, %v3251_v17, %v3259_v19  ;;  %v492_v17 = vmul.f32 %v488_v28, %v3785_v8 }
 0x1e3   : > { %5739 = vst [vmem:[#allocation136_spill] sm:$0xff] %v3906_v53  ;;  %5740 = vst [vmem:[#allocation137_spill] sm:$0xff] %v3909_v4  ;;  %v3931_v4 = vmul.f32 %v3135_v7, %v801_v2  ;;  %v3934_v53 = vmul.f32 %v3142_v10, %v820_v48  ;;  %v470_v2 = vsel %vm468_vm0, %v3259_v19, %v3249_v13  ;;  %v877_v13 = vstv %s3869_s7  ;;  %s4223_s7 = sld [smem:[#allocation9 + $0x20]] }
 0x1e4   : > { %5741 = vst [vmem:[#allocation138_spill] sm:$0xff] %v3923_v15  ;;  %5742 = vst [vmem:[#allocation139_spill] sm:$0xff] %v3925_v41  ;;  %v489_v15 = vsel %vm487_vm15, %v3267_v21, %v3265_v20  ;;  %v507_v41 = vsel %vm506_vm1, %v3275_v23, %v3273_v22  ;;  %1656 = vrot.lane.b32.xlu1 %v3608_v39, %s5745_s27  ;;  %1642 = vrot.lane.b32.xlu0 %v3619_v35, %s5736_s25  ;;  %s4237_s25 = sld [smem:[#allocation9 + $0x1f]] }
 0x1e5   : > { %5743 = vst [vmem:[#allocation140_spill] sm:$0xff] %v3931_v4  ;;  %5744 = vst [vmem:[#allocation141_spill] sm:$0xff] %v3934_v53  ;;  %v3955_v20 = vmul.f32 %v3145_v11, %v820_v48  ;;  %v3958_v21 = vmul.f32 %v3152_v14, %v839_v59  ;;  %v526_v23 = vsel %vm525_vm3, %v3281_v24, %v3291_v27 }
 0x1e6   : > { %v3964_v4 = vmul.f32 %v3159_v16, %v839_v59  ;;  %v3967_v53 = vmul.f32 %v3081_v51, %v858_v18  ;;  %v3970_v19 = vpop.permute.xlu1 %1296  ;;  %v3972_v48 = vpop.permute.xlu0 %1294  ;;  %v473_v8 = vmul.f32 %v469_v49, %v3771_v9  ;;  %v493_v28 = vmul.f32 %v489_v15, %v3791_v1 }
 0x1e7   : > { %5746 = vst [vmem:[#allocation142_spill] sm:$0xff] %v3955_v20  ;;  %5747 = vst [vmem:[#allocation143_spill] sm:$0xff] %v3970_v19  ;;  %v511_v20 = vmul.f32 %v507_v41, %v3794_v32  ;;  %v508_v24 = vsel %vm506_vm1, %v3273_v22, %v3283_v25  ;;  %v474_v59 = vmul.f32 %v470_v2, %v3782_v36  ;;  %v649_v19 = vstv %s3885_s15  ;;  %s5817_s15 = smov 15  }
 0x1e8   : > { %5748 = vst [vmem:[#allocation144_spill] sm:$0xff] %v3972_v48  ;;  %v545_v48 = vsel %vm544_vm4, %v3299_v30, %v3297_v29  ;;  %v3988_v9 = vmul.f32 %v3084_v52, %v858_v18  ;;  %1660 = vrot.lane.b32.xlu1 %v3619_v35, %s5745_s27  ;;  %1658 = vrot.lane.b32.xlu0 %v3605_v12, %s5745_s27  ;;  %v5749_v36 = vstv %s3745_s23  ;;  %v896_v30 = vstv %s3911_s8  ;;  %s4053_s23 = sld [smem:[#allocation9 + $0x1a]]  ;;  %s4246_s8 = sld [smem:[#allocation9 + $0x21]] }
 0x1e9   : > { %v494_v22 = vadd.f32 %v492_v17, %v473_v8  ;;  %v527_v25 = vsel %vm525_vm3, %v3291_v27, %v3289_v26  ;;  %v530_v1 = vmul.f32 %v526_v23, %v5749_v36  ;;  %v512_v32 = vmul.f32 %v508_v24, %v3807_v56  ;;  %v914_v23 = vld [vmem:[#allocation4 + $0x1] sm:$0x3]  ;;  %s4262_s27 = sld [smem:[#allocation9 + $0x22]] }
 0x1ea   : > { %v564_v41 = vsel %vm563_vm5, %v3311_v33, %v3324_v38  ;;  %v4005_v15 = vmul.f32 %v3089_v55, %v877_v13  ;;  %v4008_v18 = vmul.f32 %v3096_v58, %v877_v13  ;;  %v4010_v49 = vpop.permute.xlu1 %1313  ;;  %v4012_v26 = vpop.permute.xlu0 %1298  ;;  %v495_v27 = vadd.f32 %v493_v28, %v474_v59 }
 0x1eb   : > { %5750 = vst [vmem:[#allocation145_spill] sm:$0xff] %v4010_v49  ;;  %5751 = vst [vmem:[#allocation146_spill] sm:$0xff] %v4012_v26  ;;  %v513_v2 = vadd.f32 %v511_v20, %v494_v22  ;;  %v549_v17 = vmul.f32 %v545_v48, %v3812_v0  ;;  %v546_v56 = vsel %vm544_vm4, %v3297_v29, %v3313_v34  ;;  %v5752_v33 = vmov %v5749_v36  ;;  %v5866_v26 = vld [vmem:[#allocation78_spill] sm:$0xff] }
 0x1ec   : > { %v531_v8 = vmul.f32 %v527_v25, %v5752_v33  ;;  %v583_v13 = vsel %vm582_vm6, %v3332_v42, %v3330_v40  ;;  %v4026_v24 = vmul.f32 %v3101_v62, %v896_v30  ;;  %1676 = vrot.lane.b32.xlu1 %v3605_v12, %s5753_s22  ;;  %1674 = vrot.lane.b32.xlu0 %v3608_v39, %s5753_s22  ;;  %v916_v36 = vstv %s3980_s28  ;;  %v5762_v33 = vld [vmem:[#allocation27_spill] sm:$0xff]  ;;  %s5828_s28 = smov 14  }
 0x1ed   : > { %v532_v29 = vadd.f32 %v530_v1, %v513_v2  ;;  %v565_v34 = vsel %vm563_vm5, %v3324_v38, %v3322_v37  ;;  %v568_v0 = vmul.f32 %v564_v41, %v3826_v31  ;;  %v4037_v42 = vmul.f32 %v3117_v3, %v896_v30  ;;  %v5760_v41 = vld [vmem:[#allocation18_spill] sm:$0xff] }
 0x1ee   : > { %v514_v20 = vadd.f32 %v512_v32, %v495_v27  ;;  %v550_v48 = vmul.f32 %v546_v56, %v3815_v63  ;;  %v602_v28 = vsel %vm5554_vm7, %v3340_v43, %v3350_v46  ;;  %v923_v59 = vrot.slane %v914_v23, %v3093_v57  ;;  %v4044_v22 = vpop.permute.xlu1 %1317  ;;  %v4046_v25 = vpop.permute.xlu0 %1315  ;;  %v5756_v43 = vld [vmem:[#allocation23_spill] sm:$0xff] }
 0x1ef   : > { %5754 = vst [vmem:[#allocation147_spill] sm:$0xff] %v4044_v22  ;;  %5755 = vst [vmem:[#allocation148_spill] sm:$0xff] %v4046_v25  ;;  %v551_v37 = vadd.f32 %v549_v17, %v532_v29  ;;  %v587_v38 = vmul.f32 %v583_v13, %v3832_v50  ;;  %v584_v31 = vsel %vm582_vm6, %v3330_v40, %v3342_v44  ;;  %v5758_v44 = vld [vmem:[#allocation22_spill] sm:$0xff]  ;;  %v5761_v17 = vld [vmem:[#allocation120_spill] sm:$0xff] }
 0x1f0   : > { %v533_v63 = vadd.f32 %v531_v8, %v514_v20  ;;  %v569_v1 = vmul.f32 %v565_v34, %v3829_v6  ;;  %v621_v30 = vsel %vm5555_vm8, %v5756_v43, %v3356_v47  ;;  %1692 = vrot.lane.b32.xlu1 %v3608_v39, %s5757_s30  ;;  %1678 = vrot.lane.b32.xlu0 %v3619_v35, %s5753_s22  ;;  %v5759_v6 = vld [vmem:[#allocation121_spill] sm:$0xff]  ;;  %v5763_v8 = vld [vmem:[#allocation24_spill] sm:$0xff]  ;;  %s4284_s22 = sld [smem:[#allocation9 + $0x24]] }
 0x1f1   : > { %v570_v40 = vadd.f32 %v568_v0, %v551_v37  ;;  %v603_v50 = vsel %vm5554_vm7, %v3350_v46, %v5758_v44  ;;  %v606_v32 = vmul.f32 %v602_v28, %v5759_v6  ;;  %v927_v27 = vrot.slane %v914_v23, %v5760_v41  ;;  %v5766_v46 = vld [vmem:[#allocation123_spill] sm:$0xff]  ;;  %v5767_v28 = vld [vmem:[#allocation25_spill] sm:$0xff]  ;;  %v5769_v44 = vld [vmem:[#allocation28_spill] sm:$0xff] }
 0x1f2   : > { %v552_v2 = vadd.f32 %v550_v48, %v533_v63  ;;  %v588_v56 = vmul.f32 %v584_v31, %v5761_v17  ;;  %v640_v13 = vsel %vm5556_vm9, %v5763_v8, %v5762_v33  ;;  %v4074_v29 = vmul.f32 %v923_v59, %v916_v36  ;;  %v4076_v34 = vpop.permute.xlu1 %1334  ;;  %v4078_v0 = vpop.permute.xlu0 %1332  ;;  %v5768_v63 = vld [vmem:[#allocation122_spill] sm:$0xff]  ;;  %v5770_v59 = vld [vmem:[#allocation29_spill] sm:$0xff]  ;;  %v5773_v17 = vld [vmem:[#allocation124_spill] sm:$0xff] }
 0x1f3   : > { %5764 = vst [vmem:[#allocation23_spill] sm:$0xff] %v4076_v34  ;;  %5765 = vst [vmem:[#allocation22_spill] sm:$0xff] %v4078_v0  ;;  %v589_v20 = vadd.f32 %v587_v38, %v570_v40  ;;  %v625_v37 = vmul.f32 %v621_v30, %v5766_v46  ;;  %v622_v23 = vsel %vm5555_vm8, %v3356_v47, %v5767_v28  ;;  %v936_v48 = vstv %s4018_s18  ;;  %v5771_v38 = vld [vmem:[#allocation26_spill] sm:$0xff]  ;;  %v5772_v30 = vld [vmem:[#allocation125_spill] sm:$0xff]  ;;  %s4282_s18 = sld [smem:[#allocation9 + $0x23]] }
 0x1f4   : > { %v571_v31 = vadd.f32 %v569_v1, %v552_v2  ;;  %v607_v43 = vmul.f32 %v603_v50, %v5768_v63  ;;  %v659_v6 = vsel %vm5557_vm10, %v5770_v59, %v5769_v44  ;;  %vm5564_vm7 = vcmask 146432   ;;  %1696 = vrot.lane.b32.xlu1 %v3619_v35, %s5757_s30  ;;  %1694 = vrot.lane.b32.xlu0 %v3605_v12, %s5757_s30  ;;  %v5774_v46 = vld [vmem:[#allocation33_spill] sm:$0xff]  ;;  %v5775_v28 = vld [vmem:[#allocation30_spill] sm:$0xff]  ;;  %v5805_v34 = vld [vmem:[#allocation47_spill] sm:$0xff]  ;;  %s4320_s30 = sld [smem:[#allocation9 + $0x28]] }
 0x1f5   : > { %v608_v47 = vadd.f32 %v606_v32, %v589_v20  ;;  %v641_v1 = vsel %vm5556_vm9, %v5762_v33, %v5771_v38  ;;  %v644_v40 = vmul.f32 %v640_v13, %v5772_v30  ;;  %vm5574_vm8 = vcmask 138240   ;;  %v5780_v30 = vld [vmem:[#allocation34_spill] sm:$0xff] }
 0x1f6   : > { %v4099_v50 = vmul.f32 %v927_v27, %v916_v36  ;;  %v590_v2 = vadd.f32 %v588_v56, %v571_v31  ;;  %v626_v8 = vmul.f32 %v622_v23, %v5773_v17  ;;  %v678_v63 = vsel %vm5558_vm11, %v5775_v28, %v5774_v46  ;;  %v4108_v32 = vpop.permute.xlu1 %1351  ;;  %v4110_v20 = vpop.permute.xlu0 %1336  ;;  %v5778_v36 = vld [vmem:[#allocation31_spill] sm:$0xff]  ;;  %v5779_v31 = vld [vmem:[#allocation126_spill] sm:$0xff] }
 0x1f7   : > { %v4106_v59 = vmul.f32 %v3128_v5, %v936_v48  ;;  %5776 = vst [vmem:[#allocation121_spill] sm:$0xff] %v4108_v32  ;;  %5777 = vst [vmem:[#allocation120_spill] sm:$0xff] %v4110_v20  ;;  %v627_v33 = vadd.f32 %v625_v37, %v608_v47  ;;  %v663_v13 = vmul.f32 %v659_v6, %v649_v19  ;;  %vm5565_vm9 = vcmask 130048   ;;  %v5781_v17 = vld [vmem:[#allocation35_spill] sm:$0xff] }
 0x1f8   : > { %v660_v27 = vsel %vm5557_vm10, %v5769_v44, %v5778_v36  ;;  %v968_v56 = vstv %s4053_s23  ;;  %v609_v23 = vadd.f32 %v607_v43, %v590_v2  ;;  %v645_v38 = vmul.f32 %v641_v1, %v5779_v31  ;;  %1712 = vrot.lane.b32.xlu1 %v3605_v12, %s5782_s19  ;;  %1710 = vrot.lane.b32.xlu0 %v3608_v39, %s5782_s19  ;;  %v5783_v44 = vld [vmem:[#allocation32_spill] sm:$0xff]  ;;  %v5784_v43 = vld [vmem:[#allocation127_spill] sm:$0xff]  ;;  %s4302_s23 = sld [smem:[#allocation9 + $0x25]] }
 0x1f9   : > { %v697_v28 = vsel %vm5559_vm12, %v5781_v17, %v5780_v30  ;;  %v646_v37 = vadd.f32 %v644_v40, %v627_v33  ;;  %v679_v6 = vsel %vm5558_vm11, %v5774_v46, %v5783_v44  ;;  %v682_v47 = vmul.f32 %v678_v63, %v5784_v43  ;;  %v5785_v31 = vld [vmem:[#allocation39_spill] sm:$0xff]  ;;  %v5786_v17 = vld [vmem:[#allocation36_spill] sm:$0xff]  ;;  %v5789_v44 = vld [vmem:[#allocation37_spill] sm:$0xff] }
 0x1fa   : > { %vm5572_vm10 = vcmask 121856   ;;  %v4134_v1 = vmul.f32 %v3135_v7, %v936_v48  ;;  %v628_v2 = vadd.f32 %v626_v8, %v609_v23  ;;  %v664_v36 = vmul.f32 %v660_v27, %v649_v19  ;;  %v4144_v40 = vpop.permute.xlu1 %1355  ;;  %v4146_v33 = vpop.permute.xlu0 %1353  ;;  %v5790_v27 = vld [vmem:[#allocation130_spill] sm:$0xff]  ;;  %v5791_v43 = vld [vmem:[#allocation40_spill] sm:$0xff] }
 0x1fb   : > { %v716_v32 = vsel %vm5562_vm13, %v5786_v17, %v5785_v31  ;;  %v4142_v20 = vmul.f32 %v3142_v10, %v968_v56  ;;  %5787 = vst [vmem:[#allocation27_spill] sm:$0xff] %v4144_v40  ;;  %5788 = vst [vmem:[#allocation24_spill] sm:$0xff] %v4146_v33  ;;  %v665_v46 = vadd.f32 %v663_v13, %v646_v37  ;;  %v987_v8 = vstv %s4085_s6  ;;  %v5792_v17 = vld [vmem:[#allocation41_spill] sm:$0xff]  ;;  %v5794_v13 = vld [vmem:[#allocation38_spill] sm:$0xff]  ;;  %s4338_s6 = sld [smem:[#allocation9 + $0x29]] }
 0x1fc   : > { %v701_v63 = vmul.f32 %v697_v28, %v3879_v61  ;;  %v698_v48 = vsel %vm5559_vm12, %v5780_v30, %v5789_v44  ;;  %v647_v19 = vadd.f32 %v645_v38, %v628_v2  ;;  %v683_v23 = vmul.f32 %v679_v6, %v5790_v27  ;;  %1728 = vrot.lane.b32.xlu1 %v3608_v39, %s5793_s16  ;;  %v5795_v38 = vld [vmem:[#allocation132_spill] sm:$0xff]  ;;  %v5796_v2 = vld [vmem:[#allocation131_spill] sm:$0xff]  ;;  %v5797_v27 = vld [vmem:[#allocation45_spill] sm:$0xff] }
 0x1fd   : > { %v735_v0 = vsel %vm734_vm14, %v5792_v17, %v5791_v43  ;;  %vm5567_vm11 = vcmask 113664   ;;  %1714 = vrot.lane.b32.xlu0 %v3619_v35, %s5782_s19  ;;  %v684_v61 = vadd.f32 %v682_v47, %v665_v46  ;;  %v717_v30 = vsel %vm5562_vm13, %v5785_v31, %v5794_v13  ;;  %v5798_v17 = vld [vmem:[#allocation42_spill] sm:$0xff]  ;;  %s4354_s19 = sld [smem:[#allocation9 + $0x2a]] }
 0x1fe   : > { %v720_v28 = vmul.f32 %v716_v32, %v5795_v38  ;;  %vm5568_vm12 = vcmask 105472   ;;  %v4168_v37 = vmul.f32 %v3145_v11, %v968_v56  ;;  %v666_v6 = vadd.f32 %v664_v36, %v647_v19  ;;  %v4177_v47 = vpop.permute.xlu1 %1372  ;;  %v4179_v46 = vpop.permute.xlu0 %1370  ;;  %v5801_v32 = vld [vmem:[#allocation134_spill] sm:$0xff]  ;;  %v5802_v38 = vld [vmem:[#allocation43_spill] sm:$0xff]  ;;  %v5803_v19 = vld [vmem:[#allocation133_spill] sm:$0xff] }
 0x1ff   : > { %v702_v44 = vmul.f32 %v698_v48, %v5796_v2  ;;  %v754_v40 = vsel %vm5564_vm7, %v5798_v17, %v5797_v27  ;;  %v4175_v33 = vmul.f32 %v3152_v14, %v987_v8  ;;  %5799 = vst [vmem:[#allocation123_spill] sm:$0xff] %v4177_v47  ;;  %5800 = vst [vmem:[#allocation25_spill] sm:$0xff] %v4179_v46  ;;  %v1006_v36 = vstv %s4118_s17  ;;  %v5804_v17 = vld [vmem:[#allocation46_spill] sm:$0xff]  ;;  %s5846_s17 = smov 13  }
 0x200   : > { %v703_v31 = vadd.f32 %v701_v63, %v684_v61  ;;  %v739_v13 = vmul.f32 %v735_v0, %v5801_v32  ;;  %v736_v56 = vsel %vm734_vm14, %v5791_v43, %v5802_v38  ;;  %v685_v48 = vadd.f32 %v683_v23, %v666_v6  ;;  %1732 = vrot.lane.b32.xlu1 %v3619_v35, %s5793_s16  ;;  %v5806_v63 = vld [vmem:[#allocation44_spill] sm:$0xff]  ;;  %v5809_v38 = vld [vmem:[#allocation51_spill] sm:$0xff] }
 0x201   : > { %v721_v2 = vmul.f32 %v717_v30, %v5803_v19  ;;  %v773_v22 = vsel %vm5574_vm8, %v5805_v34, %v5804_v17  ;;  %vm5569_vm13 = vcmask 23552   ;;  %1730 = vrot.lane.b32.xlu0 %v3605_v12, %s5793_s16  ;;  %v755_v43 = vsel %vm5564_vm7, %v5797_v27, %v5806_v63  ;;  %v5807_v23 = vld [vmem:[#allocation136_spill] sm:$0xff]  ;;  %v5808_v34 = vld [vmem:[#allocation135_spill] sm:$0xff]  ;;  %v5814_v63 = vld [vmem:[#allocation137_spill] sm:$0xff]  ;;  %s4385_s16 = sld [smem:[#allocation9 + $0x2b]] }
 0x202   : > { %v722_v0 = vadd.f32 %v720_v28, %v703_v31  ;;  %v758_v61 = vmul.f32 %v754_v40, %v5807_v23  ;;  %v4201_v30 = vmul.f32 %v3159_v16, %v987_v8  ;;  %v704_v6 = vadd.f32 %v702_v44, %v685_v48  ;;  %v5810_v19 = vld [vmem:[#allocation48_spill] sm:$0xff]  ;;  %v4210_v28 = vpop.permute.xlu1 %1389  ;;  %v4212_v31 = vpop.permute.xlu0 %1374  ;;  %v5813_v8 = vld [vmem:[#allocation49_spill] sm:$0xff] }
 0x203   : > { %v740_v32 = vmul.f32 %v736_v56, %v5808_v34  ;;  %v792_v46 = vsel %vm5565_vm9, %v5810_v19, %v5809_v38  ;;  %v4208_v47 = vmul.f32 %v3081_v51, %v1006_v36  ;;  %5811 = vst [vmem:[#allocation122_spill] sm:$0xff] %v4210_v28  ;;  %5812 = vst [vmem:[#allocation28_spill] sm:$0xff] %v4212_v31  ;;  %v1025_v56 = vstv %s4153_s24  ;;  %v5815_v34 = vld [vmem:[#allocation52_spill] sm:$0xff]  ;;  %v5816_v19 = vld [vmem:[#allocation53_spill] sm:$0xff]  ;;  %s5850_s24 = smov 3  }
 0x204   : > { %v741_v27 = vadd.f32 %v739_v13, %v722_v0  ;;  %v777_v40 = vmul.f32 %v773_v22, %v3917_v60  ;;  %v774_v44 = vsel %vm5574_vm8, %v5804_v17, %v5813_v8  ;;  %v723_v48 = vadd.f32 %v721_v2, %v704_v6  ;;  %1748 = vrot.lane.b32.xlu1 %v3605_v12, %s5817_s15  ;;  %v5818_v22 = vld [vmem:[#allocation50_spill] sm:$0xff]  ;;  %v5820_v8 = vld [vmem:[#allocation57_spill] sm:$0xff]  ;;  %v5827_v28 = vld [vmem:[#allocation59_spill] sm:$0xff] }
 0x205   : > { %v759_v23 = vmul.f32 %v755_v43, %v5814_v63  ;;  %v811_v49 = vsel %vm5572_vm10, %v5816_v19, %v5815_v34  ;;  %vm5570_vm7 = vcmask 15360   ;;  %1746 = vrot.lane.b32.xlu0 %v3608_v39, %s5817_s15  ;;  %v793_v13 = vsel %vm5565_vm9, %v5809_v38, %v5818_v22  ;;  %v5821_v63 = vld [vmem:[#allocation54_spill] sm:$0xff]  ;;  %v5824_v22 = vld [vmem:[#allocation55_spill] sm:$0xff] }
 0x206   : > { %v760_v60 = vadd.f32 %v758_v61, %v741_v27  ;;  %v5819_v2 = vstv %s4059_s29  ;;  %v4235_v0 = vmul.f32 %v3084_v52, %v1006_v36  ;;  %v742_v43 = vadd.f32 %v740_v32, %v723_v48  ;;  %v4248_v38 = vpop.permute.xlu1 %1393  ;;  %s4304_s29 = sld [smem:[#allocation9 + $0x27]] }
 0x207   : > { %v796_v17 = vmul.f32 %v792_v46, %v5819_v2  ;;  %v778_v6 = vmul.f32 %v774_v44, %v3920_v54  ;;  %v830_v19 = vsel %vm5567_vm11, %v5821_v63, %v5820_v8  ;;  %v4244_v61 = vmul.f32 %v3089_v55, %v1025_v56  ;;  %5822 = vst [vmem:[#allocation29_spill] sm:$0xff] %v4248_v38  ;;  %v4250_v46 = vpop.permute.xlu0 %1391  ;;  %v5826_v63 = vld [vmem:[#allocation58_spill] sm:$0xff] }
 0x208   : > { %5823 = vst [vmem:[#allocation26_spill] sm:$0xff] %v4250_v46  ;;  %v779_v36 = vadd.f32 %v777_v40, %v760_v60  ;;  %v815_v27 = vmul.f32 %v811_v49, %v3928_v45  ;;  %v812_v54 = vsel %vm5572_vm10, %v5815_v34, %v5824_v22  ;;  %v1044_v32 = vstv %s4186_s4  ;;  %1764 = vrot.lane.b32.xlu1 %v3608_v39, %s5828_s28  ;;  %v5829_v49 = vld [vmem:[#allocation56_spill] sm:$0xff]  ;;  %v5832_v22 = vld [vmem:[#allocation63_spill] sm:$0xff]  ;;  %s4410_s4 = sld [smem:[#allocation9 + $0x2c]] }
 0x209   : > { %v761_v44 = vadd.f32 %v759_v23, %v742_v43  ;;  %v5825_v48 = vmov %v5819_v2  ;;  %v849_v31 = vsel %vm5568_vm12, %v5827_v28, %v5826_v63  ;;  %vm5571_vm9 = vcmask 7168   ;;  %1750 = vrot.lane.b32.xlu0 %v3619_v35, %s5817_s15  ;;  %v5830_v23 = vld [vmem:[#allocation141_spill] sm:$0xff]  ;;  %s5867_s15 = smov 2  }
 0x20a   : > { %v797_v2 = vmul.f32 %v793_v13, %v5825_v48  ;;  %v798_v45 = vadd.f32 %v796_v17, %v779_v36  ;;  %v831_v40 = vsel %vm5567_vm11, %v5820_v8, %v5829_v49  ;;  %v834_v34 = vmul.f32 %v830_v19, %v5830_v23  ;;  %v5831_v13 = vld [vmem:[#allocation140_spill] sm:$0xff]  ;;  %v4286_v17 = vpop.permute.xlu1 %1424  ;;  %v5836_v19 = vld [vmem:[#allocation61_spill] sm:$0xff]  ;;  %v5837_v49 = vld [vmem:[#allocation142_spill] sm:$0xff] }
 0x20b   : > { %v4273_v60 = vmul.f32 %v3096_v58, %v1025_v56  ;;  %v780_v28 = vadd.f32 %v778_v6, %v761_v44  ;;  %v816_v43 = vmul.f32 %v812_v54, %v5831_v13  ;;  %v5833_v48 = vld [vmem:[#allocation60_spill] sm:$0xff]  ;;  %v4280_v46 = vmul.f32 %v3101_v62, %v1044_v32  ;;  %5834 = vst [vmem:[#allocation125_spill] sm:$0xff] %v4286_v17  ;;  %v4288_v8 = vpop.permute.xlu0 %1422 }
 0x20c   : > { %v868_v38 = vsel %vm5569_vm13, %v5833_v48, %v5832_v22  ;;  %5835 = vst [vmem:[#allocation124_spill] sm:$0xff] %v4288_v8  ;;  %v817_v56 = vadd.f32 %v815_v27, %v798_v45  ;;  %v853_v6 = vmul.f32 %v849_v31, %v3958_v21  ;;  %v850_v36 = vsel %vm5568_vm12, %v5826_v63, %v5836_v19  ;;  %v5838_v13 = vld [vmem:[#allocation64_spill] sm:$0xff]  ;;  %v5839_v48 = vld [vmem:[#allocation65_spill] sm:$0xff]  ;;  %v5840_v31 = vld [vmem:[#allocation62_spill] sm:$0xff] }
 0x20d   : > { %vm5577_vm11 = vcmask 1039360   ;;  %v4295_v54 = vmul.f32 %v3117_v3, %v1044_v32  ;;  %v799_v44 = vadd.f32 %v797_v2, %v780_v28  ;;  %v835_v23 = vmul.f32 %v831_v40, %v5837_v49  ;;  %1768 = vrot.lane.b32.xlu1 %v3619_v35, %s5828_s28  ;;  %1766 = vrot.lane.b32.xlu0 %v3605_v12, %s5828_s28  ;;  %v5841_v28 = vld [vmem:[#allocation69_spill] sm:$0xff]  ;;  %v5842_v19 = vld [vmem:[#allocation66_spill] sm:$0xff]  ;;  %s4511_s28 = sld [smem:[#allocation9 + $0x2f]] }
 0x20e   : > { %v887_v8 = vsel %vm5570_vm7, %v5839_v48, %v5838_v13  ;;  %v1082_v27 = vstv %s4223_s7  ;;  %v836_v21 = vadd.f32 %v834_v34, %v817_v56  ;;  %v869_v32 = vsel %vm5569_vm13, %v5832_v22, %v5840_v31  ;;  %v4322_v34 = vpop.permute.xlu1 %1440  ;;  %s4458_s7 = sld [smem:[#allocation9 + $0x26]] }
 0x20f   : > { %v872_v2 = vmul.f32 %v868_v38, %v3967_v53  ;;  %vm5579_vm12 = vcmask 1031168   ;;  %v818_v45 = vadd.f32 %v816_v43, %v799_v44  ;;  %v854_v40 = vmul.f32 %v850_v36, %v3964_v4  ;;  %5843 = vst [vmem:[#allocation33_spill] sm:$0xff] %v4322_v34  ;;  %v4324_v56 = vpop.permute.xlu0 %1426  ;;  %v5845_v38 = vld [vmem:[#allocation67_spill] sm:$0xff] }
 0x210   : > { %v906_v49 = vsel %vm5571_vm9, %v5842_v19, %v5841_v28  ;;  %v1101_v48 = vstv %s4246_s8  ;;  %5844 = vst [vmem:[#allocation30_spill] sm:$0xff] %v4324_v56  ;;  %v855_v22 = vadd.f32 %v853_v6, %v836_v21  ;;  %v891_v53 = vmul.f32 %v887_v8, %v4005_v15  ;;  %v5847_v8 = vld [vmem:[#allocation68_spill] sm:$0xff]  ;;  %v5860_v56 = vld [vmem:[#allocation77_spill] sm:$0xff]  ;;  %s4476_s8 = sld [smem:[#allocation9 + $0x2e]] }
 0x211   : > { %v888_v43 = vsel %vm5570_vm7, %v5838_v13, %v5845_v38  ;;  %vm5580_vm13 = vcmask 1022976   ;;  %v4331_v4 = vmul.f32 %v3128_v5, %v1082_v27  ;;  %v837_v36 = vadd.f32 %v835_v23, %v818_v45  ;;  %1784 = vrot.lane.b32.xlu1 %v3605_v12, %s5846_s17  ;;  %1782 = vrot.lane.b32.xlu0 %v3608_v39, %s5846_s17 }
 0x212   : > { %v873_v44 = vmul.f32 %v869_v32, %v3988_v9  ;;  %v4335_v31 = vmul.f32 %v3135_v7, %v1082_v27  ;;  %v1120_v19 = vstv %s4262_s27  ;;  %v874_v15 = vadd.f32 %v872_v2, %v855_v22  ;;  %v4356_v2 = vpop.permute.xlu1 %1444  ;;  %s5875_s27 = smov 1  }
 0x213   : > { %v907_v6 = vsel %vm5571_vm9, %v5841_v28, %v5847_v8  ;;  %v910_v23 = vmul.f32 %v906_v49, %v4026_v24  ;;  %vm5581_vm7 = vcmask 941056   ;;  %v4349_v9 = vmul.f32 %v3142_v10, %v1101_v48  ;;  %5848 = vst [vmem:[#allocation31_spill] sm:$0xff] %v4356_v2  ;;  %v4358_v45 = vpop.permute.xlu0 %1442 }
 0x214   : > { %v856_v13 = vadd.f32 %v854_v40, %v837_v36  ;;  %v892_v27 = vmul.f32 %v888_v43, %v4008_v18  ;;  %v1139_v21 = vstv %s4282_s18  ;;  %v1158_v32 = vstv %s4284_s22  ;;  %5849 = vst [vmem:[#allocation126_spill] sm:$0xff] %v4358_v45  ;;  %v5859_v45 = vld [vmem:[#allocation76_spill] sm:$0xff]  ;;  %s4549_s18 = sld [smem:[#allocation9 + $0x30]]  ;;  %s5888_s22 = smov 127  }
 0x215   : > { %v893_v28 = vadd.f32 %v891_v53, %v874_v15  ;;  %vm5582_vm9 = vcmask 932864   ;;  %v4361_v24 = vmul.f32 %v3145_v11, %v1101_v48  ;;  %v4364_v49 = vmul.f32 %v3152_v14, %v1120_v19  ;;  %1800 = vrot.lane.b32.xlu1 %v3608_v39, %s5850_s24  ;;  %1786 = vrot.lane.b32.xlu0 %v3619_v35, %s5846_s17  ;;  %v5852_v15 = vld [vmem:[#allocation71_spill] sm:$0xff]  ;;  %s5912_s17 = smov 125  }
 0x216   : > { %v4367_v40 = vmul.f32 %v3159_v16, %v1120_v19  ;;  %v875_v18 = vadd.f32 %v873_v44, %v856_v13  ;;  %v911_v22 = vmul.f32 %v907_v6, %v4037_v42  ;;  %v1177_v38 = vstv %s4302_s23  ;;  %v5851_v19 = vld [vmem:[#allocation70_spill] sm:$0xff]  ;;  %v4394_v13 = vpop.permute.xlu1 %1460  ;;  %s4600_s23 = sld [smem:[#allocation9 + $0x2d]] }
 0x217   : > { %v1215_v43 = vstv %s4304_s29  ;;  %v912_v48 = vadd.f32 %v910_v23, %v893_v28  ;;  %vm5583_vm10 = vcmask 924672   ;;  %v4377_v53 = vmul.f32 %v3081_v51, %v1139_v21  ;;  %5853 = vst [vmem:[#allocation34_spill] sm:$0xff] %v4394_v13  ;;  %v4396_v28 = vpop.permute.xlu0 %1458  ;;  %v5857_v13 = vld [vmem:[#allocation72_spill] sm:$0xff]  ;;  %s5896_s29 = smov 126  }
 0x218   : > { %v4380_v36 = vmul.f32 %v3084_v52, %v1139_v21  ;;  %v4383_v44 = vmul.f32 %v3089_v55, %v1158_v32  ;;  %v894_v42 = vadd.f32 %v892_v27, %v875_v18  ;;  %v959_v8 = vsel %vm5577_vm11, %v5852_v15, %v5851_v19  ;;  %5854 = vst [vmem:[#allocation35_spill] sm:$0xff] %v4396_v28  ;;  %v5855_v21 = vld [vmem:[#allocation73_spill] sm:$0xff]  ;;  %v5856_v15 = vld [vmem:[#allocation75_spill] sm:$0xff] }
 0x219   : > { %v4391_v6 = vmul.f32 %v3096_v58, %v1158_v32  ;;  %v1234_v23 = vstv %s4320_s30  ;;  %v960_v63 = vsel %vm5577_vm11, %v5851_v19, %v5855_v21  ;;  %v4402_v2 = vmul.f32 %v3101_v62, %v1177_v38  ;;  %1804 = vrot.lane.b32.xlu1 %v3619_v35, %s5850_s24  ;;  %1802 = vrot.lane.b32.xlu0 %v3605_v12, %s5850_s24  ;;  %s4618_s30 = sld [smem:[#allocation9 + $0x32]]  ;;  %s5921_s24 = smov 115  }
 0x21a   : > { %v4405_v27 = vmul.f32 %v3117_v3, %v1177_v38  ;;  %v4408_v18 = vmul.f32 %v3128_v5, %v1215_v43  ;;  %v913_v32 = vadd.f32 %v911_v22, %v894_v42  ;;  %v978_v28 = vsel %vm5579_vm12, %v5857_v13, %v5856_v15  ;;  %v5858_v22 = vld [vmem:[#allocation74_spill] sm:$0xff] }
 0x21b   : > { %vm5584_vm8 = vcmask 916480   ;;  %v4416_v19 = vmul.f32 %v3135_v7, %v1215_v43  ;;  %v1253_v21 = vstv %s4338_s6  ;;  %v932_v38 = vadd.f32 %v4074_v29, %v912_v48  ;;  %v4439_v48 = vpop.permute.xlu1 %1476  ;;  %s4651_s6 = sld [smem:[#allocation9 + $0x33]] }
 0x21c   : > { %v963_v34 = vmul.f32 %v959_v8, %v4106_v59  ;;  %v979_v42 = vsel %vm5579_vm12, %v5856_v15, %v5858_v22  ;;  %v4429_v13 = vmul.f32 %v3142_v10, %v1234_v23  ;;  %v964_v43 = vmul.f32 %v960_v63, %v4134_v1  ;;  %5861 = vst [vmem:[#allocation32_spill] sm:$0xff] %v4439_v48  ;;  %v4441_v59 = vpop.permute.xlu0 %1462  ;;  %v5863_v15 = vld [vmem:[#allocation79_spill] sm:$0xff]  ;;  %v5865_v48 = vld [vmem:[#allocation81_spill] sm:$0xff] }
 0x21d   : > { %v997_v17 = vsel %vm5580_vm13, %v5860_v56, %v5859_v45  ;;  %vm5586_vm11 = vcmask 908288   ;;  %v4436_v25 = vmul.f32 %v3145_v11, %v1234_v23  ;;  %v1272_v29 = vstv %s4354_s19  ;;  %5862 = vst [vmem:[#allocation127_spill] sm:$0xff] %v4441_v59  ;;  %1820 = vrot.lane.b32.xlu1 %v3605_v12, %s5867_s15  ;;  %1818 = vrot.lane.b32.xlu0 %v3608_v39, %s5867_s15  ;;  %s4687_s19 = sld [smem:[#allocation9 + $0x35]] }
 0x21e   : > { %v982_v8 = vmul.f32 %v978_v28, %v4142_v20  ;;  %v998_v1 = vsel %vm5580_vm13, %v5859_v45, %v5863_v15  ;;  %v4448_v63 = vmul.f32 %v3152_v14, %v1253_v21  ;;  %v4451_v56 = vmul.f32 %v3159_v16, %v1253_v21  ;;  %v5871_v15 = vld [vmem:[#allocation83_spill] sm:$0xff] }
 0x21f   : > { %v933_v23 = vadd.f32 %v4099_v50, %v913_v32  ;;  %v983_v22 = vmul.f32 %v979_v42, %v4168_v37  ;;  %v1016_v59 = vsel %vm5581_vm7, %v5866_v26, %v5865_v48  ;;  %vm5588_vm12 = vcmask 900096   ;;  %v5869_v32 = vld [vmem:[#allocation80_spill] sm:$0xff]  ;;  %v5870_v42 = vld [vmem:[#allocation82_spill] sm:$0xff] }
 0x220   : > { %5864 = vst [vmem:[#allocation39_spill] sm:$0xff] %v4451_v56  ;;  %v965_v20 = vadd.f32 %v963_v34, %v932_v38  ;;  %v1001_v45 = vmul.f32 %v997_v17, %v4175_v33  ;;  %v4466_v50 = vmul.f32 %v3081_v51, %v1272_v29  ;;  %v1291_v37 = vstv %s4385_s16  ;;  %v4478_v34 = vpop.permute.xlu1 %1480  ;;  %v4480_v33 = vpop.permute.xlu0 %1478  ;;  %s4720_s16 = sld [smem:[#allocation9 + $0x36]] }
 0x221   : > { %v966_v28 = vadd.f32 %v964_v43, %v933_v23  ;;  %v1002_v26 = vmul.f32 %v998_v1, %v4201_v30  ;;  %v1017_v21 = vsel %vm5581_vm7, %v5865_v48, %v5869_v32  ;;  %v1035_v56 = vsel %vm5582_vm9, %v5871_v15, %v5870_v42  ;;  %v5872_v48 = vld [vmem:[#allocation85_spill] sm:$0xff]  ;;  %v5873_v32 = vld [vmem:[#allocation87_spill] sm:$0xff]  ;;  %v5874_v15 = vld [vmem:[#allocation84_spill] sm:$0xff]  ;;  %1836 = vrot.lane.b32.xlu1 %v3608_v39, %s5875_s27 }
 0x222   : > { %5868 = vst [vmem:[#allocation36_spill] sm:$0xff] %v4466_v50  ;;  %vm5589_vm13 = vcmask 891904   ;;  %v984_v17 = vadd.f32 %v982_v8, %v965_v20  ;;  %v1020_v38 = vmul.f32 %v1016_v59, %v4208_v47  ;;  %v4484_v30 = vmul.f32 %v3084_v52, %v1272_v29  ;;  %1822 = vrot.lane.b32.xlu0 %v3619_v35, %s5867_s15  ;;  %s4787_s15 = sld [smem:[#allocation9 + $0x38]] }
 0x223   : > { %v1310_v43 = vstv %s4410_s4  ;;  %v985_v1 = vadd.f32 %v983_v22, %v966_v28  ;;  %v1036_v23 = vsel %vm5582_vm9, %v5870_v42, %v5872_v48  ;;  %v1054_v50 = vsel %vm5583_vm10, %v5874_v15, %v5873_v32  ;;  %v1870_v22 = vld [vmem:[#allocation4 + $0x5] sm:$0x7]  ;;  %v5876_v28 = vld [vmem:[#allocation86_spill] sm:$0xff]  ;;  %s4753_s4 = sld [smem:[#allocation9 + $0x37]] }
 0x224   : > { %vm5590_vm7 = vcmask 809984   ;;  %v1003_v47 = vadd.f32 %v1001_v45, %v984_v17  ;;  %v1021_v29 = vmul.f32 %v1017_v21, %v4235_v0  ;;  %v1039_v59 = vmul.f32 %v1035_v56, %v4244_v61  ;;  %v4513_v0 = vpop.permute.xlu1 %1496  ;;  %v4515_v61 = vpop.permute.xlu0 %1494  ;;  %v5877_v17 = vld [vmem:[#allocation88_spill] sm:$0xff]  ;;  %v5879_v48 = vld [vmem:[#allocation91_spill] sm:$0xff] }
 0x225   : > { %v4500_v8 = vmul.f32 %v3089_v55, %v1291_v37  ;;  %v1004_v20 = vadd.f32 %v1002_v26, %v985_v1  ;;  %v1055_v42 = vsel %vm5583_vm10, %v5873_v32, %v5876_v28  ;;  %vm5591_vm9 = vcmask 801792   ;;  %v5878_v1 = vld [vmem:[#allocation89_spill] sm:$0xff]  ;;  %1840 = vrot.lane.b32.xlu1 %v3619_v35, %s5875_s27  ;;  %v5881_v28 = vld [vmem:[#allocation90_spill] sm:$0xff] }
 0x226   : > { %v4506_v39 = vmul.f32 %v3096_v58, %v1291_v37  ;;  %v4509_v45 = vmul.f32 %v3101_v62, %v1310_v43  ;;  %v1022_v56 = vadd.f32 %v1020_v38, %v1003_v47  ;;  %v1040_v26 = vmul.f32 %v1036_v23, %v4273_v60  ;;  %1838 = vrot.lane.b32.xlu0 %v3605_v12, %s5875_s27  ;;  %v5880_v47 = vld [vmem:[#allocation93_spill] sm:$0xff]  ;;  %s5947_s27 = smov 113  }
 0x227   : > { %v1058_v21 = vmul.f32 %v1054_v50, %v4280_v46  ;;  %v1073_v37 = vsel %vm5584_vm8, %v5878_v1, %v5877_v17  ;;  %v1074_v32 = vsel %vm5584_vm8, %v5877_v17, %v5879_v48  ;;  %vm5592_vm10 = vcmask 793600   ;;  %v5883_v48 = vld [vmem:[#allocation92_spill] sm:$0xff] }
 0x228   : > { %v4531_v60 = vrot.slane %v1870_v22, %v5760_v41  ;;  %v4534_v46 = vrot.slane %v1870_v22, %v3093_v57  ;;  %v1023_v50 = vadd.f32 %v1021_v29, %v1004_v20  ;;  %v1041_v38 = vadd.f32 %v1039_v59, %v1022_v56  ;;  %v4551_v29 = vpop.permute.xlu1 %1512 }
 0x229   : > { %v1059_v23 = vmul.f32 %v1055_v42, %v4295_v54  ;;  %v1092_v17 = vsel %vm5586_vm11, %v5881_v28, %v5880_v47  ;;  %v5882_v1 = vstv %s4237_s25  ;;  %v1093_v12 = vsel %vm5586_vm11, %v5880_v47, %v5883_v48  ;;  %v4553_v54 = vpop.permute.xlu0 %1498  ;;  %v5886_v28 = vld [vmem:[#allocation95_spill] sm:$0xff]  ;;  %s4583_s25 = sld [smem:[#allocation9 + $0x31]] }
 0x22a   : > { %v1077_v35 = vmul.f32 %v1073_v37, %v5882_v1  ;;  %vm5593_vm8 = vcmask 785408   ;;  %v4546_v15 = vmul.f32 %v3117_v3, %v1310_v43  ;;  %v1348_v41 = vstv %s4476_s8  ;;  %v5885_v37 = vld [vmem:[#allocation94_spill] sm:$0xff]  ;;  %v5887_v43 = vld [vmem:[#allocation97_spill] sm:$0xff]  ;;  %1890 = vrot.lane.b32.xlu1 %v4531_v60, %s5888_s22  ;;  %1888 = vrot.lane.b32.xlu0 %v4534_v46, %s5888_s22  ;;  %s4805_s8 = sld [smem:[#allocation9 + $0x34]] }
 0x22b   : > { %v1042_v59 = vadd.f32 %v1040_v26, %v1023_v50  ;;  %v1060_v20 = vadd.f32 %v1058_v21, %v1041_v38  ;;  %v5884_v42 = vmov %v5882_v1  ;;  %v1111_v47 = vsel %vm5588_vm12, %v5886_v28, %v5885_v37  ;;  %v5889_v26 = vld [vmem:[#allocation16_spill] sm:$0xff]  ;;  %v5890_v38 = vld [vmem:[#allocation99_spill] sm:$0xff] }
 0x22c   : > { %v1078_v56 = vmul.f32 %v1074_v32, %v5884_v42  ;;  %v1096_v1 = vmul.f32 %v1092_v17, %v4331_v4  ;;  %v1112_v48 = vsel %vm5588_vm12, %v5885_v37, %v5887_v43  ;;  %vm1224_vm11 = vcmask 777216   ;;  %v5891_v42 = vld [vmem:[#allocation96_spill] sm:$0xff]  ;;  %v5892_v43 = vld [vmem:[#allocation98_spill] sm:$0xff] }
 0x22d   : > { %v4569_v21 = vrot.slane %v1870_v22, %v5889_v26  ;;  %v1061_v32 = vadd.f32 %v1059_v23, %v1042_v59  ;;  %v1097_v50 = vmul.f32 %v1093_v12, %v4335_v31  ;;  %v1130_v4 = vsel %vm5589_vm13, %v5891_v42, %v5890_v38  ;;  %v4585_v23 = vpop.permute.xlu1 %1516  ;;  %v4587_v31 = vpop.permute.xlu0 %1514  ;;  %v5893_v26 = vld [vmem:[#allocation100_spill] sm:$0xff]  ;;  %v5894_v42 = vld [vmem:[#allocation101_spill] sm:$0xff] }
 0x22e   : > { %v4576_v17 = vmul.f32 %v3128_v5, %v1348_v41  ;;  %v1079_v37 = vadd.f32 %v1077_v35, %v1060_v20  ;;  %v1115_v28 = vmul.f32 %v1111_v47, %v4349_v9  ;;  %v1131_v57 = vsel %vm5589_vm13, %v5890_v38, %v5892_v43  ;;  %v5895_v38 = vld [vmem:[#allocation103_spill] sm:$0xff]  ;;  %1906 = vrot.lane.b32.xlu1 %v4534_v46, %s5896_s29 }
 0x22f   : > { %vm5594_vm12 = vcmask 769024   ;;  %v1367_v22 = vstv %s4511_s28  ;;  %v1080_v12 = vadd.f32 %v1078_v56, %v1061_v32  ;;  %v1116_v59 = vmul.f32 %v1112_v48, %v4361_v24  ;;  %1892 = vrot.lane.b32.xlu0 %v4569_v21, %s5888_s22  ;;  %v5897_v56 = vld [vmem:[#allocation105_spill] sm:$0xff]  ;;  %s4823_s28 = sld [smem:[#allocation9 + $0x39]]  ;;  %s5960_s22 = smov 112  }
 0x230   : > { %v1149_v35 = vsel %vm5590_vm7, %v5894_v42, %v5893_v26  ;;  %v4594_v9 = vmul.f32 %v3135_v7, %v1348_v41  ;;  %v1098_v20 = vadd.f32 %v1096_v1, %v1079_v37  ;;  %v1134_v47 = vmul.f32 %v1130_v4, %v4364_v49  ;;  %v5898_v1 = vld [vmem:[#allocation102_spill] sm:$0xff]  ;;  %v5899_v37 = vld [vmem:[#allocation104_spill] sm:$0xff] }
 0x231   : > { %v1150_v43 = vsel %vm5590_vm7, %v5893_v26, %v5895_v38  ;;  %vm1262_vm13 = vcmask 760832   ;;  %v1099_v24 = vadd.f32 %v1097_v50, %v1080_v12  ;;  %v1135_v41 = vmul.f32 %v1131_v57, %v4367_v40  ;;  %v4620_v50 = vpop.permute.xlu1 %1532  ;;  %v4622_v57 = vpop.permute.xlu0 %1530  ;;  %v5901_v38 = vld [vmem:[#allocation106_spill] sm:$0xff] }
 0x232   : > { %v1168_v49 = vsel %vm5591_vm9, %v5898_v1, %v5897_v56  ;;  %v4611_v48 = vmul.f32 %v3142_v10, %v1367_v22  ;;  %v1117_v32 = vadd.f32 %v1115_v28, %v1098_v20  ;;  %v1153_v4 = vmul.f32 %v1149_v35, %v4377_v53  ;;  %5900 = vst [vmem:[#allocation37_spill] sm:$0xff] %v4622_v57  ;;  %v5902_v1 = vld [vmem:[#allocation107_spill] sm:$0xff] }
 0x233   : > { %v1169_v26 = vsel %vm5591_vm9, %v5897_v56, %v5899_v37  ;;  %vm5596_vm7 = vcmask 678912   ;;  %v1386_v42 = vstv %s4549_s18  ;;  %v1118_v40 = vadd.f32 %v1116_v59, %v1099_v24  ;;  %v5903_v56 = vld [vmem:[#allocation109_spill] sm:$0xff]  ;;  %1910 = vrot.lane.b32.xlu1 %v4569_v21, %s5896_s29  ;;  %1908 = vrot.lane.b32.xlu0 %v4531_v60, %s5896_s29  ;;  %v5919_v57 = vld [vmem:[#allocation119_spill] sm:$0xff]  ;;  %s4856_s18 = sld [smem:[#allocation9 + $0x3a]]  ;;  %s5962_s29 = smov 111  }
 0x234   : > { %v1154_v12 = vmul.f32 %v1150_v43, %v4380_v36  ;;  %v1187_v28 = vsel %vm5592_vm10, %v5902_v1, %v5901_v38  ;;  %v4629_v53 = vmul.f32 %v3145_v11, %v1367_v22  ;;  %v1136_v35 = vadd.f32 %v1134_v47, %v1117_v32  ;;  %v5904_v43 = vld [vmem:[#allocation111_spill] sm:$0xff]  ;;  %v5905_v22 = vld [vmem:[#allocation108_spill] sm:$0xff]  ;;  %v5906_v32 = vld [vmem:[#allocation110_spill] sm:$0xff] }
 0x235   : > { %v1172_v20 = vmul.f32 %v1168_v49, %v4383_v44  ;;  %v1188_v37 = vsel %vm5592_vm10, %v5901_v38, %v5903_v56  ;;  %vm1300_vm9 = vcmask 670720   ;;  %v1137_v36 = vadd.f32 %v1135_v41, %v1118_v40  ;;  %v5908_v56 = vld [vmem:[#allocation112_spill] sm:$0xff] }
 0x236   : > { %v1173_v59 = vmul.f32 %v1169_v26, %v4391_v6  ;;  %v1206_v47 = vsel %vm5593_vm8, %v5905_v22, %v5904_v43  ;;  %v4644_v44 = vmul.f32 %v3152_v14, %v1386_v42  ;;  %v1155_v24 = vadd.f32 %v1153_v4, %v1136_v35  ;;  %v4653_v6 = vpop.permute.xlu1 %1548  ;;  %v4655_v26 = vpop.permute.xlu0 %1534  ;;  %v5909_v4 = vld [vmem:[#allocation113_spill] sm:$0xff] }
 0x237   : > { %v1191_v49 = vmul.f32 %v1187_v28, %v4402_v2  ;;  %v1207_v38 = vsel %vm5593_vm8, %v5904_v43, %v5906_v32  ;;  %vm5597_vm10 = vcmask 662528   ;;  %v1406_v41 = vstv %s4583_s25  ;;  %5907 = vst [vmem:[#allocation130_spill] sm:$0xff] %v4653_v6  ;;  %v5911_v32 = vld [vmem:[#allocation115_spill] sm:$0xff]  ;;  %1926 = vrot.lane.b32.xlu1 %v4531_v60, %s5912_s17  ;;  %1924 = vrot.lane.b32.xlu0 %v4534_v46, %s5912_s17  ;;  %s4888_s25 = sld [smem:[#allocation9 + $0x3c]] }
 0x238   : > { %v1156_v40 = vadd.f32 %v1154_v12, %v1137_v36  ;;  %v1192_v1 = vmul.f32 %v1188_v37, %v4405_v27  ;;  %v1225_v2 = vsel %vm1224_vm11, %v5909_v4, %v5908_v56  ;;  %v4662_v28 = vmul.f32 %v3159_v16, %v1386_v42  ;;  %v5914_v42 = vld [vmem:[#allocation117_spill] sm:$0xff]  ;;  %v5915_v36 = vld [vmem:[#allocation114_spill] sm:$0xff]  ;;  %v5916_v4 = vld [vmem:[#allocation116_spill] sm:$0xff] }
 0x239   : > { %v1174_v35 = vadd.f32 %v1172_v20, %v1155_v24  ;;  %v5910_v43 = vstv %s4458_s7  ;;  %v1226_v6 = vsel %vm1224_vm11, %v5908_v56, %v5911_v32  ;;  %vm1338_vm8 = vcmask 654336   ;;  %s5938_s7 = smov 114  }
 0x23a   : > { %v1210_v22 = vmul.f32 %v1206_v47, %v5910_v43  ;;  %v1175_v27 = vadd.f32 %v1173_v59, %v1156_v40  ;;  %v5913_v12 = vmov %v5910_v43  ;;  %v1244_v20 = vsel %vm5594_vm12, %v5915_v36, %v5914_v42  ;;  %v4689_v59 = vpop.permute.xlu1 %1552  ;;  %v5918_v36 = vld [vmem:[#allocation118_spill] sm:$0xff] }
 0x23b   : > { %v1211_v37 = vmul.f32 %v1207_v38, %v5913_v12  ;;  %v4680_v47 = vmul.f32 %v3081_v51, %v1406_v41  ;;  %v1193_v24 = vadd.f32 %v1191_v49, %v1174_v35  ;;  %v1229_v56 = vmul.f32 %v1225_v2, %v4408_v18  ;;  %5917 = vst [vmem:[#allocation40_spill] sm:$0xff] %v4689_v59  ;;  %v4691_v38 = vpop.permute.xlu0 %1550  ;;  %v5928_v59 = vld [vmem:[#allocation144_spill] sm:$0xff] }
 0x23c   : > { %v1245_v43 = vsel %vm5594_vm12, %v5914_v42, %v5916_v4  ;;  %v1437_v32 = vstv %s4618_s30  ;;  %v1194_v40 = vadd.f32 %v1192_v1, %v1175_v27  ;;  %v1230_v12 = vmul.f32 %v1226_v6, %v4416_v19  ;;  %v5920_v42 = vld [vmem:[#allocation129_spill] sm:$0xff]  ;;  %1942 = vrot.lane.b32.xlu1 %v4534_v46, %s5921_s24  ;;  %1928 = vrot.lane.b32.xlu0 %v4569_v21, %s5912_s17  ;;  %v5922_v6 = vld [vmem:[#allocation139_spill] sm:$0xff]  ;;  %s4924_s30 = sld [smem:[#allocation9 + $0x3d]]  ;;  %s4946_s17 = sld [smem:[#allocation9 + $0x3f]] }
 0x23d   : > { %v1263_v49 = vsel %vm1262_vm13, %v5919_v57, %v5918_v36  ;;  %v4698_v18 = vmul.f32 %v3084_v52, %v1406_v41  ;;  %v1212_v2 = vadd.f32 %v1210_v22, %v1193_v24  ;;  %v1248_v35 = vmul.f32 %v1244_v20, %v4429_v13  ;;  %v5923_v41 = vld [vmem:[#allocation128_spill] sm:$0xff]  ;;  %v5924_v20 = vld [vmem:[#allocation138_spill] sm:$0xff] }
 0x23e   : > { %v1264_v4 = vsel %vm1262_vm13, %v5918_v36, %v5920_v42  ;;  %vm1357_vm12 = vcmask 646144   ;;  %v1213_v19 = vadd.f32 %v1211_v37, %v1194_v40  ;;  %v1249_v57 = vmul.f32 %v1245_v43, %v4436_v25  ;;  %v4722_v37 = vpop.permute.xlu1 %1568  ;;  %v5926_v40 = vld [vmem:[#allocation39_spill] sm:$0xff] }
 0x23f   : > { %v1282_v1 = vsel %vm5596_vm7, %v5923_v41, %v5922_v6  ;;  %v4713_v13 = vmul.f32 %v3089_v55, %v1437_v32  ;;  %v1231_v22 = vadd.f32 %v1229_v56, %v1212_v2  ;;  %v1267_v27 = vmul.f32 %v1263_v49, %v4448_v63  ;;  %5925 = vst [vmem:[#allocation41_spill] sm:$0xff] %v4722_v37  ;;  %v4724_v25 = vpop.permute.xlu0 %1566  ;;  %v5927_v41 = vld [vmem:[#allocation143_spill] sm:$0xff]  ;;  %v5929_v2 = vld [vmem:[#allocation36_spill] sm:$0xff] }
 0x240   : > { %v1283_v24 = vsel %vm5596_vm7, %v5922_v6, %v5924_v20  ;;  %v1455_v36 = vstv %s4651_s6  ;;  %v1232_v43 = vadd.f32 %v1230_v12, %v1213_v19  ;;  %v1268_v42 = vmul.f32 %v1264_v4, %v5926_v40  ;;  %v5930_v20 = vld [vmem:[#allocation146_spill] sm:$0xff]  ;;  %1946 = vrot.lane.b32.xlu1 %v4569_v21, %s5921_s24  ;;  %1944 = vrot.lane.b32.xlu0 %v4531_v60, %s5921_s24  ;;  %v5931_v4 = vld [vmem:[#allocation148_spill] sm:$0xff]  ;;  %v5933_v40 = vld [vmem:[#allocation147_spill] sm:$0xff]  ;;  %s4939_s6 = sld [smem:[#allocation9 + $0x3e]]  ;;  %s4960_s24 = sld [smem:[#allocation9 + $0x40]] }
 0x241   : > { %v1301_v56 = vsel %vm1300_vm9, %v5928_v59, %v5927_v41  ;;  %v4731_v63 = vmul.f32 %v3096_v58, %v1437_v32  ;;  %v1250_v49 = vadd.f32 %v1248_v35, %v1231_v22  ;;  %v1286_v6 = vmul.f32 %v1282_v1, %v5929_v2  ;;  %v5932_v32 = vld [vmem:[#allocation145_spill] sm:$0xff] }
 0x242   : > { %v1302_v37 = vsel %vm1300_vm9, %v5927_v41, %v5930_v20  ;;  %vm1376_vm7 = vcmask 637952   ;;  %v1251_v12 = vadd.f32 %v1249_v57, %v1232_v43  ;;  %v1287_v59 = vmul.f32 %v1283_v24, %v4484_v30  ;;  %v4755_v57 = vpop.permute.xlu1 %1584  ;;  %v5935_v20 = vld [vmem:[#allocation23_spill] sm:$0xff] }
 0x243   : > { %v1320_v35 = vsel %vm5597_vm10, %v5932_v32, %v5931_v4  ;;  %v4746_v19 = vmul.f32 %v3101_v62, %v1455_v36  ;;  %v1269_v1 = vadd.f32 %v1267_v27, %v1250_v49  ;;  %v1305_v22 = vmul.f32 %v1301_v56, %v4500_v8  ;;  %5934 = vst [vmem:[#allocation38_spill] sm:$0xff] %v4755_v57  ;;  %v4757_v30 = vpop.permute.xlu0 %1570  ;;  %v5936_v32 = vld [vmem:[#allocation22_spill] sm:$0xff]  ;;  %v5944_v57 = vld [vmem:[#allocation123_spill] sm:$0xff] }
 0x244   : > { %v1321_v41 = vsel %vm5597_vm10, %v5931_v4, %v5933_v40  ;;  %v1491_v2 = vstv %s4687_s19  ;;  %v1270_v24 = vadd.f32 %v1268_v42, %v1251_v12  ;;  %v1306_v43 = vmul.f32 %v1302_v37, %v4506_v39  ;;  %v5937_v4 = vld [vmem:[#allocation120_spill] sm:$0xff]  ;;  %1962 = vrot.lane.b32.xlu1 %v4531_v60, %s5938_s7  ;;  %1960 = vrot.lane.b32.xlu0 %v4534_v46, %s5938_s7  ;;  %v5940_v42 = vld [vmem:[#allocation121_spill] sm:$0xff]  ;;  %s5971_s19 = smov 110  }
 0x245   : > { %v1339_v8 = vsel %vm1338_vm8, %v5936_v32, %v5935_v20  ;;  %v4764_v27 = vmul.f32 %v3117_v3, %v1455_v36  ;;  %v1288_v56 = vadd.f32 %v1286_v6, %v1269_v1  ;;  %v1324_v49 = vmul.f32 %v1320_v35, %v4509_v45  ;;  %v5939_v36 = vld [vmem:[#allocation24_spill] sm:$0xff] }
 0x246   : > { %v1340_v40 = vsel %vm1338_vm8, %v5935_v20, %v5937_v4  ;;  %vm1395_vm10 = vcmask 629760   ;;  %v1289_v39 = vadd.f32 %v1287_v59, %v1270_v24  ;;  %v1325_v37 = vmul.f32 %v1321_v41, %v4546_v15  ;;  %v5942_v20 = vld [vmem:[#allocation27_spill] sm:$0xff]  ;;  %v4789_v59 = vpop.permute.xlu1 %1588 }
 0x247   : > { %v1358_v6 = vsel %vm1357_vm12, %v5940_v42, %v5939_v36  ;;  %v4779_v45 = vmul.f32 %v3128_v5, %v1491_v2  ;;  %v1307_v12 = vadd.f32 %v1305_v22, %v1288_v56  ;;  %v5941_v35 = vstv %s4600_s23  ;;  %v4791_v15 = vpop.permute.xlu0 %1586  ;;  %v5945_v5 = vld [vmem:[#allocation25_spill] sm:$0xff]  ;;  %s4900_s23 = sld [smem:[#allocation9 + $0x3b]] }
 0x248   : > { %v1343_v1 = vmul.f32 %v1339_v8, %v5941_v35  ;;  %v1359_v32 = vsel %vm1357_vm12, %v5939_v36, %v5942_v20  ;;  %v1509_v4 = vstv %s4720_s16  ;;  %v1308_v41 = vadd.f32 %v1306_v43, %v1289_v39  ;;  %1978 = vrot.lane.b32.xlu1 %v4534_v46, %s5947_s27  ;;  %1964 = vrot.lane.b32.xlu0 %v4569_v21, %s5938_s7  ;;  %s5978_s16 = smov 109   ;;  %s5986_s7 = smov 99  }
 0x249   : > { %v5943_v24 = vmov %v5941_v35  ;;  %v1377_v22 = vsel %vm1376_vm7, %v5945_v5, %v5944_v57  ;;  %v4799_v8 = vmul.f32 %v3135_v7, %v1491_v2  ;;  %v1326_v56 = vadd.f32 %v1324_v49, %v1307_v12  ;;  %v5946_v35 = vld [vmem:[#allocation28_spill] sm:$0xff]  ;;  %v5948_v2 = vld [vmem:[#allocation26_spill] sm:$0xff] }
 0x24a   : > { %v1344_v42 = vmul.f32 %v1340_v40, %v5943_v24  ;;  %v1362_v36 = vmul.f32 %v1358_v6, %v4576_v17  ;;  %v1378_v20 = vsel %vm1376_vm7, %v5944_v57, %v5946_v35  ;;  %v1327_v43 = vadd.f32 %v1325_v37, %v1308_v41  ;;  %v5949_v40 = vld [vmem:[#allocation122_spill] sm:$0xff]  ;;  %v5950_v6 = vld [vmem:[#allocation29_spill] sm:$0xff]  ;;  %v4825_v37 = vpop.permute.xlu1 %1604 }
 0x24b   : > { %v1363_v5 = vmul.f32 %v1359_v32, %v4594_v9  ;;  %v1396_v49 = vsel %vm1395_vm10, %v5949_v40, %v5948_v2  ;;  %v4816_v17 = vmul.f32 %v3142_v10, %v1509_v4  ;;  %v1345_v39 = vadd.f32 %v1343_v1, %v1326_v56  ;;  %v4827_v9 = vpop.permute.xlu0 %1602  ;;  %v5951_v35 = vld [vmem:[#allocation125_spill] sm:$0xff]  ;;  %v5952_v40 = vld [vmem:[#allocation124_spill] sm:$0xff] }
 0x24c   : > { %v1381_v57 = vmul.f32 %v1377_v22, %v4611_v48  ;;  %v1397_v12 = vsel %vm1395_vm10, %v5948_v2, %v5950_v6  ;;  %v1527_v24 = vstv %s4753_s4  ;;  %v1346_v32 = vadd.f32 %v1344_v42, %v1327_v43  ;;  %v5953_v2 = vld [vmem:[#allocation30_spill] sm:$0xff]  ;;  %1982 = vrot.lane.b32.xlu1 %v4569_v21, %s5947_s27  ;;  %1980 = vrot.lane.b32.xlu0 %v4531_v60, %s5947_s27  ;;  %v5955_v43 = vld [vmem:[#allocation33_spill] sm:$0xff]  ;;  %s4985_s4 = sld [smem:[#allocation9 + $0x41]]  ;;  %s5027_s27 = sld [smem:[#allocation9 + $0x43]] }
 0x24d   : > { %v1382_v41 = vmul.f32 %v1378_v20, %v4629_v53  ;;  %v1428_v1 = vsel %vm468_vm0, %v5952_v40, %v5951_v35  ;;  %v4834_v48 = vmul.f32 %v3145_v11, %v1509_v4  ;;  %v1364_v22 = vadd.f32 %v1362_v36, %v1345_v39  ;;  %v5954_v20 = vld [vmem:[#allocation126_spill] sm:$0xff]  ;;  %v5956_v39 = vld [vmem:[#allocation31_spill] sm:$0xff] }
 0x24e   : > { %v1400_v56 = vmul.f32 %v1396_v49, %v4644_v44  ;;  %v1429_v6 = vsel %vm468_vm0, %v5951_v35, %v5953_v2  ;;  %v1365_v53 = vadd.f32 %v1363_v5, %v1346_v32  ;;  %v1401_v42 = vmul.f32 %v1397_v12, %v4662_v28  ;;  %v4858_v5 = vpop.permute.xlu1 %1620  ;;  %v5957_v2 = vld [vmem:[#allocation34_spill] sm:$0xff] }
 0x24f   : > { %v1446_v4 = vsel %vm487_vm15, %v5955_v43, %v5954_v20  ;;  %v4849_v44 = vmul.f32 %v3152_v14, %v1527_v24  ;;  %v1383_v36 = vadd.f32 %v1381_v57, %v1364_v22  ;;  %v1432_v49 = vmul.f32 %v1428_v1, %v4680_v47  ;;  %v4860_v28 = vpop.permute.xlu0 %1606  ;;  %v5958_v43 = vld [vmem:[#allocation35_spill] sm:$0xff] }
 0x250   : > { %v1447_v35 = vsel %vm487_vm15, %v5954_v20, %v5956_v39  ;;  %v1545_v40 = vstv %s4787_s15  ;;  %v1384_v12 = vadd.f32 %v1382_v41, %v1365_v53  ;;  %v1433_v32 = vmul.f32 %v1429_v6, %v4698_v18  ;;  %v5959_v20 = vld [vmem:[#allocation127_spill] sm:$0xff]  ;;  %1998 = vrot.lane.b32.xlu1 %v4531_v60, %s5960_s22  ;;  %1996 = vrot.lane.b32.xlu0 %v4534_v46, %s5960_s22  ;;  %v5961_v6 = vld [vmem:[#allocation32_spill] sm:$0xff]  ;;  %s5989_s15 = smov 98  }
 0x251   : > { %v1464_v57 = vsel %vm506_vm1, %v5958_v43, %v5957_v2  ;;  %v1529_v47 = vmul.f32 %v3159_v16, %v1527_v24  ;;  %v1402_v1 = vadd.f32 %v1400_v56, %v1383_v36  ;;  %v1450_v22 = vmul.f32 %v1446_v4, %v4713_v13 }
 0x252   : > { %v1465_v39 = vsel %vm506_vm1, %v5957_v2, %v5959_v20  ;;  %v1473_v11 = vstv %s4805_s8  ;;  %v1403_v18 = vadd.f32 %v1401_v42, %v1384_v12  ;;  %v1451_v41 = vmul.f32 %v1447_v35, %v4731_v63  ;;  %v4886_v2 = vpop.permute.xlu1 %1624  ;;  %s5025_s8 = sld [smem:[#allocation9 + $0x42]] }
 0x253   : > { %v1482_v24 = vsel %vm525_vm3, %v5961_v6, %v4480_v33  ;;  %v1546_v13 = vmul.f32 %v3081_v51, %v1545_v40  ;;  %v1434_v56 = vadd.f32 %v1432_v49, %v1402_v1  ;;  %v1468_v53 = vmul.f32 %v1464_v57, %v4746_v19  ;;  %v4890_v42 = vpop.permute.xlu0 %1622  ;;  %v5964_v6 = vld [vmem:[#allocation130_spill] sm:$0xff] }
 0x254   : > { %v1483_v4 = vsel %vm525_vm3, %v4480_v33, %v4478_v34  ;;  %v1563_v36 = vstv %s4823_s28  ;;  %v1435_v63 = vadd.f32 %v1433_v32, %v1403_v18  ;;  %v1469_v35 = vmul.f32 %v1465_v39, %v4764_v27  ;;  %2014 = vrot.lane.b32.xlu1 %v4534_v46, %s5962_s29  ;;  %2000 = vrot.lane.b32.xlu0 %v4569_v21, %s5960_s22  ;;  %v5963_v39 = vld [vmem:[#allocation37_spill] sm:$0xff]  ;;  %s5992_s28 = smov 97   ;;  %s5995_s22 = smov 96  }
 0x255   : > { %v1500_v49 = vsel %vm544_vm4, %v4515_v61, %v4513_v0  ;;  %v1547_v19 = vmul.f32 %v3084_v52, %v1545_v40  ;;  %v1452_v12 = vadd.f32 %v1450_v22, %v1434_v56  ;;  %v1486_v43 = vmul.f32 %v1482_v24, %v1473_v11 }
 0x256   : > { %v1501_v34 = vsel %vm544_vm4, %v4513_v0, %v4553_v54  ;;  %v1453_v33 = vadd.f32 %v1451_v41, %v1435_v63  ;;  %v1487_v27 = vmul.f32 %v1483_v4, %v1473_v11  ;;  %v1518_v61 = vsel %vm563_vm5, %v4551_v29, %v4587_v31  ;;  %v4915_v1 = vpop.permute.xlu1 %1640 }
 0x257   : > { %v1564_v40 = vmul.f32 %v3089_v55, %v1563_v36  ;;  %v1470_v32 = vadd.f32 %v1468_v53, %v1452_v12  ;;  %v1504_v57 = vmul.f32 %v1500_v49, %v4779_v45  ;;  %v1519_v0 = vsel %vm563_vm5, %v4587_v31, %v4585_v23  ;;  %v4917_v22 = vpop.permute.xlu0 %1638  ;;  %v5968_v49 = vld [vmem:[#allocation41_spill] sm:$0xff] }
 0x258   : > { %v1581_v54 = vstv %s4856_s18  ;;  %v1471_v20 = vadd.f32 %v1469_v35, %v1453_v33  ;;  %v1505_v11 = vmul.f32 %v1501_v34, %v4799_v8  ;;  %v1536_v29 = vsel %vm582_vm6, %v5963_v39, %v4620_v50  ;;  %2018 = vrot.lane.b32.xlu1 %v4569_v21, %s5962_s29  ;;  %2016 = vrot.lane.b32.xlu0 %v4531_v60, %s5962_s29  ;;  %s2546_s18 = sld [smem:[#allocation9 + $0x44]]  ;;  %s2548_s29 = sld [smem:[#allocation9 + $0x46]] }
 0x259   : > { %v1565_v18 = vmul.f32 %v3096_v58, %v1563_v36  ;;  %v1488_v45 = vadd.f32 %v1486_v43, %v1470_v32  ;;  %v1522_v23 = vmul.f32 %v1518_v61, %v4816_v17  ;;  %v1537_v31 = vsel %vm582_vm6, %v4620_v50, %v4655_v26  ;;  %v5966_v26 = vld [vmem:[#allocation40_spill] sm:$0xff]  ;;  %v5974_v61 = vld [vmem:[#allocation19_spill] sm:$0xff] }
 0x25a   : > { %v1489_v8 = vadd.f32 %v1487_v27, %v1471_v20  ;;  %v1523_v41 = vmul.f32 %v1519_v0, %v4834_v48  ;;  %vm5965_vm15 = vcmask 285696   ;;  %v1582_v56 = vmul.f32 %v3101_v62, %v1581_v54  ;;  %v1657_v36 = vpop.permute.xlu1 %1656  ;;  %v5972_v27 = vld [vmem:[#allocation38_spill] sm:$0xff] }
 0x25b   : > { %v1554_v24 = vsel %vm5965_vm15, %v5964_v6, %v4691_v38  ;;  %v1506_v17 = vadd.f32 %v1504_v57, %v1488_v45  ;;  %v1540_v50 = vmul.f32 %v1536_v29, %v4849_v44  ;;  %vm5967_vm0 = vmmov %vm5965_vm15  ;;  %v1617_v4 = vstv %s4888_s25  ;;  %v1643_v63 = vpop.permute.xlu0 %1642  ;;  %s5049_s25 = sld [smem:[#allocation9 + $0x45]] }
 0x25c   : > { %v1555_v53 = vsel %vm5967_vm0, %v4691_v38, %v5966_v26  ;;  %v1507_v48 = vadd.f32 %v1505_v11, %v1489_v8  ;;  %v1541_v35 = vmul.f32 %v1537_v31, %v1529_v47  ;;  %vm5969_vm1 = vcmask 277504   ;;  %2034 = vrot.lane.b32.xlu1 %v4531_v60, %s5971_s19  ;;  %2032 = vrot.lane.b32.xlu0 %v4534_v46, %s5971_s19 }
 0x25d   : > { %v1572_v12 = vsel %vm5969_vm1, %v4724_v25, %v5968_v49  ;;  %v1583_v43 = vmul.f32 %v3117_v3, %v1581_v54  ;;  %v1524_v34 = vadd.f32 %v1522_v23, %v1506_v17  ;;  %v1558_v33 = vmul.f32 %v1554_v24, %v1546_v13  ;;  %vm5970_vm3 = vmmov %vm5969_vm1 }
 0x25e   : > { %v1573_v44 = vsel %vm5970_vm3, %v5968_v49, %v4757_v30  ;;  %v1599_v38 = vstv %s4900_s23  ;;  %v1525_v47 = vadd.f32 %v1523_v41, %v1507_v48  ;;  %v1559_v25 = vmul.f32 %v1555_v53, %v1547_v19  ;;  %v1661_v20 = vpop.permute.xlu1 %1660  ;;  %v5982_v49 = vld [vmem:[#allocation21_spill] sm:$0xff]  ;;  %s5998_s23 = smov 95  }
 0x25f   : > { %vm5973_vm4 = vcmask 269312   ;;  %v1618_v32 = vmul.f32 %v5974_v61, %v1617_v4  ;;  %v1542_v57 = vadd.f32 %v1540_v50, %v1524_v34  ;;  %v1576_v30 = vmul.f32 %v1572_v12, %v1564_v40  ;;  %v1659_v11 = vpop.permute.xlu0 %1658 }
 0x260   : > { %v1590_v13 = vsel %vm5973_vm4, %v5972_v27, %v4791_v15  ;;  %vm5975_vm5 = vmmov %vm5973_vm4  ;;  %v1619_v54 = vmul.f32 %v3135_v7, %v1617_v4  ;;  %v1543_v39 = vadd.f32 %v1541_v35, %v1525_v47  ;;  %v1577_v29 = vmul.f32 %v1573_v44, %v1565_v18  ;;  %2050 = vrot.lane.b32.xlu1 %v4534_v46, %s5978_s16 }
 0x261   : > { %v1591_v0 = vsel %vm5975_vm5, %v4791_v15, %v4789_v59  ;;  %vm5976_vm6 = vcmask 261120   ;;  %v1635_v45 = vstv %s4924_s30  ;;  %v1560_v23 = vadd.f32 %v1558_v33, %v1542_v57  ;;  %2036 = vrot.lane.b32.xlu0 %v4569_v21, %s5971_s19  ;;  %s6001_s30 = smov 94   ;;  %s5088_s19 = sld [smem:[#allocation9 + $0x48]] }
 0x262   : > { %v1608_v19 = vsel %vm5976_vm6, %v4827_v9, %v4825_v37  ;;  %v1594_v31 = vmul.f32 %v1590_v13, %v1582_v56  ;;  %vm5977_vm15 = vmmov %vm5976_vm6  ;;  %v1561_v59 = vadd.f32 %v1559_v25, %v1543_v39  ;;  %v1595_v15 = vmul.f32 %v1591_v0, %v1583_v43 }
 0x263   : > { %v1609_v40 = vsel %vm5977_vm15, %v4825_v37, %v4860_v28  ;;  %vm5979_vm0 = vcmask 252928   ;;  %v1653_v18 = vstv %s4939_s6  ;;  %v1578_v8 = vadd.f32 %v1576_v30, %v1560_v23  ;;  %v1677_v28 = vpop.permute.xlu1 %1676  ;;  %v1675_v24 = vpop.permute.xlu0 %1674  ;;  %s5072_s6 = sld [smem:[#allocation9 + $0x47]] }
 0x264   : > { %v1626_v9 = vsel %vm5979_vm0, %v4858_v5, %v4890_v42  ;;  %v1612_v41 = vmul.f32 %v1608_v19, %v1599_v38  ;;  %v1636_v37 = vmul.f32 %v3142_v10, %v1635_v45  ;;  %v1671_v6 = vstv %s4946_s17  ;;  %vm5980_vm1 = vmmov %vm5979_vm0  ;;  %2054 = vrot.lane.b32.xlu1 %v4569_v21, %s5978_s16  ;;  %s6004_s17 = smov 93  }
 0x265   : > { %v1579_v56 = vadd.f32 %v1577_v29, %v1561_v59  ;;  %v1613_v17 = vmul.f32 %v1609_v40, %v1599_v38  ;;  %v1627_v50 = vsel %vm5980_vm1, %v4890_v42, %v4886_v2  ;;  %vm5981_vm3 = vcmask 244736   ;;  %2052 = vrot.lane.b32.xlu0 %v4531_v60, %s5978_s16  ;;  %s5097_s16 = sld [smem:[#allocation9 + $0x49]] }
 0x266   : > { %v1644_v5 = vsel %vm5981_vm3, %v4917_v22, %v4915_v1  ;;  %v1596_v26 = vadd.f32 %v1594_v31, %v1578_v8  ;;  %v1630_v53 = vmul.f32 %v1626_v9, %v1618_v32  ;;  %v1654_v4 = vmul.f32 %v3152_v14, %v1653_v18  ;;  %vm5984_vm5 = vmmov %vm5981_vm3 }
 0x267   : > { %v1689_v48 = vstv %s4960_s24  ;;  %v1597_v35 = vadd.f32 %v1595_v15, %v1579_v56  ;;  %v1637_v12 = vmul.f32 %v5982_v49, %v1635_v45  ;;  %vm5983_vm4 = vcmask 236544   ;;  %v1693_v44 = vpop.permute.xlu1 %1692  ;;  %v1679_v38 = vpop.permute.xlu0 %1678  ;;  %s6007_s24 = smov 83  }
 0x268   : > { %v1662_v2 = vsel %vm5983_vm4, %v1657_v36, %v1659_v11  ;;  %v1672_v42 = vmul.f32 %v3081_v51, %v1671_v6  ;;  %v1614_v43 = vadd.f32 %v1612_v41, %v1596_v26  ;;  %v1631_v22 = vmul.f32 %v1627_v50, %v1619_v54  ;;  %vm5985_vm6 = vmmov %vm5983_vm4  ;;  %2070 = vrot.lane.b32.xlu1 %v4531_v60, %s5986_s7 }
 0x269   : > { %v1648_v34 = vmul.f32 %v1644_v5, %v1636_v37  ;;  %v1645_v33 = vsel %vm5984_vm5, %v4915_v1, %v1643_v63  ;;  %v1615_v47 = vadd.f32 %v1613_v17, %v1597_v35  ;;  %v1655_v25 = vmul.f32 %v3159_v16, %v1653_v18  ;;  %2068 = vrot.lane.b32.xlu0 %v4534_v46, %s5986_s7 }
 0x26a   : > { %v1680_v27 = vsel %vm734_vm14, %v1675_v24, %v1677_v28  ;;  %v1690_v13 = vmul.f32 %v3089_v55, %v1689_v48  ;;  %v1632_v32 = vadd.f32 %v1630_v53, %v1614_v43  ;;  %v1663_v36 = vsel %vm5985_vm6, %v1659_v11, %v1661_v20 }
 0x26b   : > { %v1666_v57 = vmul.f32 %v1662_v2, %v1654_v4  ;;  %v1649_v1 = vmul.f32 %v1645_v33, %v1637_v12  ;;  %v1673_v63 = vmul.f32 %v3084_v52, %v1671_v6  ;;  %v1707_v30 = vstv %s4985_s4  ;;  %v1697_v29 = vpop.permute.xlu1 %1696  ;;  %v1695_v45 = vpop.permute.xlu0 %1694  ;;  %s5099_s4 = sld [smem:[#allocation9 + $0x4a]] }
 0x26c   : > { %v1633_v0 = vadd.f32 %v1631_v22, %v1615_v47  ;;  %v1650_v54 = vadd.f32 %v1648_v34, %v1632_v32  ;;  %v1684_v39 = vmul.f32 %v1680_v27, %v1672_v42  ;;  %v1691_v19 = vmul.f32 %v3096_v58, %v1689_v48  ;;  %2086 = vrot.lane.b32.xlu1 %v4534_v46, %s5989_s15 }
 0x26d   : > { %v1667_v23 = vmul.f32 %v1663_v36, %v1655_v25  ;;  %v1681_v20 = vsel %vm734_vm14, %v1677_v28, %v1679_v38  ;;  %vm5987_vm15 = vcmask 146432   ;;  %2072 = vrot.lane.b32.xlu0 %v4569_v21, %s5986_s7  ;;  %v1708_v15 = vmul.f32 %v3101_v62, %v1707_v30  ;;  %s6011_s7 = smov 82  }
 0x26e   : > { %v1698_v11 = vsel %vm5987_vm15, %v1693_v44, %v1695_v45  ;;  %vm5988_vm0 = vmmov %vm5987_vm15  ;;  %v1668_v40 = vadd.f32 %v1666_v57, %v1650_v54  ;;  %v1651_v9 = vadd.f32 %v1649_v1, %v1633_v0  ;;  %v1685_v8 = vmul.f32 %v1681_v20, %v1673_v63 }
 0x26f   : > { %v1699_v31 = vsel %vm5988_vm0, %v1695_v45, %v1697_v29  ;;  %v1702_v59 = vmul.f32 %v1698_v11, %v1690_v13  ;;  %v1713_v41 = vpop.permute.xlu1 %1712  ;;  %v1711_v37 = vpop.permute.xlu0 %1710  ;;  %vm5990_vm14 = vcmask 138240   ;;  %v1709_v24 = vmul.f32 %v3117_v3, %v1707_v30 }
 0x270   : > { %v1686_v18 = vadd.f32 %v1684_v39, %v1668_v40  ;;  %v1669_v28 = vadd.f32 %v1667_v23, %v1651_v9  ;;  %v1716_v6 = vsel %vm5990_vm14, %v1711_v37, %v1713_v41  ;;  %v1703_v56 = vmul.f32 %v1699_v31, %v1691_v19  ;;  %2090 = vrot.lane.b32.xlu1 %v4569_v21, %s5989_s15  ;;  %vm5991_vm1 = vmmov %vm5990_vm14 }
 0x271   : > { %v1720_v50 = vmul.f32 %v1716_v6, %v1708_v15  ;;  %2088 = vrot.lane.b32.xlu0 %v4531_v60, %s5989_s15  ;;  %v1725_v2 = vstv %s5025_s8  ;;  %v1743_v42 = vstv %s5027_s27  ;;  %vm5993_vm3 = vcmask 130048   ;;  %s5117_s15 = sld [smem:[#allocation9 + $0x4b]]  ;;  %s6015_s8 = smov 81  }
 0x272   : > { %v1704_v17 = vadd.f32 %v1702_v59, %v1686_v18  ;;  %v1687_v5 = vadd.f32 %v1685_v8, %v1669_v28  ;;  %vm5994_vm4 = vmmov %vm5993_vm3  ;;  %v1744_v25 = vmul.f32 %v5974_v61, %v1743_v42  ;;  %vm5996_vm5 = vcmask 121856   ;;  %s5128_s27 = sld [smem:[#allocation9 + $0x4c]] }
 0x273   : > { %v1729_v53 = vpop.permute.xlu1 %1728  ;;  %v1715_v4 = vpop.permute.xlu0 %1714  ;;  %v1745_v63 = vmul.f32 %v3135_v7, %v1743_v42  ;;  %v1761_v30 = vstv %s2546_s18  ;;  %vm5997_vm6 = vmmov %vm5996_vm5  ;;  %v1779_v20 = vstv %s5049_s25  ;;  %vm5999_vm15 = vcmask 113664   ;;  %s2555_s18 = sld [smem:[#allocation9 + $0x4d]]  ;;  %s5152_s25 = sld [smem:[#allocation9 + $0x4e]] }
 0x274   : > { %v1722_v26 = vadd.f32 %v1720_v50, %v1704_v17  ;;  %v1717_v48 = vsel %vm5991_vm1, %v1713_v41, %v1715_v4  ;;  %v1705_v35 = vadd.f32 %v1703_v56, %v1687_v5  ;;  %2106 = vrot.lane.b32.xlu1 %v4531_v60, %s5992_s28  ;;  %v1762_v45 = vmul.f32 %v3142_v10, %v1761_v30  ;;  %vm6000_vm0 = vmmov %vm5999_vm15 }
 0x275   : > { %v1721_v12 = vmul.f32 %v1717_v48, %v1709_v24  ;;  %2104 = vrot.lane.b32.xlu0 %v4534_v46, %s5992_s28  ;;  %v1763_v23 = vmul.f32 %v5982_v49, %v1761_v30  ;;  %v1780_v8 = vmul.f32 %v3152_v14, %v1779_v20  ;;  %vm6002_vm14 = vcmask 105472  }
 0x276   : > { %v1781_v17 = vmul.f32 %v3159_v16, %v1779_v20  ;;  %v1797_v50 = vstv %s2548_s29  ;;  %vm6003_vm1 = vmmov %vm6002_vm14  ;;  %v1833_v30 = vstv %s5088_s19  ;;  %s2557_s29 = sld [smem:[#allocation9 + $0x4f]]  ;;  %s2560_s19 = sld [smem:[#allocation9 + $0x52]] }
 0x277   : > { %v1723_v43 = vadd.f32 %v1721_v12, %v1705_v35  ;;  %v1733_v22 = vpop.permute.xlu1 %1732  ;;  %v1731_v34 = vpop.permute.xlu0 %1730  ;;  %v1798_v35 = vmul.f32 %v3081_v51, %v1797_v50  ;;  %v1799_v12 = vmul.f32 %v3084_v52, %v1797_v50  ;;  %v1834_v20 = vmul.f32 %v3101_v62, %v1833_v30 }
 0x278   : > { %v1734_v33 = vsel %vm5993_vm3, %v1729_v53, %v1731_v34  ;;  %v1735_v44 = vsel %vm5994_vm4, %v1731_v34, %v1733_v22  ;;  %2122 = vrot.lane.b32.xlu1 %v4534_v46, %s5995_s22  ;;  %vm6005_vm3 = vcmask 23552  }
 0x279   : > { %v1738_v38 = vmul.f32 %v1734_v33, %v1725_v2  ;;  %v1739_v47 = vmul.f32 %v1735_v44, %v1725_v2  ;;  %2108 = vrot.lane.b32.xlu0 %v4569_v21, %s5992_s28  ;;  %v1815_v2 = vstv %s5072_s6  ;;  %vm6006_vm4 = vmmov %vm6005_vm3  ;;  %s6018_s28 = smov 80   ;;  %s2558_s6 = sld [smem:[#allocation9 + $0x50]] }
 0x27b   : > { %v1740_v27 = vadd.f32 %v1738_v38, %v1722_v26  ;;  %v1741_v13 = vadd.f32 %v1739_v47, %v1723_v43  ;;  %v1749_v32 = vpop.permute.xlu1 %1748  ;;  %v1747_v36 = vpop.permute.xlu0 %1746  ;;  %v1816_v47 = vmul.f32 %v3089_v55, %v1815_v2 }
 0x27c   : > { %v1752_v57 = vsel %vm5996_vm5, %v1747_v36, %v1749_v32  ;;  %2126 = vrot.lane.b32.xlu1 %v4569_v21, %s5995_s22  ;;  %vm6008_vm5 = vcmask 15360  }
 0x27d   : > { %v1756_v1 = vmul.f32 %v1752_v57, %v1744_v25  ;;  %2124 = vrot.lane.b32.xlu0 %v4531_v60, %s5995_s22  ;;  %s6021_s22 = smov 79  }
 0x27f   : > { %v1758_v0 = vadd.f32 %v1756_v1, %v1740_v27  ;;  %v1765_v54 = vpop.permute.xlu1 %1764  ;;  %v1751_v39 = vpop.permute.xlu0 %1750  ;;  %v1817_v1 = vmul.f32 %v3096_v58, %v1815_v2  ;;  %v1903_v2 = vstv %s5117_s15  ;;  %s5236_s15 = sld [smem:[#allocation9 + $0x58]] }
 0x280   : > { %v1753_v29 = vsel %vm5997_vm6, %v1749_v32, %v1751_v39  ;;  %2142 = vrot.lane.b32.xlu1 %v4531_v60, %s5998_s23  ;;  %vm6009_vm6 = vmmov %vm6008_vm5 }
 0x281   : > { %v1757_v19 = vmul.f32 %v1753_v29, %v1745_v63  ;;  %2140 = vrot.lane.b32.xlu0 %v4534_v46, %s5998_s23  ;;  %v1850_v63 = vld [vmem:[#allocation4 + $0x5] sm:$0x3] }
 0x283   : > { %v1759_v11 = vadd.f32 %v1757_v19, %v1741_v13  ;;  %v1769_v31 = vpop.permute.xlu1 %1768  ;;  %v1767_v40 = vpop.permute.xlu0 %1766  ;;  %v6010_v19 = vld [vmem:[#allocation17_spill] sm:$0xff] }
 0x284   : > { %v1770_v59 = vsel %vm5999_vm15, %v1765_v54, %v1767_v40  ;;  %v1771_v15 = vsel %vm6000_vm0, %v1767_v40, %v1769_v31  ;;  %2158 = vrot.lane.b32.xlu1 %v4534_v46, %s6001_s30  ;;  %v1852_v31 = vstv %s5097_s16  ;;  %v1872_v40 = vstv %s5099_s4  ;;  %s2562_s16 = sld [smem:[#allocation9 + $0x54]]  ;;  %s2563_s4 = sld [smem:[#allocation9 + $0x55]] }
 0x285   : > { %v1774_v9 = vmul.f32 %v1770_v59, %v1762_v45  ;;  %v1775_v18 = vmul.f32 %v1771_v15, %v1763_v23  ;;  %2144 = vrot.lane.b32.xlu0 %v4569_v21, %s5998_s23  ;;  %v1859_v45 = vrot.slane %v1850_v63, %v6010_v19  ;;  %vm6012_vm15 = vcmask 7168   ;;  %s6024_s23 = smov 78  }
 0x286   : > { %vm6013_vm0 = vmmov %vm6012_vm15 }
 0x287   : > { %v1776_v41 = vadd.f32 %v1774_v9, %v1758_v0  ;;  %v1777_v37 = vadd.f32 %v1775_v18, %v1759_v11  ;;  %v1785_v28 = vpop.permute.xlu1 %1784  ;;  %v1783_v6 = vpop.permute.xlu0 %1782  ;;  %v1835_v11 = vmul.f32 %v3117_v3, %v1833_v30 }
 0x288   : > { %v1788_v24 = vsel %vm6002_vm14, %v1783_v6, %v1785_v28  ;;  %2162 = vrot.lane.b32.xlu1 %v4569_v21, %s6001_s30  ;;  %vm6016_vm14 = vcmask 1039360  }
 0x289   : > { %v1792_v56 = vmul.f32 %v1788_v24, %v1780_v8  ;;  %2160 = vrot.lane.b32.xlu0 %v4531_v60, %s6001_s30  ;;  %s6027_s30 = smov 77  }
 0x28b   : > { %v1794_v5 = vadd.f32 %v1792_v56, %v1776_v41  ;;  %v1801_v26 = vpop.permute.xlu1 %1800  ;;  %v1787_v53 = vpop.permute.xlu0 %1786  ;;  %v1866_v41 = vmul.f32 %v1859_v45, %v1852_v31  ;;  %v1873_v56 = vmul.f32 %v5974_v61, %v1872_v40 }
 0x28c   : > { %v1789_v4 = vsel %vm6003_vm1, %v1785_v28, %v1787_v53  ;;  %2178 = vrot.lane.b32.xlu1 %v4531_v60, %s6004_s17  ;;  %vm6017_vm1 = vmmov %vm6016_vm14 }
 0x28d   : > { %v1793_v48 = vmul.f32 %v1789_v4, %v1781_v17  ;;  %2176 = vrot.lane.b32.xlu0 %v4534_v46, %s6004_s17 }
 0x28f   : > { %v1795_v42 = vadd.f32 %v1793_v48, %v1777_v37  ;;  %v1805_v43 = vpop.permute.xlu1 %1804  ;;  %v1803_v22 = vpop.permute.xlu0 %1802  ;;  %v6014_v37 = vld [vmem:[#allocation18_spill] sm:$0xff] }
 0x290   : > { %v1806_v34 = vsel %vm6005_vm3, %v1801_v26, %v1803_v22  ;;  %v1807_v33 = vsel %vm6006_vm4, %v1803_v22, %v1805_v43  ;;  %2194 = vrot.lane.b32.xlu1 %v4534_v46, %s6007_s24  ;;  %v1863_v28 = vrot.slane %v1850_v63, %v6014_v37  ;;  %vm6019_vm3 = vcmask 1031168  }
 0x291   : > { %v1810_v44 = vmul.f32 %v1806_v34, %v1798_v35  ;;  %v1811_v38 = vmul.f32 %v1807_v33, %v1799_v12  ;;  %2180 = vrot.lane.b32.xlu0 %v4569_v21, %s6004_s17  ;;  %v1874_v12 = vmul.f32 %v3135_v7, %v1872_v40  ;;  %v1904_v33 = vmul.f32 %v3142_v10, %v1903_v2  ;;  %vm6020_vm4 = vmmov %vm6019_vm3  ;;  %s2559_s17 = sld [smem:[#allocation9 + $0x51]] }
 0x292   : > { %v1867_v4 = vmul.f32 %v1863_v28, %v1852_v31 }
 0x293   : > { %v1812_v25 = vadd.f32 %v1810_v44, %v1794_v5  ;;  %v1813_v27 = vadd.f32 %v1811_v38, %v1795_v42  ;;  %v1821_v13 = vpop.permute.xlu1 %1820  ;;  %v1819_v32 = vpop.permute.xlu0 %1818 }
 0x294   : > { %v1824_v36 = vsel %vm6008_vm5, %v1819_v32, %v1821_v13  ;;  %2198 = vrot.lane.b32.xlu1 %v4569_v21, %s6007_s24  ;;  %vm6022_vm5 = vcmask 1022976  }
 0x295   : > { %v1828_v57 = vmul.f32 %v1824_v36, %v1816_v47  ;;  %2196 = vrot.lane.b32.xlu0 %v4531_v60, %s6007_s24  ;;  %v1905_v47 = vmul.f32 %v5982_v49, %v1903_v2  ;;  %s2561_s24 = sld [smem:[#allocation9 + $0x53]] }
 0x297   : > { %v1830_v0 = vadd.f32 %v1828_v57, %v1812_v25  ;;  %v1837_v54 = vpop.permute.xlu1 %1836  ;;  %v1823_v39 = vpop.permute.xlu0 %1822  ;;  %v1921_v25 = vstv %s5128_s27  ;;  %s5240_s27 = sld [smem:[#allocation9 + $0x57]] }
 0x298   : > { %v1825_v29 = vsel %vm6009_vm6, %v1821_v13, %v1823_v39  ;;  %2214 = vrot.lane.b32.xlu1 %v4531_v60, %s6011_s7  ;;  %v1922_v30 = vmul.f32 %v3152_v14, %v1921_v25  ;;  %vm6023_vm6 = vmmov %vm6022_vm5 }
 0x299   : > { %v1829_v23 = vmul.f32 %v1825_v29, %v1817_v1  ;;  %2212 = vrot.lane.b32.xlu0 %v4534_v46, %s6011_s7 }
 0x29b   : > { %v1831_v59 = vadd.f32 %v1829_v23, %v1813_v27  ;;  %v1841_v15 = vpop.permute.xlu1 %1840  ;;  %v1839_v9 = vpop.permute.xlu0 %1838  ;;  %v1923_v23 = vmul.f32 %v3159_v16, %v1921_v25 }
 0x29c   : > { %v1842_v18 = vsel %vm6012_vm15, %v1837_v54, %v1839_v9  ;;  %v1843_v8 = vsel %vm6013_vm0, %v1839_v9, %v1841_v15  ;;  %2230 = vrot.lane.b32.xlu1 %v4534_v46, %s6015_s8  ;;  %vm6025_vm15 = vcmask 941056  }
 0x29d   : > { %v1846_v6 = vmul.f32 %v1842_v18, %v1834_v20  ;;  %v1847_v24 = vmul.f32 %v1843_v8, %v1835_v11  ;;  %2216 = vrot.lane.b32.xlu0 %v4569_v21, %s6011_s7  ;;  %v1939_v20 = vstv %s2555_s18  ;;  %v1957_v8 = vstv %s5152_s25  ;;  %vm6026_vm0 = vmmov %vm6025_vm15  ;;  %s5230_s7 = sld [smem:[#allocation9 + $0x56]]  ;;  %s5254_s18 = sld [smem:[#allocation9 + $0x5b]] }
 0x29e   : > { %v1940_v9 = vmul.f32 %v3081_v51, %v1939_v20  ;;  %v1941_v18 = vmul.f32 %v3084_v52, %v1939_v20  ;;  %s5290_s25 = sld [smem:[#allocation9 + $0x5d]] }
 0x29f   : > { %v1848_v17 = vadd.f32 %v1846_v6, %v1830_v0  ;;  %v1849_v50 = vadd.f32 %v1847_v24, %v1831_v59  ;;  %v1891_v5 = vpop.permute.xlu1 %1890  ;;  %v1889_v26 = vpop.permute.xlu0 %1888 }
 0x2a0   : > { %v1894_v53 = vsel %vm6016_vm14, %v1889_v26, %v1891_v5  ;;  %2234 = vrot.lane.b32.xlu1 %v4569_v21, %s6015_s8  ;;  %vm6028_vm14 = vcmask 932864  }
 0x2a1   : > { %v1868_v48 = vadd.f32 %v1866_v41, %v1848_v17  ;;  %v1898_v35 = vmul.f32 %v1894_v53, %v1873_v56  ;;  %2232 = vrot.lane.b32.xlu0 %v4531_v60, %s6015_s8  ;;  %v1869_v44 = vadd.f32 %v1867_v4, %v1849_v50  ;;  %v1958_v50 = vmul.f32 %v3089_v55, %v1957_v8  ;;  %s5238_s8 = sld [smem:[#allocation9 + $0x59]] }
 0x2a3   : > { %v1900_v42 = vadd.f32 %v1898_v35, %v1868_v48  ;;  %v1907_v43 = vpop.permute.xlu1 %1906  ;;  %v1893_v22 = vpop.permute.xlu0 %1892 }
 0x2a4   : > { %v1895_v34 = vsel %vm6017_vm1, %v1891_v5, %v1893_v22  ;;  %2250 = vrot.lane.b32.xlu1 %v4531_v60, %s6018_s28  ;;  %vm6029_vm1 = vmmov %vm6028_vm14 }
 0x2a5   : > { %v1899_v38 = vmul.f32 %v1895_v34, %v1874_v12  ;;  %2248 = vrot.lane.b32.xlu0 %v4534_v46, %s6018_s28  ;;  %v1975_v12 = vstv %s2557_s29  ;;  %s5320_s29 = sld [smem:[#allocation9 + $0x60]] }
 0x2a7   : > { %v1901_v27 = vadd.f32 %v1899_v38, %v1869_v44  ;;  %v1911_v13 = vpop.permute.xlu1 %1910  ;;  %v1909_v32 = vpop.permute.xlu0 %1908  ;;  %v1977_v44 = vmul.f32 %v3117_v3, %v1975_v12 }
 0x2a8   : > { %v1912_v36 = vsel %vm6019_vm3, %v1907_v43, %v1909_v32  ;;  %v1913_v57 = vsel %vm6020_vm4, %v1909_v32, %v1911_v13  ;;  %2266 = vrot.lane.b32.xlu1 %v4534_v46, %s6021_s22  ;;  %vm6030_vm3 = vcmask 924672   ;;  %v1993_v32 = vstv %s2558_s6  ;;  %s5348_s6 = sld [smem:[#allocation9 + $0x61]] }
 0x2a9   : > { %v1916_v1 = vmul.f32 %v1912_v36, %v1904_v33  ;;  %v1917_v63 = vmul.f32 %v1913_v57, %v1905_v47  ;;  %2252 = vrot.lane.b32.xlu0 %v4569_v21, %s6018_s28  ;;  %v1976_v33 = vmul.f32 %v3101_v62, %v1975_v12  ;;  %vm6031_vm4 = vmmov %vm6030_vm3  ;;  %s5246_s28 = sld [smem:[#allocation9 + $0x5a]] }
 0x2ab   : > { %v1918_v0 = vadd.f32 %v1916_v1, %v1900_v42  ;;  %v1919_v54 = vadd.f32 %v1917_v63, %v1901_v27  ;;  %v1927_v39 = vpop.permute.xlu1 %1926  ;;  %v1925_v29 = vpop.permute.xlu0 %1924 }
 0x2ac   : > { %v1930_v19 = vsel %vm6022_vm5, %v1925_v29, %v1927_v39  ;;  %2270 = vrot.lane.b32.xlu1 %v4569_v21, %s6021_s22  ;;  %vm6032_vm5 = vcmask 916480  }
 0x2ad   : > { %v1934_v45 = vmul.f32 %v1930_v19, %v1922_v30  ;;  %2268 = vrot.lane.b32.xlu0 %v4531_v60, %s6021_s22  ;;  %s5274_s22 = sld [smem:[#allocation9 + $0x5c]] }
 0x2af   : > { %v1936_v11 = vadd.f32 %v1934_v45, %v1918_v0  ;;  %v1943_v31 = vpop.permute.xlu1 %1942  ;;  %v1929_v40 = vpop.permute.xlu0 %1928 }
 0x2b0   : > { %v1931_v59 = vsel %vm6023_vm6, %v1927_v39, %v1929_v40  ;;  %2286 = vrot.lane.b32.xlu1 %v4531_v60, %s6024_s23  ;;  %vm6033_vm6 = vmmov %vm6032_vm5 }
 0x2b1   : > { %v1935_v15 = vmul.f32 %v1931_v59, %v1923_v23  ;;  %2284 = vrot.lane.b32.xlu0 %v4534_v46, %s6024_s23 }
 0x2b3   : > { %v1937_v41 = vadd.f32 %v1935_v15, %v1919_v54  ;;  %v1947_v37 = vpop.permute.xlu1 %1946  ;;  %v1945_v28 = vpop.permute.xlu0 %1944  ;;  %v2011_v54 = vstv %s2559_s17  ;;  %s2466_s17 = sshll.u32 %s3052_s21, 1 }
 0x2b4   : > { %v1948_v6 = vsel %vm6025_vm15, %v1943_v31, %v1945_v28  ;;  %v1949_v24 = vsel %vm6026_vm0, %v1945_v28, %v1947_v37  ;;  %2302 = vrot.lane.b32.xlu1 %v4534_v46, %s6027_s30  ;;  %v1959_v46 = vmul.f32 %v3096_v58, %v1957_v8  ;;  %v2012_v20 = vmul.f32 %v5974_v61, %v2011_v54 }
 0x2b5   : > { %v1952_v56 = vmul.f32 %v1948_v6, %v1940_v9  ;;  %v1953_v17 = vmul.f32 %v1949_v24, %v1941_v18  ;;  %2288 = vrot.lane.b32.xlu0 %v4569_v21, %s6024_s23  ;;  %vm6034_vm15 = vcmask 908288   ;;  %s5310_s23 = sld [smem:[#allocation9 + $0x5f]] }
 0x2b6   : > { %vm6035_vm0 = vmmov %vm6034_vm15 }
 0x2b7   : > { %v1954_v5 = vadd.f32 %v1952_v56, %v1936_v11  ;;  %v1955_v26 = vadd.f32 %v1953_v17, %v1937_v41  ;;  %v1963_v53 = vpop.permute.xlu1 %1962  ;;  %v1961_v4 = vpop.permute.xlu0 %1960  ;;  %v2013_v11 = vmul.f32 %v3135_v7, %v2011_v54 }
 0x2b8   : > { %v1966_v48 = vsel %vm6028_vm14, %v1961_v4, %v1963_v53  ;;  %2306 = vrot.lane.b32.xlu1 %v4569_v21, %s6027_s30  ;;  %vm6036_vm14 = vcmask 900096  }
 0x2b9   : > { %v1970_v35 = vmul.f32 %v1966_v48, %v1958_v50  ;;  %2304 = vrot.lane.b32.xlu0 %v4531_v60, %s6027_s30  ;;  %s5330_s30 = sld [smem:[#allocation9 + $0x5e]] }
 0x2bb   : > { %v1972_v2 = vadd.f32 %v1970_v35, %v1954_v5  ;;  %v1979_v42 = vpop.permute.xlu1 %1978  ;;  %v1965_v43 = vpop.permute.xlu0 %1964 }
 0x2bc   : > { %v1967_v22 = vsel %vm6029_vm1, %v1963_v53, %v1965_v43  ;;  %vm6037_vm1 = vmmov %vm6036_vm14 }
 0x2bd   : > { %v1971_v34 = vmul.f32 %v1967_v22, %v1959_v46 }
 0x2bf   : > { %v1973_v38 = vadd.f32 %v1971_v34, %v1955_v26  ;;  %v1983_v21 = vpop.permute.xlu1 %1982  ;;  %v1981_v47 = vpop.permute.xlu0 %1980 }
 0x2c0   : > { %v1984_v60 = vsel %vm6030_vm3, %v1979_v42, %v1981_v47  ;;  %v1985_v25 = vsel %vm6031_vm4, %v1981_v47, %v1983_v21  ;;  %vm6040_vm3 = vcmask 891904  }
 0x2c1   : > { %v1988_v27 = vmul.f32 %v1984_v60, %v1976_v33  ;;  %v1989_v13 = vmul.f32 %v1985_v25, %v1977_v44  ;;  %vm6041_vm4 = vmmov %vm6040_vm3 }
 0x2c3   : > { %v1990_v36 = vadd.f32 %v1988_v27, %v1972_v2  ;;  %v1991_v57 = vadd.f32 %v1989_v13, %v1973_v38  ;;  %v1999_v1 = vpop.permute.xlu1 %1998  ;;  %v1997_v63 = vpop.permute.xlu0 %1996 }
 0x2c4   : > { %v2002_v30 = vsel %vm6032_vm5, %v1997_v63, %v1999_v1  ;;  %v2065_v63 = vstv %s2562_s16  ;;  %vm6042_vm5 = vcmask 809984  }
 0x2c5   : > { %v2006_v0 = vmul.f32 %v2002_v30, %v1993_v32  ;;  %v2083_v30 = vstv %s2563_s4 }
 0x2c7   : > { %v2008_v39 = vadd.f32 %v2006_v0, %v1990_v36  ;;  %v2015_v29 = vpop.permute.xlu1 %2014  ;;  %v2001_v19 = vpop.permute.xlu0 %2000  ;;  %v2047_v36 = vstv %s2561_s24  ;;  %s189_s24 = scalar_lea.vmem [#allocation10], %s2466_s17 }
 0x2c8   : > { %v2003_v45 = vsel %vm6033_vm6, %v1999_v1, %v2001_v19  ;;  %v2048_v19 = vmul.f32 %v3152_v14, %v2047_v36  ;;  %vm6043_vm6 = vmmov %vm6042_vm5  ;;  %s2362_s16 = sshll.u32 %s189_s24, 4  ;;  %s5386_s16 = int_to_ptr.vmem [resolvable:$true] %s2362_s16 }
 0x2c9   : > { %v2007_v23 = vmul.f32 %v2003_v45, %v1993_v32  ;;  %v2029_v32 = vstv %s2560_s19  ;;  %v2101_v45 = vstv %s5230_s7  ;;  %s2584_s19 = sshll.u32 %s2840_s12, 5  ;;  %s2348_s12 = scalar_lea.sflag [#allocation7], %s3052_s21 }
 0x2ca   : > { %v2030_v0 = vmul.f32 %v3142_v10, %v2029_v32  ;;  %v2031_v54 = vmul.f32 %v5982_v49, %v2029_v32  ;;  %v2155_v32 = vstv %s5238_s8  ;;  %s2762_s8 = scalar_lea.vmem %s5386_s16, 32 }
 0x2cb   : > { %v2009_v31 = vadd.f32 %v2007_v23, %v1991_v57  ;;  %v2019_v40 = vpop.permute.xlu1 %2018  ;;  %v2017_v59 = vpop.permute.xlu0 %2016  ;;  %v2049_v23 = vmul.f32 %v3159_v16, %v2047_v36  ;;  %p2763_p8 = scmp.ne.s32.totalorder %s5386_s16, %s2762_s8 }
 0x2cc   : > { %v2020_v15 = vsel %vm6034_vm15, %v2015_v29, %v2017_v59  ;;  %v2021_v9 = vsel %vm6035_vm0, %v2017_v59, %v2019_v40  ;;  %vm6044_vm15 = vcmask 801792  }
 0x2cd   : > { %v2024_v18 = vmul.f32 %v2020_v15, %v2012_v20  ;;  %v2025_v8 = vmul.f32 %v2021_v9, %v2013_v11  ;;  %v2066_v20 = vmul.f32 %v3081_v51, %v2065_v63  ;;  %v2067_v11 = vmul.f32 %v3084_v52, %v2065_v63  ;;  %vm6045_vm0 = vmmov %vm6044_vm15  ;;  %p2764_p12 = pnand %p2763_p8, %p6061_p2 }
 0x2cf   : > { %v5192_v41 = vadd.f32 %v2024_v18, %v2008_v39  ;;  %v5194_v37 = vadd.f32 %v2025_v8, %v2009_v31  ;;  %v2035_v28 = vpop.permute.xlu1 %2034  ;;  %v2033_v6 = vpop.permute.xlu0 %2032  ;;  %v2084_v31 = vmul.f32 %v3089_v55, %v2083_v30  ;;  %v2085_v18 = vmul.f32 %v3096_v58, %v2083_v30  ;;  %p2765_p5 = pneg %p2764_p12 }
 0x2d0   : > { %v2038_v39 = vsel %vm6036_vm14, %v2033_v6, %v2035_v28  ;;  %v2137_v8 = vstv %s5236_s15  ;;  %vm6046_vm14 = vcmask 793600   ;;  %s5384_s15 = scalar_lea.hbm %s5437_s2, %s2584_s19 }
 0x2d1   : > { %v2139_v30 = vmul.f32 %v3135_v7, %v2137_v8 }
 0x2d3   : > { %v2051_v24 = vpop.permute.xlu1 %2050  ;;  %v2037_v56 = vpop.permute.xlu0 %2036 }
 0x2d4   : > { %v2039_v29 = vsel %vm6037_vm1, %v2035_v28, %v2037_v56  ;;  %v2042_v28 = vmul.f32 %v2038_v39, %v2030_v0  ;;  %v2102_v56 = vmul.f32 %v3101_v62, %v2101_v45  ;;  %v2173_v39 = vstv %s5246_s28  ;;  %vm6047_vm1 = vmmov %vm6046_vm14 }
 0x2d5   : > { %v2043_v6 = vmul.f32 %v2039_v29, %v2031_v54 }
 0x2d6   : > { %v2044_v29 = vadd.f32 %v2042_v28, %v5192_v41 }
 0x2d7   : > { %v2055_v17 = vpop.permute.xlu1 %2054  ;;  %v2053_v50 = vpop.permute.xlu0 %2052 }
 0x2d8   : > { %v2056_v15 = vsel %vm6040_vm3, %v2051_v24, %v2053_v50  ;;  %v2057_v9 = vsel %vm6041_vm4, %v2053_v50, %v2055_v17  ;;  %v2138_v50 = vmul.f32 %v5974_v61, %v2137_v8  ;;  %vm6048_vm3 = vcmask 785408  }
 0x2d9   : > { %v2060_v24 = vmul.f32 %v2056_v15, %v2048_v19  ;;  %v2061_v17 = vmul.f32 %v2057_v9, %v2049_v23  ;;  %v2045_v19 = vadd.f32 %v2043_v6, %v5194_v37  ;;  %vm6049_vm4 = vmmov %vm6048_vm3 }
 0x2db   : > { %v2071_v5 = vpop.permute.xlu1 %2070  ;;  %v2069_v26 = vpop.permute.xlu0 %2068  ;;  %v2062_v9 = vadd.f32 %v2060_v24, %v2044_v29  ;;  %v2063_v8 = vadd.f32 %v2061_v17, %v2045_v19 }
 0x2dc   : > { %v2074_v36 = vsel %vm6042_vm5, %v2069_v26, %v2071_v5  ;;  %vm6050_vm5 = vcmask 769024  }
 0x2df   : > { %v5196_v53 = vpop.permute.xlu1 %2086  ;;  %v2073_v4 = vpop.permute.xlu0 %2072 }
 0x2e0   : > { %v2075_v63 = vsel %vm6043_vm6, %v2071_v5, %v2073_v4  ;;  %v2156_v4 = vmul.f32 %v3142_v10, %v2155_v32  ;;  %vm6051_vm6 = vmmov %vm6050_vm5 }
 0x2e1   : > { %v2079_v23 = vmul.f32 %v2075_v63, %v2067_v11 }
 0x2e3   : > { %v5198_v48 = vpop.permute.xlu1 %2090  ;;  %v5200_v35 = vpop.permute.xlu0 %2088 }
 0x2e4   : > { %v2092_v5 = vsel %vm6044_vm15, %v5196_v53, %v5200_v35  ;;  %v2093_v26 = vsel %vm6045_vm0, %v5200_v35, %v5198_v48  ;;  %v2157_v48 = vmul.f32 %v5982_v49, %v2155_v32  ;;  %v2191_v35 = vstv %s5254_s18 }
 0x2e5   : > { %v2096_v10 = vmul.f32 %v2092_v5, %v2084_v31  ;;  %v2097_v41 = vmul.f32 %v2093_v26, %v2085_v18  ;;  %v2081_v31 = vadd.f32 %v2079_v23, %v2063_v8 }
 0x2e7   : > { %v5202_v46 = vpop.permute.xlu1 %2106  ;;  %v5204_v12 = vpop.permute.xlu0 %2104  ;;  %v2099_v63 = vadd.f32 %v2097_v41, %v2081_v31 }
 0x2e8   : > { %v2110_v15 = vsel %vm6046_vm14, %v5204_v12, %v5202_v46 }
 0x2e9   : > { %v2114_v6 = vmul.f32 %v2110_v15, %v2102_v56 }
 0x2eb   : > { %v5206_v2 = vpop.permute.xlu1 %2122  ;;  %v5208_v42 = vpop.permute.xlu0 %2108 }
 0x2ec   : > { %v2111_v53 = vsel %vm6047_vm1, %v5202_v46, %v5208_v42  ;;  %v2174_v46 = vmul.f32 %v3152_v14, %v2173_v39  ;;  %v2175_v42 = vmul.f32 %v3159_v16, %v2173_v39 }
 0x2ef   : > { %v5210_v43 = vpop.permute.xlu1 %2126  ;;  %v5212_v22 = vpop.permute.xlu0 %2124 }
 0x2f0   : > { %v2129_v12 = vsel %vm6049_vm4, %v5212_v22, %v5210_v43  ;;  %v2192_v43 = vmul.f32 %v3081_v51, %v2191_v35  ;;  %v2227_v51 = vstv %s5290_s25 }
 0x2f3   : > { %v5214_v34 = vpop.permute.xlu1 %2142  ;;  %v5216_v33 = vpop.permute.xlu0 %2140 }
 0x2f4   : > { %v2146_v32 = vsel %vm1224_vm11, %v5216_v33, %v5214_v34 }
 0x2f5   : > { %v2150_v26 = vmul.f32 %v2146_v32, %v2138_v50 }
 0x2f7   : > { %v5218_v44 = vpop.permute.xlu1 %2158  ;;  %v5220_v38 = vpop.permute.xlu0 %2144 }
 0x2fb   : > { %v5222_v21 = vpop.permute.xlu1 %2162  ;;  %v5224_v47 = vpop.permute.xlu0 %2160 }
 0x2fc   : > { %v2165_v33 = vsel %vm6051_vm6, %v5224_v47, %v5222_v21 }
 0x2ff   : > { %v5226_v60 = vpop.permute.xlu1 %2178  ;;  %v5228_v25 = vpop.permute.xlu0 %2176 }
 0x300   : > { %v2182_v39 = vsel %vm1262_vm13, %v5228_v25, %v5226_v60 }
 0x303   : > { %v5232_v27 = vpop.permute.xlu1 %2194  ;;  %v5234_v13 = vpop.permute.xlu0 %2180 }
 0x307   : > { %v5242_v57 = vpop.permute.xlu1 %2198  ;;  %v5244_v1 = vpop.permute.xlu0 %2196 }
 0x30b   : > { %v5260_v40 = vpop.permute.xlu1 %2214  ;;  %v5262_v59 = vpop.permute.xlu0 %2212 }
 0x30c   : > { %6038 = vst [vmem:[#allocation132_spill] sm:$0xff] %v5260_v40  ;;  %6039 = vst [vmem:[#allocation131_spill] sm:$0xff] %v5262_v59  ;;  %v2103_v40 = vmul.f32 %v3117_v3, %v2101_v45  ;;  %v2119_v59 = vstv %s5240_s27  ;;  %v2078_v45 = vmul.f32 %v2074_v36, %v2066_v20  ;;  %v2128_v20 = vsel %vm6048_vm3, %v5206_v2, %v5212_v22  ;;  %s2902_s27 = smov [#allocation10]  }
 0x30d   : > { %v2147_v2 = vsel %vm1224_vm11, %v5214_v34, %v5220_v38  ;;  %v2209_v22 = vstv %s5274_s22  ;;  %v2132_v24 = vmul.f32 %v2128_v20, %v2119_v59  ;;  %v2133_v17 = vmul.f32 %v2129_v12, %v2119_v59  ;;  %s2766_s28 = sshll.u32 %s2902_s27, 4  ;;  %s2767_s28 = int_to_ptr.vmem [resolvable:$false] %s2766_s28 }
 0x30e   : > { %v2080_v11 = vadd.f32 %v2078_v45, %v2062_v9  ;;  %v2115_v18 = vmul.f32 %v2111_v53, %v2103_v40  ;;  %v2164_v40 = vsel %vm6050_vm5, %v5218_v44, %v5224_v47  ;;  %v2193_v34 = vmul.f32 %v3084_v52, %v2191_v35  ;;  %s2768_s18 = scalar_lea.vmem %s2767_s28, 64  ;;  %p2769_p4 = scmp.lt.s32.totalorder %s5386_s16, %s2767_s28 }
 0x30f   : > { %v5278_v0 = vpop.permute.xlu1 %2230  ;;  %v5280_v54 = vpop.permute.xlu0 %2216  ;;  %v2151_v59 = vmul.f32 %v2147_v2, %v2139_v30  ;;  %v2183_v44 = vsel %vm1262_vm13, %v5226_v60, %v5234_v13  ;;  %v2210_v21 = vmul.f32 %v3089_v55, %v2209_v22  ;;  %v2211_v52 = vmul.f32 %v3096_v58, %v2209_v22  ;;  %v6058_v22 = vld [vmem:[#allocation20_spill] sm:$0xff]  ;;  %p2770_p9 = scmp.lt.s32.totalorder %s2768_s18, %s2762_s8 }
 0x310   : > { %v2098_v36 = vadd.f32 %v2096_v10, %v2080_v11  ;;  %v2117_v10 = vadd.f32 %v2115_v18, %v2099_v63  ;;  %v2168_v19 = vmul.f32 %v2164_v40, %v2156_v4  ;;  %v2169_v45 = vmul.f32 %v2165_v33, %v2157_v48 }
 0x311   : > { %vm6052_vm11 = vcmask 678912   ;;  %v2228_v60 = vmul.f32 %v3101_v62, %v2227_v51  ;;  %v2263_v55 = vstv %s5310_s23  ;;  %v2186_v4 = vmul.f32 %v2182_v39, %v2174_v46  ;;  %p2771_p13 = por %p2770_p9, %p2769_p4 }
 0x312   : > { %v2116_v38 = vadd.f32 %v2114_v6, %v2098_v36  ;;  %v2135_v29 = vadd.f32 %v2133_v17, %v2117_v10  ;;  %v2200_v30 = vsel %vm6052_vm11, %v5232_v27, %v5244_v1  ;;  %vm6053_vm15 = vmmov %vm6052_vm11  ;;  %v2187_v15 = vmul.f32 %v2183_v44, %v2175_v42 }
 0x313   : > { %v2235_v28 = vpop.permute.xlu1 %2234  ;;  %v2233_v37 = vpop.permute.xlu0 %2232  ;;  %v2201_v25 = vsel %vm6053_vm15, %v5244_v1, %v5242_v57  ;;  %v6054_v53 = vld [vmem:[#allocation132_spill] sm:$0xff]  ;;  %v6055_v48 = vld [vmem:[#allocation131_spill] sm:$0xff]  ;;  %v2229_v57 = vmul.f32 %v3117_v3, %v2227_v51  ;;  %v2281_v1 = vstv %s5320_s29  ;;  %v2204_v8 = vmul.f32 %v2200_v30, %v2192_v43  ;;  %p2772_p11 = pnand %p2771_p13, %p2765_p5 }
 0x314   : > { %v2134_v47 = vadd.f32 %v2132_v24, %v2116_v38  ;;  %v2153_v13 = vadd.f32 %v2151_v59, %v2135_v29  ;;  %v2218_v35 = vsel %vm1300_vm9, %v6055_v48, %v6054_v53  ;;  %v2219_v27 = vsel %vm1300_vm9, %v6054_v53, %v5280_v54 }
 0x315   : > { %v2205_v41 = vmul.f32 %v2201_v25, %v2193_v34  ;;  %vm6056_vm13 = vcmask 662528   ;;  %v2245_v11 = vstv %s5330_s30  ;;  %v2264_v31 = vmul.f32 %v5974_v61, %v2263_v55 }
 0x316   : > { %v2152_v58 = vadd.f32 %v2150_v26, %v2134_v47  ;;  %v2171_v9 = vadd.f32 %v2169_v45, %v2153_v13  ;;  %v2236_v46 = vsel %vm6056_vm13, %v5278_v0, %v2233_v37  ;;  %vm6057_vm0 = vmmov %vm6056_vm13  ;;  %v2222_v54 = vmul.f32 %v2218_v35, %v2210_v21 }
 0x317   : > { %v2251_v56 = vpop.permute.xlu1 %2250  ;;  %v2249_v5 = vpop.permute.xlu0 %2248  ;;  %v2237_v42 = vsel %vm6057_vm0, %v2233_v37, %v2235_v28  ;;  %v2223_v3 = vmul.f32 %v2219_v27, %v2211_v52  ;;  %v2265_v43 = vmul.f32 %v3135_v7, %v2263_v55  ;;  %v2282_v36 = vmul.f32 %v6058_v22, %v2281_v1 }
 0x318   : > { %v2170_v62 = vadd.f32 %v2168_v19, %v2152_v58  ;;  %v2189_v18 = vadd.f32 %v2187_v15, %v2171_v9  ;;  %v2254_v32 = vsel %vm1338_vm8, %v2249_v5, %v2251_v56  ;;  %v2240_v24 = vmul.f32 %v2236_v46, %v2228_v60 }
 0x319   : > { %v2241_v28 = vmul.f32 %v2237_v42, %v2229_v57  ;;  %v2283_v33 = vmul.f32 %v5982_v49, %v2281_v1  ;;  %v2299_v34 = vstv %s5348_s6 }
 0x31a   : > { %v2188_v6 = vadd.f32 %v2186_v4, %v2170_v62  ;;  %v2207_v0 = vadd.f32 %v2205_v41, %v2189_v18  ;;  %v2300_v47 = vmul.f32 %v3152_v14, %v2299_v34  ;;  %v2301_v29 = vmul.f32 %v3159_v16, %v2299_v34 }
 0x31b   : > { %v2267_v23 = vpop.permute.xlu1 %2266  ;;  %v2253_v50 = vpop.permute.xlu0 %2252 }
 0x31c   : > { %v2255_v2 = vsel %vm1338_vm8, %v2251_v56, %v2253_v50  ;;  %v2206_v63 = vadd.f32 %v2204_v8, %v2188_v6  ;;  %v2225_v51 = vadd.f32 %v2223_v3, %v2207_v0  ;;  %v2258_v56 = vmul.f32 %v2254_v32, %v2245_v11 }
 0x31d   : > { %v2259_v38 = vmul.f32 %v2255_v2, %v2245_v11 }
 0x31e   : > { %v2224_v5 = vadd.f32 %v2222_v54, %v2206_v63  ;;  %v2243_v26 = vadd.f32 %v2241_v28, %v2225_v51 }
 0x31f   : > { %v2271_v20 = vpop.permute.xlu1 %2270  ;;  %v2269_v12 = vpop.permute.xlu0 %2268 }
 0x320   : > { %v2272_v61 = vsel %vm1357_vm12, %v2267_v23, %v2269_v12  ;;  %v2273_v40 = vsel %vm1357_vm12, %v2269_v12, %v2271_v20  ;;  %v2242_v10 = vadd.f32 %v2240_v24, %v2224_v5  ;;  %v2261_v19 = vadd.f32 %v2259_v38, %v2243_v26  ;;  %v6059_v20 = vld [vmem:[#allocation14_spill] sm:$0xff] }
 0x321   : > { %v2276_v59 = vmul.f32 %v2272_v61, %v2264_v31  ;;  %v2277_v39 = vmul.f32 %v2273_v40, %v2265_v43 }
 0x322   : > { %v2260_v49 = vadd.f32 %v2258_v56, %v2242_v10 }
 0x323   : > { %v2287_v37 = vpop.permute.xlu1 %2286  ;;  %v2285_v17 = vpop.permute.xlu0 %2284  ;;  %v2279_v30 = vadd.f32 %v2277_v39, %v2261_v19 }
 0x324   : > { %v2290_v7 = vsel %vm1376_vm7, %v2285_v17, %v2287_v37  ;;  %v2278_v50 = vadd.f32 %v2276_v59, %v2260_v49 }
 0x325   : > { %v2294_v45 = vmul.f32 %v2290_v7, %v2282_v36 }
 0x327   : > { %v2303_v44 = vpop.permute.xlu1 %2302  ;;  %v2289_v21 = vpop.permute.xlu0 %2288  ;;  %v2296_v13 = vadd.f32 %v2294_v45, %v2278_v50 }
 0x328   : > { %v2291_v52 = vsel %vm1376_vm7, %v2287_v37, %v2289_v21 }
 0x329   : > { %v2295_v23 = vmul.f32 %v2291_v52, %v2283_v33 }
 0x32b   : > { %v2307_v25 = vpop.permute.xlu1 %2306  ;;  %v2305_v60 = vpop.permute.xlu0 %2304  ;;  %v2297_v4 = vadd.f32 %v2295_v23, %v2279_v30 }
 0x32c   : > { %v2308_v55 = vsel %vm1395_vm10, %v2303_v44, %v2305_v60  ;;  %v2309_v58 = vsel %vm1395_vm10, %v2305_v60, %v2307_v25 }
 0x32d   : > { %v2312_v15 = vmul.f32 %v2308_v55, %v2300_v47  ;;  %v2313_v53 = vmul.f32 %v2309_v58, %v2301_v29 }
 0x32f   : > { %v2314_v14 = vadd.f32 %v2312_v15, %v2296_v13  ;;  %v2315_v16 = vadd.f32 %v2313_v53, %v2297_v4 }
 0x331   : > { %v2576_v48 = vmul.f32 -1.442695, %v2314_v14  ;;  %v2577_v35 = vmul.f32 -1.442695, %v2315_v16 }
 0x333   : > { %2709 = vpow2.f32 %v2576_v48 }
 0x334   : > { %2711 = vpow2.f32 %v2577_v35 }
 0x33d   : > { %v2710_v27 = vpop.eup %2709 }
 0x33e   : > { %v2712_v57 = vpop.eup %2711  ;;  %v2322_v1 = vadd.f32 1.0, %v2710_v27 }
 0x33f   : > { %v2323_v62 = vadd.f32 1.0, %v2712_v57 }
 0x340   : > { %2713 = vrcp.f32 %v2322_v1 }
 0x341   : > { %2715 = vrcp.f32 %v2323_v62 }
 0x34a   : > { %v2714_v9 = vpop.eup %2713 }
 0x34b   : > { %v2716_v8 = vpop.eup %2715 }
 0x34c   : > { %v2330_v41 = vcombine.low %v2714_v9, %v2716_v8 }
 0x34e   : > { %v2337_v12 = vrot.slane %v2330_v41, %v6059_v20 }
 0x350   : > { %v2344_v46 = vrot.slane %v2337_v12, %v6059_v20 }
 0x352   : > { %2346 = vst.msk [vmem:[%s189_s24] sm:$0x3] %vm3070_vm2, %v2344_v46 }
 0x353   : > { %2775 = shalt.err (!%p2772_p11)
}
 0x354   : > { %s2776_s21 = scalar_lea.hbm %s5384_s15, 32  ;;  %s2780_s23 = scalar_lea.hbm %s5437_s2, 64 }
 0x355   : > { %p2777_p3 = scmp.ne.s32.totalorder %s5384_s15, %s2776_s21  ;;  %p2781_p6 = scmp.lt.u32.totalorder %s5384_s15, %s5437_s2 }
 0x356   : > { %p2782_p1 = scmp.lt.u32.totalorder %s2780_s23, %s2776_s21  ;;  %p2784_p8 = scmp.lt.u32.totalorder %s2776_s21, %s5384_s15 }
 0x357   : > { %p2778_p7 = pnand %p2777_p3, %p6061_p2 }
 0x358   : > { %p2783_p0 = por %p2782_p1, %p2781_p6 }
 0x359   : > { %p2779_p10 = pneg %p2778_p7 }
 0x35a   : > { %p2785_p12 = por %p2784_p8, %p2783_p0 }
 0x35c   : > { %p2786_p5 = pnand %p2785_p12, %p2779_p10 }
 0x35e   : > { %2789 = shalt.err (!%p2786_p5)
}
 0x35f   : > { %2591 = dma.vmem_to_hbm [thread:$0]  (%p6061_p2), %s5386_s16, 32, %s5384_s15, %s2348_s12  }
 0x360 PF: > { %s2374_s6 = sand.u32 1, %s2828_s9   ;;  %p6062_p4 = scmp.ne.s32.totalorder %s5607_s20, 0 }
 0x361   : > { %p6063_p9 = scmp.ge.s32.totalorder %s2848_s14, 2  ;;  %s2375_s17 = scalar_lea.sflag [#allocation7], %s2374_s6 }
 0x363   : > { %p2602_p13 = pnand %p6063_p9, %p6062_p4 }
 0x365   : > { %2823 = dma.done.wait (!%p2602_p13), %s2375_s17, 32  }
 0x366   : > { %2825 = vsyncadd (!%p2602_p13), %s2375_s17, 4294967264  ;;  %s19_s14 = sadd.s32 1, %s2848_s14   ;;  %s6064_s9 = smov %s2832_s10 }
 0x367   : > { %p16_p11 = scmp.ge.s32.totalorder %s19_s14, 4   ;;  %s6065_s10 = smov %s2836_s11 }
 0x368   : > { %s6066_s11 = smov %s3010_s5  ;;  %s6067_s12 = smov %s2844_s13 }
 0x369   : > { %s6068_s13 = smov %s6070_s26  ;;  %18 = sbr.rel (!%p16_p11) target bundleno = 7 (0x7), region = 91 }
 0x370   :  { %2380 = vsyncpa [#allocation6], 1 }
 0x371   :  { %2382 = vsyncpa [#allocation6 + $0x1], 1 }
 0x372   :  { %2383 = vsyncpa [#allocation7], 1 }
 0x373   :  { %2385 = vsyncpa [#allocation7 + $0x1], 1 }
 0x374   :  { %2386 = vsyncpa [#allocation8], 1 }
 0x375   :  { %2388 = vsyncpa [#allocation8 + $0x1], 1 }

</bundles_post_ra>
